<compile_context>
chip_gen: v5e
topology: v5e:2x2
jax: 0.10.0
libtpu: 0.0.40
codegen_flags: <defaults>
</compile_context>

<pallas_src>
import functools

import jax
import jax.numpy as jnp
from jax.experimental import pallas as pl
from jax.experimental.pallas import tpu as pltpu


def _round_up(x, m):
    return (x + m - 1) // m * m


def _cdiv(a, b):
    return -(-a // b)


_LANE = 512
_GRAN = 8 * _LANE                    # reduce-kernel bulk granularity (elements)
_VMEM_LIMIT = 32 * 1024 * 1024       # explicit scoped-VMEM budget (safe on v5e/v6e/v7x)


def _detect_chip():
    """(mxu_is_256_wide, has_two_tensorcores) from the local device kind."""
    try:
        kind = (getattr(jax.devices()[0], "device_kind", "") or "").lower()
    except Exception:  # pragma: no cover - defensive
        kind = ""
    mxu256 = ("v6" in kind) or ("v7" in kind) or ("trillium" in kind)
    two_tc = "v7" in kind
    return mxu256, two_tc


# ---------------------------------------------------------------------------
# Pallas kernel 1: matmul (bf16 MXU, f32 acc, single full-K block)
#                  with fused bias + activation epilogue
# ---------------------------------------------------------------------------
def _matmul_kernel(a_ref, b_ref, bias_ref, o_ref, *, activation):
    y = jnp.dot(a_ref[...], b_ref[...], preferred_element_type=jnp.float32)
    y = y + bias_ref[...]
    if activation == "leaky_relu":
        y = jnp.where(y >= 0.0, y, 0.2 * y)
    elif activation == "relu":
        y = jnp.maximum(y, 0.0)
    o_ref[...] = y.astype(o_ref.dtype)


def matmul_bias_act(a, w_p, bias_p, activation="none", out_dtype=jnp.float32,
                    mxu256=False, two_cores=False):
    """a: [M, K] (bf16 expected), w_p: [K, Np] bf16, bias_p: [1, Np] f32.

    Returns [Mp, Np] (Mp = M rounded up to the M tile); caller slices rows.
    K is taken as a single full block, so no K padding / accumulator needed.
    """
    M, K = a.shape
    Kw, Np = w_p.shape
    assert K == Kw, (K, Kw)

    tn = 256 if (mxu256 and Np % 256 == 0) else 128
    tn = min(tn, Np)
    tm_max = 512 if mxu256 else 256
    tm = min(tm_max, _round_up(M, 8))
    if two_cores and _cdiv(M, tm) < 2 and M >= 16:
        # Make sure both TensorCores on a 2-TC chip get at least one block.
        tm = max(8, _round_up(_cdiv(M, 2), 8))
    Mp = _round_up(M, tm)

    assert Np % tn == 0, (Np, tn)
    assert Mp % tm == 0, (Mp, tm)

    a = a.astype(jnp.bfloat16)
    a_p = a if Mp == M else jnp.pad(a, ((0, Mp - M), (0, 0)))

    out = pl.pallas_call(
        functools.partial(_matmul_kernel, activation=activation),
        out_shape=jax.ShapeDtypeStruct((Mp, Np), out_dtype),
        grid_spec=pltpu.PrefetchScalarGridSpec(
            num_scalar_prefetch=0,
            grid=(Mp // tm, Np // tn),
            in_specs=[
                pl.BlockSpec((tm, K), lambda i, j: (i, 0)),
                pl.BlockSpec((K, tn), lambda i, j: (0, j)),
                pl.BlockSpec((1, tn), lambda i, j: (0, j)),
            ],
            out_specs=pl.BlockSpec((tm, tn), lambda i, j: (i, j)),
        ),
        compiler_params=pltpu.CompilerParams(
            dimension_semantics=("parallel", "parallel"),
            vmem_limit_bytes=_VMEM_LIMIT),
    )(a_p, w_p, bias_p)
    return out


# ---------------------------------------------------------------------------
# Pallas kernel 2: pairwise reduction (L1 / L2) with output-resident partials
# ---------------------------------------------------------------------------
def _pick_R(rows, cap=512):
    """Largest multiple-of-8 divisor of `rows` (rows is a multiple of 8)."""
    r = min(cap, rows)
    r -= r % 8
    while r > 8 and rows % r != 0:
        r -= 8
    return max(r, 8)


def _split_blocks(nblocks, two_cores):
    """Split the reduce grid across TensorCores only on 2-TC chips."""
    if two_cores and nblocks >= 2 and nblocks % 2 == 0:
        return 2, nblocks // 2
    return 1, nblocks


def _pair_reduce_kernel(a_ref, b_ref, o_ref, *, op):
    @pl.when(pl.program_id(1) == 0)
    def _init():
        o_ref[...] = jnp.zeros_like(o_ref)

    d = a_ref[...].astype(jnp.float32) - b_ref[...].astype(jnp.float32)
    v = jnp.abs(d) if op == "l1" else d * d
    R, L = v.shape
    o_ref[...] += v.reshape(R // 8, 8, L).sum(axis=0)


def _pair_sum_2d(op, a2d, b2d, rows, b_row_offset, two_cores):
    """Sum of |a-b| or (a-b)^2 over `rows` full (rows, LANE) rows.

    `b2d` may be the same array as `a2d` with a block-row offset (halves
    trick), avoiding half-slice copies for concatenated features.
    """
    R = _pick_R(rows)
    assert rows % R == 0 and b_row_offset % R == 0
    nblocks = rows // R
    S, cps = _split_blocks(nblocks, two_cores)
    off_blk = b_row_offset // R

    out = pl.pallas_call(
        functools.partial(_pair_reduce_kernel, op=op),
        out_shape=jax.ShapeDtypeStruct((S * 8, _LANE), jnp.float32),
        grid_spec=pltpu.PrefetchScalarGridSpec(
            num_scalar_prefetch=0,
            grid=(S, cps),
            in_specs=[
                pl.BlockSpec((R, _LANE), lambda c, i: (c * cps + i, 0)),
                pl.BlockSpec((R, _LANE), lambda c, i: (c * cps + i + off_blk, 0)),
            ],
            out_specs=pl.BlockSpec((8, _LANE), lambda c, i: (c, 0)),
        ),
        compiler_params=pltpu.CompilerParams(
            dimension_semantics=("parallel", "arbitrary"),
            vmem_limit_bytes=_VMEM_LIMIT),
    )(a2d, b2d)
    return jnp.sum(out)


def mean_pair(op, a, b, two_cores=False):
    """mean(|a-b|) or mean((a-b)^2) over all elements, no pad copies."""
    n = a.size
    a_flat = a.reshape(-1)
    b_flat = b.reshape(-1)
    n_main = (n // _GRAN) * _GRAN
    total = jnp.float32(0.0)
    if n_main > 0:
        rows = n_main // _LANE
        a2d = (a_flat if n_main == n else a_flat[:n_main]).reshape(rows, _LANE)
        b2d = (b_flat if n_main == n else b_flat[:n_main]).reshape(rows, _LANE)
        total = total + _pair_sum_2d(op, a2d, b2d, rows, 0, two_cores)
    if n_main < n:  # tiny XLA tail (< 4096 elements)
        d = a_flat[n_main:].astype(jnp.float32) - b_flat[n_main:].astype(jnp.float32)
        total = total + jnp.sum(jnp.abs(d) if op == "l1" else d * d)
    return total / jnp.float32(n)


def mean_pair_halves(op, h, two_cores=False):
    """mean distance between the two batch-halves of h (no half-slice copies)."""
    m = h.shape[0] // 2
    n_half = h.size // 2
    if n_half % _GRAN == 0:
        rows_half = n_half // _LANE
        h2d = h.reshape(2 * rows_half, _LANE)
        s = _pair_sum_2d(op, h2d, h2d, rows_half, rows_half, two_cores)
        return s / jnp.float32(n_half)
    return mean_pair(op, h[:m], h[m:], two_cores)


# ---------------------------------------------------------------------------
# Pallas kernel 3: fused discriminator-logit statistics on the lane-dense
# [Mp, 128] matmul output (no narrow slice, single pass for real + fake):
#   sum(relu(1-x)) over real rows, sum(relu(1+x)) over fake rows,
#   sum(x) over real rows, sum(x) over fake rows.
# ---------------------------------------------------------------------------
def _disc_stats_kernel(x_ref, hr_ref, hf_ref, sr_ref, sf_ref, *,
                       n_valid, n_real, oc):
    i = pl.program_id(0)

    @pl.when(i == 0)
    def _init():
        hr_ref[...] = jnp.zeros_like(hr_ref)
        hf_ref[...] = jnp.zeros_like(hf_ref)
        sr_ref[...] = jnp.zeros_like(sr_ref)
        sf_ref[...] = jnp.zeros_like(sf_ref)

    x = x_ref[...].astype(jnp.float32)
    R, L = x.shape
    row = jax.lax.broadcasted_iota(jnp.int32, (R, L), 0) + i * R
    col = jax.lax.broadcasted_iota(jnp.int32, (R, L), 1)
    col_ok = col < oc
    real = jnp.logical_and(row < n_real, col_ok)
    fake = jnp.logical_and(jnp.logical_and(row >= n_real, row < n_valid), col_ok)
    zero = jnp.zeros_like(x)

    hr = jnp.where(real, jnp.maximum(1.0 - x, 0.0), zero)
    hf = jnp.where(fake, jnp.maximum(1.0 + x, 0.0), zero)
    sr = jnp.where(real, x, zero)
    sf = jnp.where(fake, x, zero)

    hr_ref[...] += hr.reshape(R // 8, 8, L).sum(axis=0)
    hf_ref[...] += hf.reshape(R // 8, 8, L).sum(axis=0)
    sr_ref[...] += sr.reshape(R // 8, 8, L).sum(axis=0)
    sf_ref[...] += sf.reshape(R // 8, 8, L).sum(axis=0)


def disc_logit_stats(logits2d, n_valid, n_real, oc):
    """logits2d: [Mp, Np] (Np lane-dense, first `oc` columns valid, first
    `n_valid` rows valid, first `n_real` of those are "real" rows).

    Returns (hinge_real_mean, hinge_fake_mean, mean_real, mean_fake)."""
    Mp, Np = logits2d.shape
    assert Mp % 8 == 0 and Np % 128 == 0
    R = _pick_R(Mp)
    nblocks = Mp // R

    outs = pl.pallas_call(
        functools.partial(_disc_stats_kernel, n_valid=n_valid,
                          n_real=n_real, oc=oc),
        out_shape=tuple(jax.ShapeDtypeStruct((8, Np), jnp.float32)
                        for _ in range(4)),
        grid_spec=pltpu.PrefetchScalarGridSpec(
            num_scalar_prefetch=0,
            grid=(nblocks,),
            in_specs=[pl.BlockSpec((R, Np), lambda i: (i, 0))],
            out_specs=tuple(pl.BlockSpec((8, Np), lambda i: (0, 0))
                            for _ in range(4)),
        ),
        compiler_params=pltpu.CompilerParams(
            dimension_semantics=("arbitrary",),
            vmem_limit_bytes=_VMEM_LIMIT),
    )(logits2d)

    hr, hf, sr, sf = (jnp.sum(o) for o in outs)
    cnt_r = float(max(n_real * oc, 1))
    cnt_f = float(max((n_valid - n_real) * oc, 1))
    return hr / cnt_r, hf / cnt_f, sr / cnt_r, sf / cnt_f


# ---------------------------------------------------------------------------
# Conv2d (NHWC) via bf16 im2col (single materialization) + Pallas matmul
# ---------------------------------------------------------------------------
def _prep_conv(key, oc, ic, kh, kw, stride, pad, act, scale=0.05):
    w = scale * jax.random.normal(key, (oc, ic, kh, kw), jnp.float32)
    b = jnp.zeros((oc,), jnp.float32)
    K = ic * kh * kw
    Np = _round_up(oc, 128)
    # patch flat index = (ki*KW + kj)*C + c  ->  weight layout [KH, KW, C, OC]
    w2 = w.transpose(2, 3, 1, 0).reshape(K, oc)
    w_p = jnp.pad(w2, ((0, 0), (0, Np - oc))).astype(jnp.bfloat16)
    b_p = jnp.pad(b, (0, Np - oc)).reshape(1, Np).astype(jnp.float32)
    return dict(w=w_p, b=b_p, kh=kh, kw=kw, stride=stride, pad=pad,
                act=act, oc=oc)


def conv2d_nhwc(x, layer, out_dtype=jnp.bfloat16, flatten_out=False,
                mxu256=False, two_cores=False):
    """x: [N, H, W, C]. Returns [N, OH, OW, OC], or ([Mp, Np], M) if
    flatten_out (lane-dense logits path)."""
    N, H, W, C = x.shape
    kh, kw, s, p = layer["kh"], layer["kw"], layer["stride"], layer["pad"]
    OH = (H + 2 * p - kh) // s + 1
    OW = (W + 2 * p - kw) // s + 1

    xp = jnp.pad(x.astype(jnp.bfloat16), ((0, 0), (p, p), (p, p), (0, 0)))
    cols = [xp[:, i:i + s * OH:s, j:j + s * OW:s, :]
            for i in range(kh) for j in range(kw)]
    # TODO(synk): fuse these taps into the matmul grid (shifted-window
    # BlockSpecs) instead of materializing the patch matrix once.
    patches = jnp.stack(cols, axis=3).reshape(N * OH * OW, kh * kw * C)

    out = matmul_bias_act(patches, layer["w"], layer["b"],
                          activation=layer["act"], out_dtype=out_dtype,
                          mxu256=mxu256, two_cores=two_cores)
    M = N * OH * OW
    if flatten_out:
        return out, M
    oc = layer["oc"]
    return out[:M, :oc].reshape(N, OH, OW, oc)


# ---------------------------------------------------------------------------
# ReconstructionLoss_Stage2 (JAX/Pallas version)
# ---------------------------------------------------------------------------
class ReconstructionLossStage2:
    def __init__(self, key,
                 reconstruction_loss="l2", reconstruction_weight=1.0,
                 quantizer_weight=1.0, perceptual_weight=1.0,
                 discriminator_start=0, discriminator_factor=1.0,
                 discriminator_weight=0.1, lecam_regularization_weight=0.001,
                 lecam_ema_decay=0.999, ndf=16):
        if reconstruction_loss not in ("l1", "l2"):
            raise ValueError(f"Unsupported reconstruction_loss {reconstruction_loss}")
        self.reconstruction_loss = reconstruction_loss
        self.reconstruction_weight = reconstruction_weight
        self.quantizer_weight = quantizer_weight
        self.perceptual_weight = perceptual_weight
        self.discriminator_iter_start = discriminator_start
        self.discriminator_factor = discriminator_factor
        self.discriminator_weight = discriminator_weight
        self.lecam_regularization_weight = lecam_regularization_weight
        self.lecam_ema_decay = lecam_ema_decay

        self.mxu256, self.two_cores = _detect_chip()

        keys = jax.random.split(key, 8)
        # TODO(synk): exact NLayerDiscriminator definition (norm layers / blur
        # pooling) is not provided; PatchGAN conv + LeakyReLU stand-in stack.
        disc_cfg = [
            (ndf, 3, 4, 4, 2, 1, "leaky_relu"),
            (ndf * 2, ndf, 4, 4, 2, 1, "leaky_relu"),
            (ndf * 4, ndf * 2, 4, 4, 2, 1, "leaky_relu"),
            (ndf * 8, ndf * 4, 4, 4, 1, 1, "leaky_relu"),
            (1, ndf * 8, 4, 4, 1, 1, "none"),
        ]
        self.disc = [_prep_conv(keys[i], *cfg) for i, cfg in enumerate(disc_cfg)]

        # TODO(synk): pretrained VGG/ConvNeXt perceptual backbone cannot be
        # loaded here; small deterministic conv feature extractor stand-in.
        perc_cfg = [(8, 3, 3, 3, 1, 1, "relu"), (16, 8, 3, 3, 2, 1, "relu")]
        self.perc = [_prep_conv(keys[5 + i], *cfg)
                     for i, cfg in enumerate(perc_cfg)]

        # LeCam EMA state (threaded functionally through the jitted step).
        self.ema_real_logits_mean = jnp.zeros((1,), jnp.float32)
        self.ema_fake_logits_mean = jnp.zeros((1,), jnp.float32)

        self._gen_fn = jax.jit(self._generator_impl,
                               static_argnames=("apply_disc",))
        self._disc_fn = jax.jit(self._discriminator_impl)

    # -------------------- sub-networks (NHWC, bf16) --------------------
    def _discriminator_logits(self, x_nhwc):
        h = x_nhwc.astype(jnp.bfloat16)
        for layer in self.disc[:-1]:
            h = conv2d_nhwc(h, layer, out_dtype=jnp.bfloat16,
                            mxu256=self.mxu256, two_cores=self.two_cores)
        logits, m_valid = conv2d_nhwc(h, self.disc[-1], out_dtype=jnp.float32,
                                      flatten_out=True, mxu256=self.mxu256,
                                      two_cores=self.two_cores)
        return logits, m_valid   # [Mp, 128] lane-dense logits, valid rows

    def _perceptual(self, x_nhwc, y_nhwc):
        # One pass over the batch-concatenated pair: weights stream once.
        h = jnp.concatenate([x_nhwc, y_nhwc], axis=0).astype(jnp.bfloat16)
        loss = jnp.float32(0.0)
        for layer in self.perc:
            h = conv2d_nhwc(h, layer, out_dtype=jnp.bfloat16,
                            mxu256=self.mxu256, two_cores=self.two_cores)
            loss = loss + mean_pair_halves("l2", h, self.two_cores)
        return loss

    def should_discriminator_be_trained(self, global_step):
        return global_step >= self.discriminator_iter_start

    # -------------------- jitted implementations --------------------
    def _generator_impl(self, inputs, reconstructions, quantizer_loss,
                        disc_factor, apply_disc):
        reconstruction_loss = mean_pair(self.reconstruction_loss, inputs,
                                        reconstructions, self.two_cores)
        reconstruction_loss = reconstruction_loss * self.reconstruction_weight

        inputs_nhwc = jnp.transpose(inputs, (0, 2, 3, 1))
        recon_nhwc = jnp.transpose(reconstructions, (0, 2, 3, 1))
        perceptual_loss = self._perceptual(inputs_nhwc, recon_nhwc)

        generator_loss = jnp.float32(0.0)
        if apply_disc:
            logits_fake, m_valid = self._discriminator_logits(recon_nhwc)
            _, _, _, mean_fake = disc_logit_stats(logits_fake, m_valid, 0, 1)
            generator_loss = -mean_fake
        d_weight = 1.0 * self.discriminator_weight

        total_loss = (reconstruction_loss
                      + self.perceptual_weight * perceptual_loss
                      + self.quantizer_weight * quantizer_loss
                      + d_weight * disc_factor * generator_loss)

        loss_dict = dict(
            total_loss=total_loss,
            reconstruction_loss=reconstruction_loss,
            perceptual_loss=self.perceptual_weight * perceptual_loss,
            quantizer_loss=self.quantizer_weight * quantizer_loss,
            weighted_gan_loss=d_weight * disc_factor * generator_loss,
            d_weight=jnp.float32(d_weight),
            gan_loss=generator_loss,
        )
        return total_loss, loss_dict

    def _discriminator_impl(self, inputs, reconstructions, disc_factor,
                            ema_real, ema_fake):
        # One discriminator pass for real + fake (batch-concatenated).
        combined = jnp.concatenate([inputs, reconstructions], axis=0)
        combined_nhwc = jnp.transpose(combined, (0, 2, 3, 1))
        logits, m_valid = self._discriminator_logits(combined_nhwc)
        n_real = m_valid // 2

        hinge_real, hinge_fake, mean_real, mean_fake = disc_logit_stats(
            logits, m_valid, n_real, 1)
        discriminator_loss = disc_factor * 0.5 * (hinge_real + hinge_fake)

        lecam_loss = jnp.float32(0.0)
        new_ema_real, new_ema_fake = ema_real, ema_fake
        if self.lecam_regularization_weight > 0.0:
            lecam_loss = (jnp.mean(jnp.square(jnp.maximum(mean_real - ema_fake, 0.0)))
                          + jnp.mean(jnp.square(jnp.maximum(ema_real - mean_fake, 0.0)))
                          ) * self.lecam_regularization_weight
            d = self.lecam_ema_decay
            new_ema_real = ema_real * d + mean_real * (1.0 - d)
            new_ema_fake = ema_fake * d + mean_fake * (1.0 - d)
        discriminator_loss = discriminator_loss + lecam_loss

        loss_dict = dict(
            discriminator_loss=discriminator_loss,
            logits_real=mean_real,
            logits_fake=mean_fake,
            lecam_loss=lecam_loss,
        )
        return discriminator_loss, loss_dict, new_ema_real, new_ema_fake

    # -------------------- public forward --------------------
    def forward(self, inputs, reconstructions, extra_result_dict, global_step,
                mode="generator"):
        inputs = inputs.astype(jnp.float32)
        reconstructions = reconstructions.astype(jnp.float32)
        should = self.should_discriminator_be_trained(global_step)
        disc_factor = self.discriminator_factor if should else 0.0

        if mode == "generator":
            apply_disc = (disc_factor > 0.0) and (self.discriminator_weight > 0.0)
            total_loss, loss_dict = self._gen_fn(
                inputs, reconstructions,
                jnp.asarray(extra_result_dict["quantizer_loss"], jnp.float32),
                jnp.float32(disc_factor), apply_disc=apply_disc)
            loss_dict = dict(loss_dict)
            loss_dict["discriminator_factor"] = jnp.float32(disc_factor)
            loss_dict["commitment_loss"] = jnp.asarray(
                extra_result_dict["commitment_loss"], jnp.float32)
            loss_dict["codebook_loss"] = jnp.asarray(
                extra_result_dict["codebook_loss"], jnp.float32)
            return total_loss, loss_dict

        elif mode == "discriminator":
            d_loss, loss_dict, new_r, new_f = self._disc_fn(
                inputs, reconstructions, jnp.float32(disc_factor),
                self.ema_real_logits_mean, self.ema_fake_logits_mean)
            if self.lecam_regularization_weight > 0.0:
                # Functional EMA state update (outside any traced code).
                self.ema_real_logits_mean = new_r
                self.ema_fake_logits_mean = new_f
            return d_loss, dict(loss_dict)

        raise ValueError(f"Unsupported mode {mode}")


# ---------------------------------------------------------------------------
if __name__ == "__main__":
    key = jax.random.PRNGKey(0)
    k_mod, k_x, k_r = jax.random.split(key, 3)

    # Small shapes: batch=2, channels=3 (RGB), spatial=32 so the PatchGAN
    # stride-2 stack still produces valid patch logits.
    inputs = jax.random.normal(k_x, (2, 3, 32, 32), jnp.float32)
    reconstructions = jax.random.normal(k_r, (2, 3, 32, 32), jnp.float32)
    extra_result_dict = {
        "quantizer_loss": jnp.float32(0.123),
        "commitment_loss": jnp.float32(0.045),
        "codebook_loss": jnp.float32(0.078),
    }

    module = ReconstructionLossStage2(k_mod)

    total_loss, gen_dict = module.forward(
        inputs, reconstructions, extra_result_dict, global_step=10,
        mode="generator")
    total_loss = jax.block_until_ready(total_loss)

    disc_loss, disc_dict = module.forward(
        inputs, reconstructions, extra_result_dict, global_step=10,
        mode="discriminator")
    disc_loss = jax.block_until_ready(disc_loss)

    assert bool(jnp.isfinite(total_loss)), "generator loss not finite"
    assert bool(jnp.isfinite(disc_loss)), "discriminator loss not finite"
    print("KERNEL_OK")
</pallas_src>

<mosaic_0001>
module attributes {stable_mosaic.version = 11 : i64} {
  func.func @_pair_reduce_kernel(%arg0: i32, %arg1: i32, %arg2: memref<8x512xf32, #tpu.memory_space<vmem>>, %arg3: memref<8x512xf32, #tpu.memory_space<vmem>>, %arg4: memref<8x512xf32, #tpu.memory_space<vmem>>) attributes {dimension_semantics = [#tpu.dimension_semantics<parallel>, #tpu.dimension_semantics<arbitrary>], iteration_bounds = array<i64: 1, 1>, scalar_prefetch = 0 : i64, scratch_operands = 0 : i64, tpu.core_type = #tpu.core_type<tc>, window_params = [{transform_indices = @transform_0, window_bounds = array<i64: 8, 512>}, {transform_indices = @transform_1, window_bounds = array<i64: 8, 512>}, {transform_indices = @transform_2, window_bounds = array<i64: 8, 512>}]} {
    %c0_i32 = arith.constant 0 : i32
    %0 = arith.cmpi eq, %arg1, %c0_i32 : i32
    %1 = arith.extui %0 : i1 to i32
    %c0_i32_0 = arith.constant 0 : i32
    %2 = arith.cmpi ne, %1, %c0_i32_0 : i32
    scf.if %2 {
      %cst_8 = arith.constant 0.000000e+00 : f32
      %12 = vector.broadcast %cst_8 : f32 to vector<8x512xf32>
      %c0_9 = arith.constant 0 : index
      %c0_10 = arith.constant 0 : index
      %13 = vector.load %arg4[%c0_9, %c0_10] : memref<8x512xf32, #tpu.memory_space<vmem>>, vector<8x512xf32>
      tpu.vector_store %arg4[%c0_9, %c0_10], %12 {strides = array<i32>} : memref<8x512xf32, #tpu.memory_space<vmem>>, vector<8x512xf32>,
    } else {
    }
    %c0 = arith.constant 0 : index
    %c0_1 = arith.constant 0 : index
    %3 = vector.load %arg2[%c0, %c0_1] : memref<8x512xf32, #tpu.memory_space<vmem>>, vector<8x512xf32>
    %c0_2 = arith.constant 0 : index
    %c0_3 = arith.constant 0 : index
    %4 = vector.load %arg3[%c0_2, %c0_3] : memref<8x512xf32, #tpu.memory_space<vmem>>, vector<8x512xf32>
    %5 = arith.subf %3, %4 : vector<8x512xf32>
    %6 = arith.mulf %5, %5 : vector<8x512xf32>
    %c0_4 = arith.constant 0 : index
    %c0_5 = arith.constant 0 : index
    %7 = vector.load %arg4[%c0_4, %c0_5] : memref<8x512xf32, #tpu.memory_space<vmem>>, vector<8x512xf32>
    %8 = vector.shape_cast %6 : vector<8x512xf32> to vector<1x8x512xf32>
    %cst = arith.constant dense<0.000000e+00> : vector<8x512xf32>
    %9 = vector.multi_reduction <add>, %8, %cst [0] : vector<1x8x512xf32> to vector<8x512xf32>
    %10 = arith.addf %7, %9 : vector<8x512xf32>
    %c0_6 = arith.constant 0 : index
    %c0_7 = arith.constant 0 : index
    %11 = vector.load %arg4[%c0_6, %c0_7] : memref<8x512xf32, #tpu.memory_space<vmem>>, vector<8x512xf32>
    tpu.vector_store %arg4[%c0_6, %c0_7], %10 {strides = array<i32>} : memref<8x512xf32, #tpu.memory_space<vmem>>, vector<8x512xf32>,
    return
  }
  func.func @transform_0(%arg0: i32, %arg1: i32) -> (i32, i32) {
    %c1_i32 = arith.constant 1 : i32
    %0 = arith.muli %arg0, %c1_i32 : i32
    %1 = arith.addi %0, %arg1 : i32
    %c0_i32 = arith.constant 0 : i32
    %c0_i32_0 = arith.constant 0 : i32
    return %1, %c0_i32 : i32, i32
  }
  func.func @transform_1(%arg0: i32, %arg1: i32) -> (i32, i32) {
    %c1_i32 = arith.constant 1 : i32
    %0 = arith.muli %arg0, %c1_i32 : i32
    %1 = arith.addi %0, %arg1 : i32
    %c0_i32 = arith.constant 0 : i32
    %2 = arith.addi %1, %c0_i32 : i32
    %c0_i32_0 = arith.constant 0 : i32
    %c0_i32_1 = arith.constant 0 : i32
    return %2, %c0_i32_0 : i32, i32
  }
  func.func @transform_2(%arg0: i32, %arg1: i32) -> (i32, i32) {
    %c0_i32 = arith.constant 0 : i32
    %c0_i32_0 = arith.constant 0 : i32
    return %arg0, %c0_i32 : i32, i32
  }
}

module attributes {stable_mosaic.version = 11 : i64} {
  func.func @_matmul_kernel(%arg0: i32, %arg1: i32, %arg2: memref<256x27xbf16, #tpu.memory_space<vmem>>, %arg3: memref<27x128xbf16, #tpu.memory_space<vmem>>, %arg4: memref<1x128xf32, #tpu.memory_space<vmem>>, %arg5: memref<256x128xbf16, #tpu.memory_space<vmem>>) attributes {dimension_semantics = [#tpu.dimension_semantics<parallel>, #tpu.dimension_semantics<parallel>], iteration_bounds = array<i64: 16, 1>, scalar_prefetch = 0 : i64, scratch_operands = 0 : i64, tpu.core_type = #tpu.core_type<tc>, window_params = [{transform_indices = @transform_0, window_bounds = array<i64: 256, 27>}, {transform_indices = @transform_1, window_bounds = array<i64: 27, 128>}, {transform_indices = @transform_2, window_bounds = array<i64: 1, 128>}, {transform_indices = @transform_3, window_bounds = array<i64: 256, 128>}]} {
    %c0 = arith.constant 0 : index
    %c0_0 = arith.constant 0 : index
    %0 = vector.load %arg2[%c0, %c0_0] : memref<256x27xbf16, #tpu.memory_space<vmem>>, vector<256x27xbf16>
    %c0_1 = arith.constant 0 : index
    %c0_2 = arith.constant 0 : index
    %1 = vector.load %arg3[%c0_1, %c0_2] : memref<27x128xbf16, #tpu.memory_space<vmem>>, vector<27x128xbf16>
    %cst = arith.constant dense<0.000000e+00> : vector<256x128xf32>
    %2 = tpu.matmul %0, %1, %cst {dimension_numbers = #tpu.dot_dimension_numbers<[1], [0], [0], [1], [0, 0, 1, 1], [], []>} : vector<256x27xbf16>, vector<27x128xbf16>, vector<256x128xf32> -> vector<256x128xf32>
    %c0_3 = arith.constant 0 : index
    %c0_4 = arith.constant 0 : index
    %3 = vector.load %arg4[%c0_3, %c0_4] : memref<1x128xf32, #tpu.memory_space<vmem>>, vector<1x128xf32>
    %4 = vector.broadcast %3 : vector<1x128xf32> to vector<256x128xf32>
    %5 = arith.addf %2, %4 : vector<256x128xf32>
    %cst_5 = arith.constant 0.000000e+00 : f32
    %6 = vector.broadcast %cst_5 : f32 to vector<256x128xf32>
    %7 = arith.maximumf %5, %6 : vector<256x128xf32>
    %8 = arith.truncf %7 : vector<256x128xf32> to vector<256x128xbf16>
    %c0_6 = arith.constant 0 : index
    %c0_7 = arith.constant 0 : index
    %9 = vector.load %arg5[%c0_6, %c0_7] : memref<256x128xbf16, #tpu.memory_space<vmem>>, vector<256x128xbf16>
    tpu.vector_store %arg5[%c0_6, %c0_7], %8 {strides = array<i32>} : memref<256x128xbf16, #tpu.memory_space<vmem>>, vector<256x128xbf16>,
    return
  }
  func.func @transform_0(%arg0: i32, %arg1: i32) -> (i32, i32) {
    %c0_i32 = arith.constant 0 : i32
    %c0_i32_0 = arith.constant 0 : i32
    return %arg0, %c0_i32 : i32, i32
  }
  func.func @transform_1(%arg0: i32, %arg1: i32) -> (i32, i32) {
    %c0_i32 = arith.constant 0 : i32
    %c0_i32_0 = arith.constant 0 : i32
    return %c0_i32, %arg1 : i32, i32
  }
  func.func @transform_2(%arg0: i32, %arg1: i32) -> (i32, i32) {
    %c0_i32 = arith.constant 0 : i32
    %c0_i32_0 = arith.constant 0 : i32
    return %c0_i32, %arg1 : i32, i32
  }
  func.func @transform_3(%arg0: i32, %arg1: i32) -> (i32, i32) {
    %c0_i32 = arith.constant 0 : i32
    return %arg0, %arg1 : i32, i32
  }
}

module attributes {stable_mosaic.version = 11 : i64} {
  func.func @_pair_reduce_kernel(%arg0: i32, %arg1: i32, %arg2: memref<32x512xbf16, #tpu.memory_space<vmem>>, %arg3: memref<32x512xbf16, #tpu.memory_space<vmem>>, %arg4: memref<8x512xf32, #tpu.memory_space<vmem>>) attributes {dimension_semantics = [#tpu.dimension_semantics<parallel>, #tpu.dimension_semantics<arbitrary>], iteration_bounds = array<i64: 1, 1>, scalar_prefetch = 0 : i64, scratch_operands = 0 : i64, tpu.core_type = #tpu.core_type<tc>, window_params = [{transform_indices = @transform_0, window_bounds = array<i64: 32, 512>}, {transform_indices = @transform_1, window_bounds = array<i64: 32, 512>}, {transform_indices = @transform_2, window_bounds = array<i64: 8, 512>}]} {
    %c0_i32 = arith.constant 0 : i32
    %0 = arith.cmpi eq, %arg1, %c0_i32 : i32
    %1 = arith.extui %0 : i1 to i32
    %c0_i32_0 = arith.constant 0 : i32
    %2 = arith.cmpi ne, %1, %c0_i32_0 : i32
    scf.if %2 {
      %cst_8 = arith.constant 0.000000e+00 : f32
      %14 = vector.broadcast %cst_8 : f32 to vector<8x512xf32>
      %c0_9 = arith.constant 0 : index
      %c0_10 = arith.constant 0 : index
      %15 = vector.load %arg4[%c0_9, %c0_10] : memref<8x512xf32, #tpu.memory_space<vmem>>, vector<8x512xf32>
      tpu.vector_store %arg4[%c0_9, %c0_10], %14 {strides = array<i32>} : memref<8x512xf32, #tpu.memory_space<vmem>>, vector<8x512xf32>,
    } else {
    }
    %c0 = arith.constant 0 : index
    %c0_1 = arith.constant 0 : index
    %3 = vector.load %arg2[%c0, %c0_1] : memref<32x512xbf16, #tpu.memory_space<vmem>>, vector<32x512xbf16>
    %4 = arith.extf %3 : vector<32x512xbf16> to vector<32x512xf32>
    %c0_2 = arith.constant 0 : index
    %c0_3 = arith.constant 0 : index
    %5 = vector.load %arg3[%c0_2, %c0_3] : memref<32x512xbf16, #tpu.memory_space<vmem>>, vector<32x512xbf16>
    %6 = arith.extf %5 : vector<32x512xbf16> to vector<32x512xf32>
    %7 = arith.subf %4, %6 : vector<32x512xf32>
    %8 = arith.mulf %7, %7 : vector<32x512xf32>
    %c0_4 = arith.constant 0 : index
    %c0_5 = arith.constant 0 : index
    %9 = vector.load %arg4[%c0_4, %c0_5] : memref<8x512xf32, #tpu.memory_space<vmem>>, vector<8x512xf32>
    %10 = vector.shape_cast %8 : vector<32x512xf32> to vector<4x8x512xf32>
    %cst = arith.constant dense<0.000000e+00> : vector<8x512xf32>
    %11 = vector.multi_reduction <add>, %10, %cst [0] : vector<4x8x512xf32> to vector<8x512xf32>
    %12 = arith.addf %9, %11 : vector<8x512xf32>
    %c0_6 = arith.constant 0 : index
    %c0_7 = arith.constant 0 : index
    %13 = vector.load %arg4[%c0_6, %c0_7] : memref<8x512xf32, #tpu.memory_space<vmem>>, vector<8x512xf32>
    tpu.vector_store %arg4[%c0_6, %c0_7], %12 {strides = array<i32>} : memref<8x512xf32, #tpu.memory_space<vmem>>, vector<8x512xf32>,
    return
  }
  func.func @transform_0(%arg0: i32, %arg1: i32) -> (i32, i32) {
    %c1_i32 = arith.constant 1 : i32
    %0 = arith.muli %arg0, %c1_i32 : i32
    %1 = arith.addi %0, %arg1 : i32
    %c0_i32 = arith.constant 0 : i32
    %c0_i32_0 = arith.constant 0 : i32
    return %1, %c0_i32 : i32, i32
  }
  func.func @transform_1(%arg0: i32, %arg1: i32) -> (i32, i32) {
    %c1_i32 = arith.constant 1 : i32
    %0 = arith.muli %arg0, %c1_i32 : i32
    %1 = arith.addi %0, %arg1 : i32
    %c1_i32_0 = arith.constant 1 : i32
    %2 = arith.addi %1, %c1_i32_0 : i32
    %c0_i32 = arith.constant 0 : i32
    %c0_i32_1 = arith.constant 0 : i32
    return %2, %c0_i32 : i32, i32
  }
  func.func @transform_2(%arg0: i32, %arg1: i32) -> (i32, i32) {
    %c0_i32 = arith.constant 0 : i32
    %c0_i32_0 = arith.constant 0 : i32
    return %arg0, %c0_i32 : i32, i32
  }
}

module attributes {stable_mosaic.version = 11 : i64} {
  func.func @_matmul_kernel(%arg0: i32, %arg1: i32, %arg2: memref<256x72xbf16, #tpu.memory_space<vmem>>, %arg3: memref<72x128xbf16, #tpu.memory_space<vmem>>, %arg4: memref<1x128xf32, #tpu.memory_space<vmem>>, %arg5: memref<256x128xbf16, #tpu.memory_space<vmem>>) attributes {dimension_semantics = [#tpu.dimension_semantics<parallel>, #tpu.dimension_semantics<parallel>], iteration_bounds = array<i64: 4, 1>, scalar_prefetch = 0 : i64, scratch_operands = 0 : i64, tpu.core_type = #tpu.core_type<tc>, window_params = [{transform_indices = @transform_0, window_bounds = array<i64: 256, 72>}, {transform_indices = @transform_1, window_bounds = array<i64: 72, 128>}, {transform_indices = @transform_2, window_bounds = array<i64: 1, 128>}, {transform_indices = @transform_3, window_bounds = array<i64: 256, 128>}]} {
    %c0 = arith.constant 0 : index
    %c0_0 = arith.constant 0 : index
    %0 = vector.load %arg2[%c0, %c0_0] : memref<256x72xbf16, #tpu.memory_space<vmem>>, vector<256x72xbf16>
    %c0_1 = arith.constant 0 : index
    %c0_2 = arith.constant 0 : index
    %1 = vector.load %arg3[%c0_1, %c0_2] : memref<72x128xbf16, #tpu.memory_space<vmem>>, vector<72x128xbf16>
    %cst = arith.constant dense<0.000000e+00> : vector<256x128xf32>
    %2 = tpu.matmul %0, %1, %cst {dimension_numbers = #tpu.dot_dimension_numbers<[1], [0], [0], [1], [0, 0, 1, 1], [], []>} : vector<256x72xbf16>, vector<72x128xbf16>, vector<256x128xf32> -> vector<256x128xf32>
    %c0_3 = arith.constant 0 : index
    %c0_4 = arith.constant 0 : index
    %3 = vector.load %arg4[%c0_3, %c0_4] : memref<1x128xf32, #tpu.memory_space<vmem>>, vector<1x128xf32>
    %4 = vector.broadcast %3 : vector<1x128xf32> to vector<256x128xf32>
    %5 = arith.addf %2, %4 : vector<256x128xf32>
    %cst_5 = arith.constant 0.000000e+00 : f32
    %6 = vector.broadcast %cst_5 : f32 to vector<256x128xf32>
    %7 = arith.maximumf %5, %6 : vector<256x128xf32>
    %8 = arith.truncf %7 : vector<256x128xf32> to vector<256x128xbf16>
    %c0_6 = arith.constant 0 : index
    %c0_7 = arith.constant 0 : index
    %9 = vector.load %arg5[%c0_6, %c0_7] : memref<256x128xbf16, #tpu.memory_space<vmem>>, vector<256x128xbf16>
    tpu.vector_store %arg5[%c0_6, %c0_7], %8 {strides = array<i32>} : memref<256x128xbf16, #tpu.memory_space<vmem>>, vector<256x128xbf16>,
    return
  }
  func.func @transform_0(%arg0: i32, %arg1: i32) -> (i32, i32) {
    %c0_i32 = arith.constant 0 : i32
    %c0_i32_0 = arith.constant 0 : i32
    return %arg0, %c0_i32 : i32, i32
  }
  func.func @transform_1(%arg0: i32, %arg1: i32) -> (i32, i32) {
    %c0_i32 = arith.constant 0 : i32
    %c0_i32_0 = arith.constant 0 : i32
    return %c0_i32, %arg1 : i32, i32
  }
  func.func @transform_2(%arg0: i32, %arg1: i32) -> (i32, i32) {
    %c0_i32 = arith.constant 0 : i32
    %c0_i32_0 = arith.constant 0 : i32
    return %c0_i32, %arg1 : i32, i32
  }
  func.func @transform_3(%arg0: i32, %arg1: i32) -> (i32, i32) {
    %c0_i32 = arith.constant 0 : i32
    return %arg0, %arg1 : i32, i32
  }
}

module attributes {stable_mosaic.version = 11 : i64} {
  func.func @_pair_reduce_kernel(%arg0: i32, %arg1: i32, %arg2: memref<16x512xbf16, #tpu.memory_space<vmem>>, %arg3: memref<16x512xbf16, #tpu.memory_space<vmem>>, %arg4: memref<8x512xf32, #tpu.memory_space<vmem>>) attributes {dimension_semantics = [#tpu.dimension_semantics<parallel>, #tpu.dimension_semantics<arbitrary>], iteration_bounds = array<i64: 1, 1>, scalar_prefetch = 0 : i64, scratch_operands = 0 : i64, tpu.core_type = #tpu.core_type<tc>, window_params = [{transform_indices = @transform_0, window_bounds = array<i64: 16, 512>}, {transform_indices = @transform_1, window_bounds = array<i64: 16, 512>}, {transform_indices = @transform_2, window_bounds = array<i64: 8, 512>}]} {
    %c0_i32 = arith.constant 0 : i32
    %0 = arith.cmpi eq, %arg1, %c0_i32 : i32
    %1 = arith.extui %0 : i1 to i32
    %c0_i32_0 = arith.constant 0 : i32
    %2 = arith.cmpi ne, %1, %c0_i32_0 : i32
    scf.if %2 {
      %cst_8 = arith.constant 0.000000e+00 : f32
      %14 = vector.broadcast %cst_8 : f32 to vector<8x512xf32>
      %c0_9 = arith.constant 0 : index
      %c0_10 = arith.constant 0 : index
      %15 = vector.load %arg4[%c0_9, %c0_10] : memref<8x512xf32, #tpu.memory_space<vmem>>, vector<8x512xf32>
      tpu.vector_store %arg4[%c0_9, %c0_10], %14 {strides = array<i32>} : memref<8x512xf32, #tpu.memory_space<vmem>>, vector<8x512xf32>,
    } else {
    }
    %c0 = arith.constant 0 : index
    %c0_1 = arith.constant 0 : index
    %3 = vector.load %arg2[%c0, %c0_1] : memref<16x512xbf16, #tpu.memory_space<vmem>>, vector<16x512xbf16>
    %4 = arith.extf %3 : vector<16x512xbf16> to vector<16x512xf32>
    %c0_2 = arith.constant 0 : index
    %c0_3 = arith.constant 0 : index
    %5 = vector.load %arg3[%c0_2, %c0_3] : memref<16x512xbf16, #tpu.memory_space<vmem>>, vector<16x512xbf16>
    %6 = arith.extf %5 : vector<16x512xbf16> to vector<16x512xf32>
    %7 = arith.subf %4, %6 : vector<16x512xf32>
    %8 = arith.mulf %7, %7 : vector<16x512xf32>
    %c0_4 = arith.constant 0 : index
    %c0_5 = arith.constant 0 : index
    %9 = vector.load %arg4[%c0_4, %c0_5] : memref<8x512xf32, #tpu.memory_space<vmem>>, vector<8x512xf32>
    %10 = vector.shape_cast %8 : vector<16x512xf32> to vector<2x8x512xf32>
    %cst = arith.constant dense<0.000000e+00> : vector<8x512xf32>
    %11 = vector.multi_reduction <add>, %10, %cst [0] : vector<2x8x512xf32> to vector<8x512xf32>
    %12 = arith.addf %9, %11 : vector<8x512xf32>
    %c0_6 = arith.constant 0 : index
    %c0_7 = arith.constant 0 : index
    %13 = vector.load %arg4[%c0_6, %c0_7] : memref<8x512xf32, #tpu.memory_space<vmem>>, vector<8x512xf32>
    tpu.vector_store %arg4[%c0_6, %c0_7], %12 {strides = array<i32>} : memref<8x512xf32, #tpu.memory_space<vmem>>, vector<8x512xf32>,
    return
  }
  func.func @transform_0(%arg0: i32, %arg1: i32) -> (i32, i32) {
    %c1_i32 = arith.constant 1 : i32
    %0 = arith.muli %arg0, %c1_i32 : i32
    %1 = arith.addi %0, %arg1 : i32
    %c0_i32 = arith.constant 0 : i32
    %c0_i32_0 = arith.constant 0 : i32
    return %1, %c0_i32 : i32, i32
  }
  func.func @transform_1(%arg0: i32, %arg1: i32) -> (i32, i32) {
    %c1_i32 = arith.constant 1 : i32
    %0 = arith.muli %arg0, %c1_i32 : i32
    %1 = arith.addi %0, %arg1 : i32
    %c1_i32_0 = arith.constant 1 : i32
    %2 = arith.addi %1, %c1_i32_0 : i32
    %c0_i32 = arith.constant 0 : i32
    %c0_i32_1 = arith.constant 0 : i32
    return %2, %c0_i32 : i32, i32
  }
  func.func @transform_2(%arg0: i32, %arg1: i32) -> (i32, i32) {
    %c0_i32 = arith.constant 0 : i32
    %c0_i32_0 = arith.constant 0 : i32
    return %arg0, %c0_i32 : i32, i32
  }
}

module attributes {stable_mosaic.version = 11 : i64} {
  func.func @_matmul_kernel(%arg0: i32, %arg1: i32, %arg2: memref<256x48xbf16, #tpu.memory_space<vmem>>, %arg3: memref<48x128xbf16, #tpu.memory_space<vmem>>, %arg4: memref<1x128xf32, #tpu.memory_space<vmem>>, %arg5: memref<256x128xbf16, #tpu.memory_space<vmem>>) attributes {dimension_semantics = [#tpu.dimension_semantics<parallel>, #tpu.dimension_semantics<parallel>], iteration_bounds = array<i64: 2, 1>, scalar_prefetch = 0 : i64, scratch_operands = 0 : i64, tpu.core_type = #tpu.core_type<tc>, window_params = [{transform_indices = @transform_0, window_bounds = array<i64: 256, 48>}, {transform_indices = @transform_1, window_bounds = array<i64: 48, 128>}, {transform_indices = @transform_2, window_bounds = array<i64: 1, 128>}, {transform_indices = @transform_3, window_bounds = array<i64: 256, 128>}]} {
    %c0 = arith.constant 0 : index
    %c0_0 = arith.constant 0 : index
    %0 = vector.load %arg2[%c0, %c0_0] : memref<256x48xbf16, #tpu.memory_space<vmem>>, vector<256x48xbf16>
    %c0_1 = arith.constant 0 : index
    %c0_2 = arith.constant 0 : index
    %1 = vector.load %arg3[%c0_1, %c0_2] : memref<48x128xbf16, #tpu.memory_space<vmem>>, vector<48x128xbf16>
    %cst = arith.constant dense<0.000000e+00> : vector<256x128xf32>
    %2 = tpu.matmul %0, %1, %cst {dimension_numbers = #tpu.dot_dimension_numbers<[1], [0], [0], [1], [0, 0, 1, 1], [], []>} : vector<256x48xbf16>, vector<48x128xbf16>, vector<256x128xf32> -> vector<256x128xf32>
    %c0_3 = arith.constant 0 : index
    %c0_4 = arith.constant 0 : index
    %3 = vector.load %arg4[%c0_3, %c0_4] : memref<1x128xf32, #tpu.memory_space<vmem>>, vector<1x128xf32>
    %4 = vector.broadcast %3 : vector<1x128xf32> to vector<256x128xf32>
    %5 = arith.addf %2, %4 : vector<256x128xf32>
    %cst_5 = arith.constant 0.000000e+00 : f32
    %6 = vector.broadcast %cst_5 : f32 to vector<256x128xf32>
    %7 = arith.cmpf oge, %5, %6 : vector<256x128xf32>
    %cst_6 = arith.constant 2.000000e-01 : f32
    %8 = vector.broadcast %cst_6 : f32 to vector<256x128xf32>
    %9 = arith.mulf %8, %5 : vector<256x128xf32>
    %10 = arith.select %7, %5, %9 : vector<256x128xi1>, vector<256x128xf32>
    %11 = arith.truncf %10 : vector<256x128xf32> to vector<256x128xbf16>
    %c0_7 = arith.constant 0 : index
    %c0_8 = arith.constant 0 : index
    %12 = vector.load %arg5[%c0_7, %c0_8] : memref<256x128xbf16, #tpu.memory_space<vmem>>, vector<256x128xbf16>
    tpu.vector_store %arg5[%c0_7, %c0_8], %11 {strides = array<i32>} : memref<256x128xbf16, #tpu.memory_space<vmem>>, vector<256x128xbf16>,
    return
  }
  func.func @transform_0(%arg0: i32, %arg1: i32) -> (i32, i32) {
    %c0_i32 = arith.constant 0 : i32
    %c0_i32_0 = arith.constant 0 : i32
    return %arg0, %c0_i32 : i32, i32
  }
  func.func @transform_1(%arg0: i32, %arg1: i32) -> (i32, i32) {
    %c0_i32 = arith.constant 0 : i32
    %c0_i32_0 = arith.constant 0 : i32
    return %c0_i32, %arg1 : i32, i32
  }
  func.func @transform_2(%arg0: i32, %arg1: i32) -> (i32, i32) {
    %c0_i32 = arith.constant 0 : i32
    %c0_i32_0 = arith.constant 0 : i32
    return %c0_i32, %arg1 : i32, i32
  }
  func.func @transform_3(%arg0: i32, %arg1: i32) -> (i32, i32) {
    %c0_i32 = arith.constant 0 : i32
    return %arg0, %arg1 : i32, i32
  }
}

module attributes {stable_mosaic.version = 11 : i64} {
  func.func @_matmul_kernel(%arg0: i32, %arg1: i32, %arg2: memref<128x256xbf16, #tpu.memory_space<vmem>>, %arg3: memref<256x128xbf16, #tpu.memory_space<vmem>>, %arg4: memref<1x128xf32, #tpu.memory_space<vmem>>, %arg5: memref<128x128xbf16, #tpu.memory_space<vmem>>) attributes {dimension_semantics = [#tpu.dimension_semantics<parallel>, #tpu.dimension_semantics<parallel>], iteration_bounds = array<i64: 1, 1>, scalar_prefetch = 0 : i64, scratch_operands = 0 : i64, tpu.core_type = #tpu.core_type<tc>, window_params = [{transform_indices = @transform_0, window_bounds = array<i64: 128, 256>}, {transform_indices = @transform_1, window_bounds = array<i64: 256, 128>}, {transform_indices = @transform_2, window_bounds = array<i64: 1, 128>}, {transform_indices = @transform_3, window_bounds = array<i64: 128, 128>}]} {
    %c0 = arith.constant 0 : index
    %c0_0 = arith.constant 0 : index
    %0 = vector.load %arg2[%c0, %c0_0] : memref<128x256xbf16, #tpu.memory_space<vmem>>, vector<128x256xbf16>
    %c0_1 = arith.constant 0 : index
    %c0_2 = arith.constant 0 : index
    %1 = vector.load %arg3[%c0_1, %c0_2] : memref<256x128xbf16, #tpu.memory_space<vmem>>, vector<256x128xbf16>
    %cst = arith.constant dense<0.000000e+00> : vector<128x128xf32>
    %2 = tpu.matmul %0, %1, %cst {dimension_numbers = #tpu.dot_dimension_numbers<[1], [0], [0], [1], [0, 0, 1, 1], [], []>} : vector<128x256xbf16>, vector<256x128xbf16>, vector<128x128xf32> -> vector<128x128xf32>
    %c0_3 = arith.constant 0 : index
    %c0_4 = arith.constant 0 : index
    %3 = vector.load %arg4[%c0_3, %c0_4] : memref<1x128xf32, #tpu.memory_space<vmem>>, vector<1x128xf32>
    %4 = vector.broadcast %3 : vector<1x128xf32> to vector<128x128xf32>
    %5 = arith.addf %2, %4 : vector<128x128xf32>
    %cst_5 = arith.constant 0.000000e+00 : f32
    %6 = vector.broadcast %cst_5 : f32 to vector<128x128xf32>
    %7 = arith.cmpf oge, %5, %6 : vector<128x128xf32>
    %cst_6 = arith.constant 2.000000e-01 : f32
    %8 = vector.broadcast %cst_6 : f32 to vector<128x128xf32>
    %9 = arith.mulf %8, %5 : vector<128x128xf32>
    %10 = arith.select %7, %5, %9 : vector<128x128xi1>, vector<128x128xf32>
    %11 = arith.truncf %10 : vector<128x128xf32> to vector<128x128xbf16>
    %c0_7 = arith.constant 0 : index
    %c0_8 = arith.constant 0 : index
    %12 = vector.load %arg5[%c0_7, %c0_8] : memref<128x128xbf16, #tpu.memory_space<vmem>>, vector<128x128xbf16>
    tpu.vector_store %arg5[%c0_7, %c0_8], %11 {strides = array<i32>} : memref<128x128xbf16, #tpu.memory_space<vmem>>, vector<128x128xbf16>,
    return
  }
  func.func @transform_0(%arg0: i32, %arg1: i32) -> (i32, i32) {
    %c0_i32 = arith.constant 0 : i32
    %c0_i32_0 = arith.constant 0 : i32
    return %arg0, %c0_i32 : i32, i32
  }
  func.func @transform_1(%arg0: i32, %arg1: i32) -> (i32, i32) {
    %c0_i32 = arith.constant 0 : i32
    %c0_i32_0 = arith.constant 0 : i32
    return %c0_i32, %arg1 : i32, i32
  }
  func.func @transform_2(%arg0: i32, %arg1: i32) -> (i32, i32) {
    %c0_i32 = arith.constant 0 : i32
    %c0_i32_0 = arith.constant 0 : i32
    return %c0_i32, %arg1 : i32, i32
  }
  func.func @transform_3(%arg0: i32, %arg1: i32) -> (i32, i32) {
    %c0_i32 = arith.constant 0 : i32
    return %arg0, %arg1 : i32, i32
  }
}

module attributes {stable_mosaic.version = 11 : i64} {
  func.func @_matmul_kernel(%arg0: i32, %arg1: i32, %arg2: memref<32x512xbf16, #tpu.memory_space<vmem>>, %arg3: memref<512x128xbf16, #tpu.memory_space<vmem>>, %arg4: memref<1x128xf32, #tpu.memory_space<vmem>>, %arg5: memref<32x128xbf16, #tpu.memory_space<vmem>>) attributes {dimension_semantics = [#tpu.dimension_semantics<parallel>, #tpu.dimension_semantics<parallel>], iteration_bounds = array<i64: 1, 1>, scalar_prefetch = 0 : i64, scratch_operands = 0 : i64, tpu.core_type = #tpu.core_type<tc>, window_params = [{transform_indices = @transform_0, window_bounds = array<i64: 32, 512>}, {transform_indices = @transform_1, window_bounds = array<i64: 512, 128>}, {transform_indices = @transform_2, window_bounds = array<i64: 1, 128>}, {transform_indices = @transform_3, window_bounds = array<i64: 32, 128>}]} {
    %c0 = arith.constant 0 : index
    %c0_0 = arith.constant 0 : index
    %0 = vector.load %arg2[%c0, %c0_0] : memref<32x512xbf16, #tpu.memory_space<vmem>>, vector<32x512xbf16>
    %c0_1 = arith.constant 0 : index
    %c0_2 = arith.constant 0 : index
    %1 = vector.load %arg3[%c0_1, %c0_2] : memref<512x128xbf16, #tpu.memory_space<vmem>>, vector<512x128xbf16>
    %cst = arith.constant dense<0.000000e+00> : vector<32x128xf32>
    %2 = tpu.matmul %0, %1, %cst {dimension_numbers = #tpu.dot_dimension_numbers<[1], [0], [0], [1], [0, 0, 1, 1], [], []>} : vector<32x512xbf16>, vector<512x128xbf16>, vector<32x128xf32> -> vector<32x128xf32>
    %c0_3 = arith.constant 0 : index
    %c0_4 = arith.constant 0 : index
    %3 = vector.load %arg4[%c0_3, %c0_4] : memref<1x128xf32, #tpu.memory_space<vmem>>, vector<1x128xf32>
    %4 = vector.broadcast %3 : vector<1x128xf32> to vector<32x128xf32>
    %5 = arith.addf %2, %4 : vector<32x128xf32>
    %cst_5 = arith.constant 0.000000e+00 : f32
    %6 = vector.broadcast %cst_5 : f32 to vector<32x128xf32>
    %7 = arith.cmpf oge, %5, %6 : vector<32x128xf32>
    %cst_6 = arith.constant 2.000000e-01 : f32
    %8 = vector.broadcast %cst_6 : f32 to vector<32x128xf32>
    %9 = arith.mulf %8, %5 : vector<32x128xf32>
    %10 = arith.select %7, %5, %9 : vector<32x128xi1>, vector<32x128xf32>
    %11 = arith.truncf %10 : vector<32x128xf32> to vector<32x128xbf16>
    %c0_7 = arith.constant 0 : index
    %c0_8 = arith.constant 0 : index
    %12 = vector.load %arg5[%c0_7, %c0_8] : memref<32x128xbf16, #tpu.memory_space<vmem>>, vector<32x128xbf16>
    tpu.vector_store %arg5[%c0_7, %c0_8], %11 {strides = array<i32>} : memref<32x128xbf16, #tpu.memory_space<vmem>>, vector<32x128xbf16>,
    return
  }
  func.func @transform_0(%arg0: i32, %arg1: i32) -> (i32, i32) {
    %c0_i32 = arith.constant 0 : i32
    %c0_i32_0 = arith.constant 0 : i32
    return %arg0, %c0_i32 : i32, i32
  }
  func.func @transform_1(%arg0: i32, %arg1: i32) -> (i32, i32) {
    %c0_i32 = arith.constant 0 : i32
    %c0_i32_0 = arith.constant 0 : i32
    return %c0_i32, %arg1 : i32, i32
  }
  func.func @transform_2(%arg0: i32, %arg1: i32) -> (i32, i32) {
    %c0_i32 = arith.constant 0 : i32
    %c0_i32_0 = arith.constant 0 : i32
    return %c0_i32, %arg1 : i32, i32
  }
  func.func @transform_3(%arg0: i32, %arg1: i32) -> (i32, i32) {
    %c0_i32 = arith.constant 0 : i32
    return %arg0, %arg1 : i32, i32
  }
}

module attributes {stable_mosaic.version = 11 : i64} {
  func.func @_matmul_kernel(%arg0: i32, %arg1: i32, %arg2: memref<24x1024xbf16, #tpu.memory_space<vmem>>, %arg3: memref<1024x128xbf16, #tpu.memory_space<vmem>>, %arg4: memref<1x128xf32, #tpu.memory_space<vmem>>, %arg5: memref<24x128xbf16, #tpu.memory_space<vmem>>) attributes {dimension_semantics = [#tpu.dimension_semantics<parallel>, #tpu.dimension_semantics<parallel>], iteration_bounds = array<i64: 1, 1>, scalar_prefetch = 0 : i64, scratch_operands = 0 : i64, tpu.core_type = #tpu.core_type<tc>, window_params = [{transform_indices = @transform_0, window_bounds = array<i64: 24, 1024>}, {transform_indices = @transform_1, window_bounds = array<i64: 1024, 128>}, {transform_indices = @transform_2, window_bounds = array<i64: 1, 128>}, {transform_indices = @transform_3, window_bounds = array<i64: 24, 128>}]} {
    %c0 = arith.constant 0 : index
    %c0_0 = arith.constant 0 : index
    %0 = vector.load %arg2[%c0, %c0_0] : memref<24x1024xbf16, #tpu.memory_space<vmem>>, vector<24x1024xbf16>
    %c0_1 = arith.constant 0 : index
    %c0_2 = arith.constant 0 : index
    %1 = vector.load %arg3[%c0_1, %c0_2] : memref<1024x128xbf16, #tpu.memory_space<vmem>>, vector<1024x128xbf16>
    %cst = arith.constant dense<0.000000e+00> : vector<24x128xf32>
    %2 = tpu.matmul %0, %1, %cst {dimension_numbers = #tpu.dot_dimension_numbers<[1], [0], [0], [1], [0, 0, 1, 1], [], []>} : vector<24x1024xbf16>, vector<1024x128xbf16>, vector<24x128xf32> -> vector<24x128xf32>
    %c0_3 = arith.constant 0 : index
    %c0_4 = arith.constant 0 : index
    %3 = vector.load %arg4[%c0_3, %c0_4] : memref<1x128xf32, #tpu.memory_space<vmem>>, vector<1x128xf32>
    %4 = vector.broadcast %3 : vector<1x128xf32> to vector<24x128xf32>
    %5 = arith.addf %2, %4 : vector<24x128xf32>
    %cst_5 = arith.constant 0.000000e+00 : f32
    %6 = vector.broadcast %cst_5 : f32 to vector<24x128xf32>
    %7 = arith.cmpf oge, %5, %6 : vector<24x128xf32>
    %cst_6 = arith.constant 2.000000e-01 : f32
    %8 = vector.broadcast %cst_6 : f32 to vector<24x128xf32>
    %9 = arith.mulf %8, %5 : vector<24x128xf32>
    %10 = arith.select %7, %5, %9 : vector<24x128xi1>, vector<24x128xf32>
    %11 = arith.truncf %10 : vector<24x128xf32> to vector<24x128xbf16>
    %c0_7 = arith.constant 0 : index
    %c0_8 = arith.constant 0 : index
    %12 = vector.load %arg5[%c0_7, %c0_8] : memref<24x128xbf16, #tpu.memory_space<vmem>>, vector<24x128xbf16>
    tpu.vector_store %arg5[%c0_7, %c0_8], %11 {strides = array<i32>} : memref<24x128xbf16, #tpu.memory_space<vmem>>, vector<24x128xbf16>,
    return
  }
  func.func @transform_0(%arg0: i32, %arg1: i32) -> (i32, i32) {
    %c0_i32 = arith.constant 0 : i32
    %c0_i32_0 = arith.constant 0 : i32
    return %arg0, %c0_i32 : i32, i32
  }
  func.func @transform_1(%arg0: i32, %arg1: i32) -> (i32, i32) {
    %c0_i32 = arith.constant 0 : i32
    %c0_i32_0 = arith.constant 0 : i32
    return %c0_i32, %arg1 : i32, i32
  }
  func.func @transform_2(%arg0: i32, %arg1: i32) -> (i32, i32) {
    %c0_i32 = arith.constant 0 : i32
    %c0_i32_0 = arith.constant 0 : i32
    return %c0_i32, %arg1 : i32, i32
  }
  func.func @transform_3(%arg0: i32, %arg1: i32) -> (i32, i32) {
    %c0_i32 = arith.constant 0 : i32
    return %arg0, %arg1 : i32, i32
  }
}

module attributes {stable_mosaic.version = 11 : i64} {
  func.func @_matmul_kernel(%arg0: i32, %arg1: i32, %arg2: memref<8x2048xbf16, #tpu.memory_space<vmem>>, %arg3: memref<2048x128xbf16, #tpu.memory_space<vmem>>, %arg4: memref<1x128xf32, #tpu.memory_space<vmem>>, %arg5: memref<8x128xf32, #tpu.memory_space<vmem>>) attributes {dimension_semantics = [#tpu.dimension_semantics<parallel>, #tpu.dimension_semantics<parallel>], iteration_bounds = array<i64: 1, 1>, scalar_prefetch = 0 : i64, scratch_operands = 0 : i64, tpu.core_type = #tpu.core_type<tc>, window_params = [{transform_indices = @transform_0, window_bounds = array<i64: 8, 2048>}, {transform_indices = @transform_1, window_bounds = array<i64: 2048, 128>}, {transform_indices = @transform_2, window_bounds = array<i64: 1, 128>}, {transform_indices = @transform_3, window_bounds = array<i64: 8, 128>}]} {
    %c0 = arith.constant 0 : index
    %c0_0 = arith.constant 0 : index
    %0 = vector.load %arg2[%c0, %c0_0] : memref<8x2048xbf16, #tpu.memory_space<vmem>>, vector<8x2048xbf16>
    %c0_1 = arith.constant 0 : index
    %c0_2 = arith.constant 0 : index
    %1 = vector.load %arg3[%c0_1, %c0_2] : memref<2048x128xbf16, #tpu.memory_space<vmem>>, vector<2048x128xbf16>
    %cst = arith.constant dense<0.000000e+00> : vector<8x128xf32>
    %2 = tpu.matmul %0, %1, %cst {dimension_numbers = #tpu.dot_dimension_numbers<[1], [0], [0], [1], [0, 0, 1, 1], [], []>} : vector<8x2048xbf16>, vector<2048x128xbf16>, vector<8x128xf32> -> vector<8x128xf32>
    %c0_3 = arith.constant 0 : index
    %c0_4 = arith.constant 0 : index
    %3 = vector.load %arg4[%c0_3, %c0_4] : memref<1x128xf32, #tpu.memory_space<vmem>>, vector<1x128xf32>
    %4 = vector.broadcast %3 : vector<1x128xf32> to vector<8x128xf32>
    %5 = arith.addf %2, %4 : vector<8x128xf32>
    %c0_5 = arith.constant 0 : index
    %c0_6 = arith.constant 0 : index
    %6 = vector.load %arg5[%c0_5, %c0_6] : memref<8x128xf32, #tpu.memory_space<vmem>>, vector<8x128xf32>
    tpu.vector_store %arg5[%c0_5, %c0_6], %5 {strides = array<i32>} : memref<8x128xf32, #tpu.memory_space<vmem>>, vector<8x128xf32>,
    return
  }
  func.func @transform_0(%arg0: i32, %arg1: i32) -> (i32, i32) {
    %c0_i32 = arith.constant 0 : i32
    %c0_i32_0 = arith.constant 0 : i32
    return %arg0, %c0_i32 : i32, i32
  }
  func.func @transform_1(%arg0: i32, %arg1: i32) -> (i32, i32) {
    %c0_i32 = arith.constant 0 : i32
    %c0_i32_0 = arith.constant 0 : i32
    return %c0_i32, %arg1 : i32, i32
  }
  func.func @transform_2(%arg0: i32, %arg1: i32) -> (i32, i32) {
    %c0_i32 = arith.constant 0 : i32
    %c0_i32_0 = arith.constant 0 : i32
    return %c0_i32, %arg1 : i32, i32
  }
  func.func @transform_3(%arg0: i32, %arg1: i32) -> (i32, i32) {
    %c0_i32 = arith.constant 0 : i32
    return %arg0, %arg1 : i32, i32
  }
}

module attributes {stable_mosaic.version = 11 : i64} {
  func.func @_disc_stats_kernel(%arg0: i32, %arg1: memref<8x128xf32, #tpu.memory_space<vmem>>, %arg2: memref<8x128xf32, #tpu.memory_space<vmem>>, %arg3: memref<8x128xf32, #tpu.memory_space<vmem>>, %arg4: memref<8x128xf32, #tpu.memory_space<vmem>>, %arg5: memref<8x128xf32, #tpu.memory_space<vmem>>) attributes {dimension_semantics = [#tpu.dimension_semantics<arbitrary>], iteration_bounds = array<i64: 1>, scalar_prefetch = 0 : i64, scratch_operands = 0 : i64, tpu.core_type = #tpu.core_type<tc>, window_params = [{transform_indices = @transform_0, window_bounds = array<i64: 8, 128>}, {pipeline_mode = #tpu.pipeline_mode<synchronous>, transform_indices = @transform_1, window_bounds = array<i64: 8, 128>}, {pipeline_mode = #tpu.pipeline_mode<synchronous>, transform_indices = @transform_2, window_bounds = array<i64: 8, 128>}, {pipeline_mode = #tpu.pipeline_mode<synchronous>, transform_indices = @transform_3, window_bounds = array<i64: 8, 128>}, {pipeline_mode = #tpu.pipeline_mode<synchronous>, transform_indices = @transform_4, window_bounds = array<i64: 8, 128>}]} {
    %c0_i32 = arith.constant 0 : i32
    %0 = arith.cmpi eq, %arg0, %c0_i32 : i32
    %1 = arith.extui %0 : i1 to i32
    %c0_i32_0 = arith.constant 0 : i32
    %2 = arith.cmpi ne, %1, %c0_i32_0 : i32
    scf.if %2 {
      %cst_29 = arith.constant 0.000000e+00 : f32
      %53 = vector.broadcast %cst_29 : f32 to vector<8x128xf32>
      %c0_30 = arith.constant 0 : index
      %c0_31 = arith.constant 0 : index
      %54 = vector.load %arg2[%c0_30, %c0_31] : memref<8x128xf32, #tpu.memory_space<vmem>>, vector<8x128xf32>
      tpu.vector_store %arg2[%c0_30, %c0_31], %53 {strides = array<i32>} : memref<8x128xf32, #tpu.memory_space<vmem>>, vector<8x128xf32>,
      %cst_32 = arith.constant 0.000000e+00 : f32
      %55 = vector.broadcast %cst_32 : f32 to vector<8x128xf32>
      %c0_33 = arith.constant 0 : index
      %c0_34 = arith.constant 0 : index
      %56 = vector.load %arg3[%c0_33, %c0_34] : memref<8x128xf32, #tpu.memory_space<vmem>>, vector<8x128xf32>
      tpu.vector_store %arg3[%c0_33, %c0_34], %55 {strides = array<i32>} : memref<8x128xf32, #tpu.memory_space<vmem>>, vector<8x128xf32>,
      %cst_35 = arith.constant 0.000000e+00 : f32
      %57 = vector.broadcast %cst_35 : f32 to vector<8x128xf32>
      %c0_36 = arith.constant 0 : index
      %c0_37 = arith.constant 0 : index
      %58 = vector.load %arg4[%c0_36, %c0_37] : memref<8x128xf32, #tpu.memory_space<vmem>>, vector<8x128xf32>
      tpu.vector_store %arg4[%c0_36, %c0_37], %57 {strides = array<i32>} : memref<8x128xf32, #tpu.memory_space<vmem>>, vector<8x128xf32>,
      %cst_38 = arith.constant 0.000000e+00 : f32
      %59 = vector.broadcast %cst_38 : f32 to vector<8x128xf32>
      %c0_39 = arith.constant 0 : index
      %c0_40 = arith.constant 0 : index
      %60 = vector.load %arg5[%c0_39, %c0_40] : memref<8x128xf32, #tpu.memory_space<vmem>>, vector<8x128xf32>
      tpu.vector_store %arg5[%c0_39, %c0_40], %59 {strides = array<i32>} : memref<8x128xf32, #tpu.memory_space<vmem>>, vector<8x128xf32>,
    } else {
    }
    %c0 = arith.constant 0 : index
    %c0_1 = arith.constant 0 : index
    %3 = vector.load %arg1[%c0, %c0_1] : memref<8x128xf32, #tpu.memory_space<vmem>>, vector<8x128xf32>
    %4 = tpu.iota {dimensions = array<i32: 0>} : vector<8x128xi32>
    %c8_i32 = arith.constant 8 : i32
    %5 = arith.muli %arg0, %c8_i32 : i32
    %6 = vector.broadcast %5 : i32 to vector<8x128xi32>
    %7 = arith.addi %4, %6 : vector<8x128xi32>
    %8 = tpu.iota {dimensions = array<i32: 1>} : vector<8x128xi32>
    %c1_i32 = arith.constant 1 : i32
    %9 = vector.broadcast %c1_i32 : i32 to vector<8x128xi32>
    %10 = arith.cmpi slt, %8, %9 : vector<8x128xi32>
    %c0_i32_2 = arith.constant 0 : i32
    %11 = vector.broadcast %c0_i32_2 : i32 to vector<8x128xi32>
    %12 = arith.cmpi slt, %7, %11 : vector<8x128xi32>
    %13 = arith.andi %12, %10 : vector<8x128xi1>
    %c0_i32_3 = arith.constant 0 : i32
    %14 = vector.broadcast %c0_i32_3 : i32 to vector<8x128xi32>
    %15 = arith.cmpi sge, %7, %14 : vector<8x128xi32>
    %c8_i32_4 = arith.constant 8 : i32
    %16 = vector.broadcast %c8_i32_4 : i32 to vector<8x128xi32>
    %17 = arith.cmpi slt, %7, %16 : vector<8x128xi32>
    %18 = arith.andi %15, %17 : vector<8x128xi1>
    %19 = arith.andi %18, %10 : vector<8x128xi1>
    %cst = arith.constant 0.000000e+00 : f32
    %20 = vector.broadcast %cst : f32 to vector<8x128xf32>
    %cst_5 = arith.constant 1.000000e+00 : f32
    %21 = vector.broadcast %cst_5 : f32 to vector<8x128xf32>
    %22 = arith.subf %21, %3 : vector<8x128xf32>
    %cst_6 = arith.constant 0.000000e+00 : f32
    %23 = vector.broadcast %cst_6 : f32 to vector<8x128xf32>
    %24 = arith.maximumf %22, %23 : vector<8x128xf32>
    %25 = arith.select %13, %24, %20 : vector<8x128xi1>, vector<8x128xf32>
    %cst_7 = arith.constant 1.000000e+00 : f32
    %26 = vector.broadcast %cst_7 : f32 to vector<8x128xf32>
    %27 = arith.addf %26, %3 : vector<8x128xf32>
    %cst_8 = arith.constant 0.000000e+00 : f32
    %28 = vector.broadcast %cst_8 : f32 to vector<8x128xf32>
    %29 = arith.maximumf %27, %28 : vector<8x128xf32>
    %30 = arith.select %19, %29, %20 : vector<8x128xi1>, vector<8x128xf32>
    %31 = arith.select %13, %3, %20 : vector<8x128xi1>, vector<8x128xf32>
    %32 = arith.select %19, %3, %20 : vector<8x128xi1>, vector<8x128xf32>
    %c0_9 = arith.constant 0 : index
    %c0_10 = arith.constant 0 : index
    %33 = vector.load %arg2[%c0_9, %c0_10] : memref<8x128xf32, #tpu.memory_space<vmem>>, vector<8x128xf32>
    %34 = vector.shape_cast %25 : vector<8x128xf32> to vector<1x8x128xf32>
    %cst_11 = arith.constant dense<0.000000e+00> : vector<8x128xf32>
    %35 = vector.multi_reduction <add>, %34, %cst_11 [0] : vector<1x8x128xf32> to vector<8x128xf32>
    %36 = arith.addf %33, %35 : vector<8x128xf32>
    %c0_12 = arith.constant 0 : index
    %c0_13 = arith.constant 0 : index
    %37 = vector.load %arg2[%c0_12, %c0_13] : memref<8x128xf32, #tpu.memory_space<vmem>>, vector<8x128xf32>
    tpu.vector_store %arg2[%c0_12, %c0_13], %36 {strides = array<i32>} : memref<8x128xf32, #tpu.memory_space<vmem>>, vector<8x128xf32>,
    %c0_14 = arith.constant 0 : index
    %c0_15 = arith.constant 0 : index
    %38 = vector.load %arg3[%c0_14, %c0_15] : memref<8x128xf32, #tpu.memory_space<vmem>>, vector<8x128xf32>
    %39 = vector.shape_cast %30 : vector<8x128xf32> to vector<1x8x128xf32>
    %cst_16 = arith.constant dense<0.000000e+00> : vector<8x128xf32>
    %40 = vector.multi_reduction <add>, %39, %cst_16 [0] : vector<1x8x128xf32> to vector<8x128xf32>
    %41 = arith.addf %38, %40 : vector<8x128xf32>
    %c0_17 = arith.constant 0 : index
    %c0_18 = arith.constant 0 : index
    %42 = vector.load %arg3[%c0_17, %c0_18] : memref<8x128xf32, #tpu.memory_space<vmem>>, vector<8x128xf32>
    tpu.vector_store %arg3[%c0_17, %c0_18], %41 {strides = array<i32>} : memref<8x128xf32, #tpu.memory_space<vmem>>, vector<8x128xf32>,
    %c0_19 = arith.constant 0 : index
    %c0_20 = arith.constant 0 : index
    %43 = vector.load %arg4[%c0_19, %c0_20] : memref<8x128xf32, #tpu.memory_space<vmem>>, vector<8x128xf32>
    %44 = vector.shape_cast %31 : vector<8x128xf32> to vector<1x8x128xf32>
    %cst_21 = arith.constant dense<0.000000e+00> : vector<8x128xf32>
    %45 = vector.multi_reduction <add>, %44, %cst_21 [0] : vector<1x8x128xf32> to vector<8x128xf32>
    %46 = arith.addf %43, %45 : vector<8x128xf32>
    %c0_22 = arith.constant 0 : index
    %c0_23 = arith.constant 0 : index
    %47 = vector.load %arg4[%c0_22, %c0_23] : memref<8x128xf32, #tpu.memory_space<vmem>>, vector<8x128xf32>
    tpu.vector_store %arg4[%c0_22, %c0_23], %46 {strides = array<i32>} : memref<8x128xf32, #tpu.memory_space<vmem>>, vector<8x128xf32>,
    %c0_24 = arith.constant 0 : index
    %c0_25 = arith.constant 0 : index
    %48 = vector.load %arg5[%c0_24, %c0_25] : memref<8x128xf32, #tpu.memory_space<vmem>>, vector<8x128xf32>
    %49 = vector.shape_cast %32 : vector<8x128xf32> to vector<1x8x128xf32>
    %cst_26 = arith.constant dense<0.000000e+00> : vector<8x128xf32>
    %50 = vector.multi_reduction <add>, %49, %cst_26 [0] : vector<1x8x128xf32> to vector<8x128xf32>
    %51 = arith.addf %48, %50 : vector<8x128xf32>
    %c0_27 = arith.constant 0 : index
    %c0_28 = arith.constant 0 : index
    %52 = vector.load %arg5[%c0_27, %c0_28] : memref<8x128xf32, #tpu.memory_space<vmem>>, vector<8x128xf32>
    tpu.vector_store %arg5[%c0_27, %c0_28], %51 {strides = array<i32>} : memref<8x128xf32, #tpu.memory_space<vmem>>, vector<8x128xf32>,
    return
  }
  func.func @transform_0(%arg0: i32) -> (i32, i32) {
    %c0_i32 = arith.constant 0 : i32
    %c0_i32_0 = arith.constant 0 : i32
    return %arg0, %c0_i32 : i32, i32
  }
  func.func @transform_1(%arg0: i32) -> (i32, i32) {
    %c0_i32 = arith.constant 0 : i32
    %c0_i32_0 = arith.constant 0 : i32
    %c0_i32_1 = arith.constant 0 : i32
    return %c0_i32, %c0_i32_0 : i32, i32
  }
  func.func @transform_2(%arg0: i32) -> (i32, i32) {
    %c0_i32 = arith.constant 0 : i32
    %c0_i32_0 = arith.constant 0 : i32
    %c0_i32_1 = arith.constant 0 : i32
    return %c0_i32, %c0_i32_0 : i32, i32
  }
  func.func @transform_3(%arg0: i32) -> (i32, i32) {
    %c0_i32 = arith.constant 0 : i32
    %c0_i32_0 = arith.constant 0 : i32
    %c0_i32_1 = arith.constant 0 : i32
    return %c0_i32, %c0_i32_0 : i32, i32
  }
  func.func @transform_4(%arg0: i32) -> (i32, i32) {
    %c0_i32 = arith.constant 0 : i32
    %c0_i32_0 = arith.constant 0 : i32
    %c0_i32_1 = arith.constant 0 : i32
    return %c0_i32, %c0_i32_0 : i32, i32
  }
}

</mosaic_0001>

<bundles_post_ra>
// kernel: _generator_impl.11
= control target key start
LH: loop header
LB: loop body
LE: loop exit
PB: predicated region body
PF: predicated region fallthrough
CT: control target
= control target key end

     0   :  { %s159_s0 = inlined_call_operand.vmem [shape: f32[8,512], index: 0, kind: input, shape index: {}]   ;;  %s160_s1 = inlined_call_operand.vmem [shape: f32[8,512], index: 1, kind: input, shape index: {}]   ;;  %s161_s2 = inlined_call_operand.vmem [shape: f32[8,512], index: 2, kind: output, shape index: {}]  }
   0x1   :  { %v59_v0 = vld [vmem:[%s159_s0] sm:$0xff]  ;;  %v60_v2 = vld [vmem:[%s159_s0 + $0x8] sm:$0xff]  ;;  %v61_v5 = vld [vmem:[%s159_s0 + $0x10] sm:$0xff] }
   0x2   :  { %v63_v1 = vld [vmem:[%s160_s1] sm:$0xff]  ;;  %v64_v4 = vld [vmem:[%s160_s1 + $0x8] sm:$0xff]  ;;  %v65_v6 = vld [vmem:[%s160_s1 + $0x10] sm:$0xff] }
   0x3   :  { %v67_v3 = vsub.f32 %v59_v0, %v63_v1  ;;  %v68_v7 = vsub.f32 %v60_v2, %v64_v4  ;;  %v69_v8 = vsub.f32 %v61_v5, %v65_v6  ;;  %v62_v9 = vld [vmem:[%s159_s0 + $0x18] sm:$0xff] }
   0x4   :  { %v66_v10 = vld [vmem:[%s160_s1 + $0x18] sm:$0xff] }
   0x5   :  { %v71_v11 = vmul.f32 %v67_v3, %v67_v3  ;;  %v70_v12 = vsub.f32 %v62_v9, %v66_v10  ;;  %v72_v13 = vmul.f32 %v68_v7, %v68_v7  ;;  %v73_v14 = vmul.f32 %v69_v8, %v69_v8 }
   0x7   :  { %v74_v15 = vmul.f32 %v70_v12, %v70_v12  ;;  %87 = vst [vmem:[%s161_s2] sm:$0xff] %v71_v11 }
   0x8   :  { %88 = vst [vmem:[%s161_s2 + $0x8] sm:$0xff] %v72_v13 }
   0x9   :  { %89 = vst [vmem:[%s161_s2 + $0x10] sm:$0xff] %v73_v14 }
   0xa   :  { %90 = vst [vmem:[%s161_s2 + $0x18] sm:$0xff] %v74_v15 }

// kernel: _generator_impl.12
= control target key start
LH: loop header
LB: loop body
LE: loop exit
PB: predicated region body
PF: predicated region fallthrough
CT: control target
= control target key end

     0   :  { %s991_s12 = smov 0   ;;  %s993_s13 = smov 0   ;;  %s1129_s0 = inlined_call_operand.vmem [shape: bf16[4096,27], index: 0, kind: input, shape index: {}]   ;;  %s1130_s1 = inlined_call_operand.vmem [shape: bf16[27,128], index: 1, kind: input, shape index: {}]   ;;  %s1131_s2 = inlined_call_operand.vmem [shape: f32[1,128], index: 2, kind: input, shape index: {}]   ;;  %s1132_s3 = inlined_call_operand.vmem [shape: bf16[4096,128], index: 3, kind: output, shape index: {}]  }
   0x1   :  { %s995_s14 = smov 0  }
   0x2 LB: > { %s25_s15 = sadd.s32 1, %s964_s13  ;;  %p706_p0 = scmp.ge.s32.totalorder %s968_s14, 1  ;;  %s968_s14 = sphi %s995_s14, %s13_s14   ;;  %s964_s13 = sphi %s993_s13, %s1134_s13   ;;  %s960_s12 = sphi %s991_s12, %s1133_s12  }
   0x3   : > { %p27_p1 = scmp.ge.s32.totalorder %s25_s15, 16  ;;  %p169_p2 = scmp.lt.s32.totalorder %s968_s14, 17 }
   0x5   : > { %s1136_s15 = smov (%p27_p1, %s25_s15), 0  ;;  %p170_p3 = pnand %p706_p0, %p169_p2 }
   0x6   : > { %s707_s20 = sshll.u32 (!%p170_p3), %s960_s12, 5 }
   0x7   : > { %173 = sbr.rel (%p170_p3) target bundleno = 222 (0xde), region = 32  ;;  %p204_p4 = scmp.lt.s32.totalorder (!%p170_p3), %s707_s20, 511 }
   0xc   : > { %v781_v0 = vld [vmem:[%s1130_s1 + $0x8] sm:$0xf]  ;;  %v818_v1 = vld [vmem:[%s1130_s1 + $0x8] sm:$0x30]  ;;  %vm406_vm0 = vcmask 1044480   ;;  %vm407_vm1 = vcmask 1045504  }
   0xd   : > { %v782_v2 = vor.u32 %v818_v1, %v781_v0  ;;  %v970_v3 = vmov 65535   ;;  %s1138_s20 = smov (!%p204_p4, %s707_s20), 511  ;;  %v817_v7 = vld [vmem:[%s1130_s1] sm:$0xff]  ;;  %vm357_vm2 = vcmask 220160  }
   0xe   : > { %v408_v4 = vsel %vm406_vm0, 4294967295, %v970_v3  ;;  %s708_s23 = sshll.u32 %s1138_s20, 2  ;;  %v1063_v26 = vld [vmem:[%s1131_s2] ss:$0 sm:$0xff] }
   0xf   : > { %v409_v5 = vsel %vm407_vm1, %v408_v4, 0  ;;  %s1026_s26 = scalar_lea.vmem %s1129_s0, %s708_s23  ;;  %s1074_s4 = scalar_lea.vmem %s1132_s3, %s708_s23 }
  0x10   : > { %v411_v6 = vand.u32 %v782_v2, %v409_v5  ;;  %v801_v8 = vld [vmem:[%s1026_s26] sm:$0xff]  ;;  %v802_v12 = vld [vmem:[%s1026_s26 + $0x8] sm:$0xff]  ;;  %v803_v16 = vld [vmem:[%s1026_s26 + $0x10] sm:$0xff] }
  0x11   : > { %v805_v9 = vld [vmem:[%s1026_s26 + $0x20] sm:$0xff]  ;;  %v806_v13 = vld [vmem:[%s1026_s26 + $0x28] sm:$0xff]  ;;  %v807_v17 = vld [vmem:[%s1026_s26 + $0x30] sm:$0xff] }
  0x12   : > { %419 = vmatpush.bf16.msra.mxu0 %v411_v6  ;;  %914 = vmatpush.bf16.msra.mxu1 %v411_v6  ;;  %v809_v10 = vld [vmem:[%s1026_s26 + $0x40] sm:$0xff]  ;;  %v810_v14 = vld [vmem:[%s1026_s26 + $0x48] sm:$0xff]  ;;  %v811_v18 = vld [vmem:[%s1026_s26 + $0x50] sm:$0xff] }
  0x13   : > { %915 = vmatpush.bf16.msra.mxu2 %v411_v6  ;;  %916 = vmatpush.bf16.msra.mxu3 %v411_v6  ;;  %v813_v11 = vld [vmem:[%s1026_s26 + $0x60] sm:$0xff]  ;;  %v814_v15 = vld [vmem:[%s1026_s26 + $0x68] sm:$0xff]  ;;  %v815_v19 = vld [vmem:[%s1026_s26 + $0x70] sm:$0xff] }
  0x14   : > { %v804_v20 = vld [vmem:[%s1026_s26 + $0x18] sm:$0xff] }
  0x15   : > { %v808_v21 = vld [vmem:[%s1026_s26 + $0x38] sm:$0xff] }
  0x16   : > { %420 = vmatpush.bf16.msra.mxu0 %v817_v7  ;;  %917 = vmatpush.bf16.msra.mxu1 %v817_v7  ;;  %v812_v22 = vld [vmem:[%s1026_s26 + $0x58] sm:$0xff] }
  0x17   : > { %918 = vmatpush.bf16.msra.mxu2 %v817_v7  ;;  %919 = vmatpush.bf16.msra.mxu3 %v817_v7  ;;  %v816_v23 = vld [vmem:[%s1026_s26 + $0x78] sm:$0xff] }
  0x19   : > { %783 = vmatmul.msk.bf16.vlgmr.msra.gmra.mxu0 %vm357_vm2, %v801_v8  ;;  %787 = vmatmul.msk.bf16.vlgmr.msra.gmra.mxu1 %vm357_vm2, %v805_v9 }
  0x1a   : > { %791 = vmatmul.msk.bf16.vlgmr.msra.gmra.mxu2 %vm357_vm2, %v809_v10  ;;  %795 = vmatmul.msk.bf16.vlgmr.msra.gmra.mxu3 %vm357_vm2, %v813_v11 }
  0x29   : > { %784 = vmatmul.msk.bf16.gmra.mxu0 %vm357_vm2, %v802_v12  ;;  %788 = vmatmul.msk.bf16.gmra.mxu1 %vm357_vm2, %v806_v13 }
  0x2a   : > { %792 = vmatmul.msk.bf16.gmra.mxu2 %vm357_vm2, %v810_v14  ;;  %796 = vmatmul.msk.bf16.gmra.mxu3 %vm357_vm2, %v814_v15 }
  0x39   : > { %785 = vmatmul.msk.bf16.gmra.mxu0 %vm357_vm2, %v803_v16  ;;  %789 = vmatmul.msk.bf16.gmra.mxu1 %vm357_vm2, %v807_v17 }
  0x3a   : > { %793 = vmatmul.msk.bf16.gmra.mxu2 %vm357_vm2, %v811_v18  ;;  %797 = vmatmul.msk.bf16.gmra.mxu3 %vm357_vm2, %v815_v19 }
  0x49   : > { %786 = vmatmul.msk.bf16.gmra.mxu0 %vm357_vm2, %v804_v20  ;;  %790 = vmatmul.msk.bf16.gmra.mxu1 %vm357_vm2, %v808_v21 }
  0x4a   : > { %794 = vmatmul.msk.bf16.gmra.mxu2 %vm357_vm2, %v812_v22  ;;  %798 = vmatmul.msk.bf16.gmra.mxu3 %vm357_vm2, %v816_v23 }
  0x96   : > { %v422_v24 = vpop.f32.mrf.mxu0  ;;  %v442_v25 = vpop.f32.mrf.mxu1 }
  0x97   : > { %v423_v27 = vadd.f32 %v1063_v26, %v422_v24  ;;  %v443_v28 = vadd.f32 %v1063_v26, %v442_v25 }
  0x99   : > { %v502_v35 = vmax.f32 %v423_v27, 0.0  ;;  %v510_v36 = vmax.f32 %v443_v28, 0.0 }
  0x9d   : > { %v462_v29 = vpop.f32.mrf.mxu2  ;;  %v482_v30 = vpop.f32.mrf.mxu3 }
  0x9e   : > { %v424_v31 = vpop.f32.mrf.mxu0  ;;  %v444_v32 = vpop.f32.mrf.mxu1  ;;  %v463_v41 = vadd.f32 %v1063_v26, %v462_v29  ;;  %v483_v42 = vadd.f32 %v1063_v26, %v482_v30 }
  0x9f   : > { %v425_v33 = vadd.f32 %v1063_v26, %v424_v31  ;;  %v445_v34 = vadd.f32 %v1063_v26, %v444_v32 }
  0xa0   : > { %v518_v49 = vmax.f32 %v463_v41, 0.0  ;;  %v526_v50 = vmax.f32 %v483_v42, 0.0 }
  0xa1   : > { %v503_v37 = vmax.f32 %v425_v33, 0.0  ;;  %v511_v38 = vmax.f32 %v445_v34, 0.0 }
  0xa3   : > { %v822_v39 = vpack.c.bf16 %v503_v37, %v502_v35  ;;  %v842_v40 = vpack.c.bf16 %v511_v38, %v510_v36 }
  0xa5   : > { %823 = vst [vmem:[%s1074_s4] sm:$0xff] %v822_v39   ;;  %v464_v43 = vpop.f32.mrf.mxu2  ;;  %v484_v44 = vpop.f32.mrf.mxu3 }
  0xa6   : > { %902 = vst [vmem:[%s1074_s4 + $0x20] sm:$0xff] %v842_v40   ;;  %v465_v45 = vadd.f32 %v1063_v26, %v464_v43  ;;  %v485_v46 = vadd.f32 %v1063_v26, %v484_v44  ;;  %v427_v47 = vpop.f32.mrf.mxu0  ;;  %v447_v48 = vpop.f32.mrf.mxu1 }
  0xa7   : > { %v428_v55 = vadd.f32 %v1063_v26, %v427_v47  ;;  %v448_v56 = vadd.f32 %v1063_v26, %v447_v48 }
  0xa8   : > { %v519_v51 = vmax.f32 %v465_v45, 0.0  ;;  %v527_v52 = vmax.f32 %v485_v46, 0.0 }
  0xa9   : > { %v504_v63 = vmax.f32 %v428_v55, 0.0  ;;  %v512_v0 = vmax.f32 %v448_v56, 0.0 }
  0xaa   : > { %v862_v53 = vpack.c.bf16 %v519_v51, %v518_v49  ;;  %v882_v54 = vpack.c.bf16 %v527_v52, %v526_v50 }
  0xac   : > { %906 = vst [vmem:[%s1074_s4 + $0x40] sm:$0xff] %v862_v53  }
  0xad   : > { %910 = vst [vmem:[%s1074_s4 + $0x60] sm:$0xff] %v882_v54   ;;  %v467_v57 = vpop.f32.mrf.mxu2  ;;  %v487_v58 = vpop.f32.mrf.mxu3 }
  0xae   : > { %v429_v59 = vpop.f32.mrf.mxu0  ;;  %v449_v60 = vpop.f32.mrf.mxu1  ;;  %v468_v5 = vadd.f32 %v1063_v26, %v467_v57  ;;  %v488_v6 = vadd.f32 %v1063_v26, %v487_v58 }
  0xaf   : > { %v430_v61 = vadd.f32 %v1063_v26, %v429_v59  ;;  %v450_v62 = vadd.f32 %v1063_v26, %v449_v60 }
  0xb0   : > { %v520_v13 = vmax.f32 %v468_v5, 0.0  ;;  %v528_v14 = vmax.f32 %v488_v6, 0.0 }
  0xb1   : > { %v505_v1 = vmax.f32 %v430_v61, 0.0  ;;  %v513_v2 = vmax.f32 %v450_v62, 0.0 }
  0xb3   : > { %v827_v3 = vpack.c.bf16 %v505_v1, %v504_v63  ;;  %v847_v4 = vpack.c.bf16 %v513_v2, %v512_v0 }
  0xb5   : > { %899 = vst [vmem:[%s1074_s4 + $0x8] sm:$0xff] %v827_v3   ;;  %v469_v7 = vpop.f32.mrf.mxu2  ;;  %v489_v8 = vpop.f32.mrf.mxu3 }
  0xb6   : > { %903 = vst [vmem:[%s1074_s4 + $0x28] sm:$0xff] %v847_v4   ;;  %v470_v9 = vadd.f32 %v1063_v26, %v469_v7  ;;  %v490_v10 = vadd.f32 %v1063_v26, %v489_v8  ;;  %v432_v11 = vpop.f32.mrf.mxu0  ;;  %v452_v12 = vpop.f32.mrf.mxu1 }
  0xb7   : > { %v433_v19 = vadd.f32 %v1063_v26, %v432_v11  ;;  %v453_v20 = vadd.f32 %v1063_v26, %v452_v12 }
  0xb8   : > { %v521_v15 = vmax.f32 %v470_v9, 0.0  ;;  %v529_v16 = vmax.f32 %v490_v10, 0.0 }
  0xb9   : > { %v506_v28 = vmax.f32 %v433_v19, 0.0  ;;  %v514_v29 = vmax.f32 %v453_v20, 0.0 }
  0xba   : > { %v867_v17 = vpack.c.bf16 %v521_v15, %v520_v13  ;;  %v887_v18 = vpack.c.bf16 %v529_v16, %v528_v14 }
  0xbc   : > { %907 = vst [vmem:[%s1074_s4 + $0x48] sm:$0xff] %v867_v17  }
  0xbd   : > { %911 = vst [vmem:[%s1074_s4 + $0x68] sm:$0xff] %v887_v18   ;;  %v472_v21 = vpop.f32.mrf.mxu2  ;;  %v492_v22 = vpop.f32.mrf.mxu3 }
  0xbe   : > { %v434_v23 = vpop.f32.mrf.mxu0  ;;  %v454_v24 = vpop.f32.mrf.mxu1  ;;  %v473_v34 = vadd.f32 %v1063_v26, %v472_v21  ;;  %v493_v35 = vadd.f32 %v1063_v26, %v492_v22 }
  0xbf   : > { %v435_v25 = vadd.f32 %v1063_v26, %v434_v23  ;;  %v455_v27 = vadd.f32 %v1063_v26, %v454_v24 }
  0xc0   : > { %v522_v42 = vmax.f32 %v473_v34, 0.0  ;;  %v530_v43 = vmax.f32 %v493_v35, 0.0 }
  0xc1   : > { %v507_v30 = vmax.f32 %v435_v25, 0.0  ;;  %v515_v31 = vmax.f32 %v455_v27, 0.0 }
  0xc3   : > { %v832_v32 = vpack.c.bf16 %v507_v30, %v506_v28  ;;  %v852_v33 = vpack.c.bf16 %v515_v31, %v514_v29 }
  0xc5   : > { %900 = vst [vmem:[%s1074_s4 + $0x10] sm:$0xff] %v832_v32   ;;  %v474_v36 = vpop.f32.mrf.mxu2  ;;  %v494_v37 = vpop.f32.mrf.mxu3 }
  0xc6   : > { %904 = vst [vmem:[%s1074_s4 + $0x30] sm:$0xff] %v852_v33   ;;  %v475_v38 = vadd.f32 %v1063_v26, %v474_v36  ;;  %v495_v39 = vadd.f32 %v1063_v26, %v494_v37  ;;  %v437_v40 = vpop.f32.mrf.mxu0  ;;  %v457_v41 = vpop.f32.mrf.mxu1 }
  0xc7   : > { %v438_v48 = vadd.f32 %v1063_v26, %v437_v40  ;;  %v458_v49 = vadd.f32 %v1063_v26, %v457_v41 }
  0xc8   : > { %v523_v44 = vmax.f32 %v475_v38, 0.0  ;;  %v531_v45 = vmax.f32 %v495_v39, 0.0 }
  0xc9   : > { %v508_v56 = vmax.f32 %v438_v48, 0.0  ;;  %v516_v57 = vmax.f32 %v458_v49, 0.0 }
  0xca   : > { %v872_v46 = vpack.c.bf16 %v523_v44, %v522_v42  ;;  %v892_v47 = vpack.c.bf16 %v531_v45, %v530_v43 }
  0xcc   : > { %908 = vst [vmem:[%s1074_s4 + $0x50] sm:$0xff] %v872_v46  }
  0xcd   : > { %912 = vst [vmem:[%s1074_s4 + $0x70] sm:$0xff] %v892_v47   ;;  %v477_v50 = vpop.f32.mrf.mxu2  ;;  %v497_v51 = vpop.f32.mrf.mxu3 }
  0xce   : > { %v439_v52 = vpop.f32.mrf.mxu0  ;;  %v459_v53 = vpop.f32.mrf.mxu1  ;;  %v478_v62 = vadd.f32 %v1063_v26, %v477_v50  ;;  %v498_v63 = vadd.f32 %v1063_v26, %v497_v51 }
  0xcf   : > { %v440_v54 = vadd.f32 %v1063_v26, %v439_v52  ;;  %v460_v55 = vadd.f32 %v1063_v26, %v459_v53 }
  0xd0   : > { %v524_v4 = vmax.f32 %v478_v62, 0.0  ;;  %v532_v5 = vmax.f32 %v498_v63, 0.0 }
  0xd1   : > { %v509_v58 = vmax.f32 %v440_v54, 0.0  ;;  %v517_v59 = vmax.f32 %v460_v55, 0.0 }
  0xd3   : > { %v837_v60 = vpack.c.bf16 %v509_v58, %v508_v56  ;;  %v857_v61 = vpack.c.bf16 %v517_v59, %v516_v57 }
  0xd5   : > { %901 = vst [vmem:[%s1074_s4 + $0x18] sm:$0xff] %v837_v60   ;;  %v479_v0 = vpop.f32.mrf.mxu2  ;;  %v499_v1 = vpop.f32.mrf.mxu3 }
  0xd6   : > { %905 = vst [vmem:[%s1074_s4 + $0x38] sm:$0xff] %v857_v61   ;;  %v480_v2 = vadd.f32 %v1063_v26, %v479_v0  ;;  %v500_v3 = vadd.f32 %v1063_v26, %v499_v1 }
  0xd8   : > { %v525_v6 = vmax.f32 %v480_v2, 0.0  ;;  %v533_v7 = vmax.f32 %v500_v3, 0.0 }
  0xda   : > { %v877_v8 = vpack.c.bf16 %v525_v6, %v524_v4  ;;  %v897_v9 = vpack.c.bf16 %v533_v7, %v532_v5 }
  0xdc   : > { %909 = vst [vmem:[%s1074_s4 + $0x58] sm:$0xff] %v877_v8  }
  0xdd   : > { %913 = vst [vmem:[%s1074_s4 + $0x78] sm:$0xff] %v897_v9  }
  0xde PF: > { %s13_s14 = sadd.s32 1, %s968_s14   ;;  %s1133_s12 = smov %s964_s13 }
  0xdf   : > { %p10_p5 = scmp.ge.s32.totalorder %s13_s14, 18   ;;  %s1134_s13 = smov %s1136_s15 }
  0xe1   :  { %12 = sbr.rel (!%p10_p5) target bundleno = 2 (0x2), region = 68 }

// kernel: _generator_impl.13
= control target key start
LH: loop header
LB: loop body
LE: loop exit
PB: predicated region body
PF: predicated region fallthrough
CT: control target
= control target key end

     0   :  { %s278_s0 = inlined_call_operand.vmem [shape: bf16[64,512], index: 0, kind: input, shape index: {}, may-alias: {0,1}]   ;;  %s279_s1 = inlined_call_operand.vmem [shape: bf16[64,512], index: 1, kind: input, shape index: {}, may-alias: {0,1}]   ;;  %s280_s2 = inlined_call_operand.vmem [shape: f32[8,512], index: 2, kind: output, shape index: {}]  }
   0x1   :  { %v74_v0 = vld [vmem:[%s278_s0] sm:$0xff]  ;;  %v76_v1 = vld [vmem:[%s278_s0 + $0x10] sm:$0xff]  ;;  %v75_v28 = vld [vmem:[%s278_s0 + $0x8] sm:$0xff] }
   0x2   :  { %v78_v2 = vld [vmem:[%s278_s0 + $0x20] sm:$0xff]  ;;  %v80_v3 = vld [vmem:[%s278_s0 + $0x30] sm:$0xff]  ;;  %v82_v4 = vunpack.c.l.bf16 %v74_v0  ;;  %v86_v5 = vunpack.c.l.bf16 %v76_v1  ;;  %v83_v9 = vunpack.c.h.bf16 %v74_v0  ;;  %v87_v15 = vunpack.c.h.bf16 %v76_v1  ;;  %v77_v33 = vld [vmem:[%s278_s0 + $0x18] sm:$0xff] }
   0x3   :  { %v90_v6 = vunpack.c.l.bf16 %v78_v2  ;;  %v194_v7 = vld [vmem:[%s279_s1 + $0x40] sm:$0xff]  ;;  %v196_v8 = vld [vmem:[%s279_s1 + $0x50] sm:$0xff]  ;;  %v94_v10 = vunpack.c.l.bf16 %v80_v3  ;;  %v91_v18 = vunpack.c.h.bf16 %v78_v2  ;;  %v95_v19 = vunpack.c.h.bf16 %v80_v3  ;;  %v79_v34 = vld [vmem:[%s278_s0 + $0x28] sm:$0xff] }
   0x4   :  { %v198_v11 = vld [vmem:[%s279_s1 + $0x60] sm:$0xff]  ;;  %v200_v12 = vld [vmem:[%s279_s1 + $0x70] sm:$0xff]  ;;  %v106_v13 = vunpack.c.l.bf16 %v194_v7  ;;  %v110_v14 = vunpack.c.l.bf16 %v196_v8  ;;  %v107_v22 = vunpack.c.h.bf16 %v194_v7  ;;  %v111_v23 = vunpack.c.h.bf16 %v196_v8  ;;  %v81_v39 = vld [vmem:[%s278_s0 + $0x38] sm:$0xff] }
   0x5   :  { %v114_v16 = vunpack.c.l.bf16 %v198_v11  ;;  %v118_v17 = vunpack.c.l.bf16 %v200_v12  ;;  %v115_v26 = vunpack.c.h.bf16 %v198_v11  ;;  %v119_v27 = vunpack.c.h.bf16 %v200_v12  ;;  %v195_v40 = vld [vmem:[%s279_s1 + $0x48] sm:$0xff]  ;;  %v197_v45 = vld [vmem:[%s279_s1 + $0x58] sm:$0xff] }
   0x6   :  { %v122_v20 = vsub.f32 %v82_v4, %v106_v13  ;;  %v126_v21 = vsub.f32 %v86_v5, %v110_v14  ;;  %v123_v31 = vsub.f32 %v83_v9, %v107_v22  ;;  %v127_v32 = vsub.f32 %v87_v15, %v111_v23  ;;  %v199_v46 = vld [vmem:[%s279_s1 + $0x68] sm:$0xff]  ;;  %v201_v47 = vld [vmem:[%s279_s1 + $0x78] sm:$0xff] }
   0x7   :  { %v130_v24 = vsub.f32 %v90_v6, %v114_v16  ;;  %v134_v25 = vsub.f32 %v94_v10, %v118_v17  ;;  %v131_v37 = vsub.f32 %v91_v18, %v115_v26  ;;  %v135_v38 = vsub.f32 %v95_v19, %v119_v27 }
   0x8   :  { %v138_v29 = vmul.f32 %v122_v20, %v122_v20  ;;  %v142_v30 = vmul.f32 %v126_v21, %v126_v21  ;;  %v139_v42 = vmul.f32 %v123_v31, %v123_v31  ;;  %v143_v43 = vmul.f32 %v127_v32, %v127_v32 }
   0x9   :  { %v146_v35 = vmul.f32 %v130_v24, %v130_v24  ;;  %v150_v36 = vmul.f32 %v134_v25, %v134_v25  ;;  %v84_v44 = vunpack.c.l.bf16 %v75_v28  ;;  %v147_v48 = vmul.f32 %v131_v37, %v131_v37 }
   0xa   :  { %v158_v41 = vadd.f32 %v142_v30, %v138_v29  ;;  %v151_v49 = vmul.f32 %v135_v38, %v135_v38  ;;  %v88_v50 = vunpack.c.l.bf16 %v77_v33  ;;  %v92_v51 = vunpack.c.l.bf16 %v79_v34 }
   0xb   :  { %v161_v53 = vadd.f32 %v143_v43, %v139_v42  ;;  %v96_v54 = vunpack.c.l.bf16 %v81_v39  ;;  %v108_v55 = vunpack.c.l.bf16 %v195_v40  ;;  %v112_v56 = vunpack.c.l.bf16 %v197_v45 }
   0xc   :  { %v159_v52 = vadd.f32 %v158_v41, %v146_v35  ;;  %v116_v57 = vunpack.c.l.bf16 %v199_v46  ;;  %v120_v58 = vunpack.c.l.bf16 %v201_v47  ;;  %v85_v59 = vunpack.c.h.bf16 %v75_v28 }
   0xd   :  { %v162_v61 = vadd.f32 %v161_v53, %v147_v48  ;;  %v124_v62 = vsub.f32 %v84_v44, %v108_v55  ;;  %v89_v63 = vunpack.c.h.bf16 %v77_v33  ;;  %v128_v0 = vsub.f32 %v88_v50, %v112_v56 }
   0xe   :  { %v160_v60 = vadd.f32 %v159_v52, %v150_v36  ;;  %v132_v1 = vsub.f32 %v92_v51, %v116_v57  ;;  %v136_v2 = vsub.f32 %v96_v54, %v120_v58  ;;  %v93_v3 = vunpack.c.h.bf16 %v79_v34 }
   0xf   :  { %v163_v4 = vadd.f32 %v162_v61, %v151_v49  ;;  %v140_v5 = vmul.f32 %v124_v62, %v124_v62  ;;  %v97_v6 = vunpack.c.h.bf16 %v81_v39  ;;  %v144_v7 = vmul.f32 %v128_v0, %v128_v0 }
  0x10   :  { %v148_v8 = vmul.f32 %v132_v1, %v132_v1  ;;  %v109_v9 = vunpack.c.h.bf16 %v195_v40  ;;  %174 = vst [vmem:[%s280_s2] sm:$0xff] %v160_v60  ;;  %v113_v10 = vunpack.c.h.bf16 %v197_v45  ;;  %v117_v11 = vunpack.c.h.bf16 %v199_v46 }
  0x11   :  { %v121_v12 = vunpack.c.h.bf16 %v201_v47  ;;  %v152_v13 = vmul.f32 %v136_v2, %v136_v2  ;;  %v164_v14 = vadd.f32 %v144_v7, %v140_v5  ;;  %175 = vst [vmem:[%s280_s2 + $0x8] sm:$0xff] %v163_v4 }
  0x12   :  { %v125_v15 = vsub.f32 %v85_v59, %v109_v9  ;;  %v129_v16 = vsub.f32 %v89_v63, %v113_v10  ;;  %v133_v17 = vsub.f32 %v93_v3, %v117_v11 }
  0x13   :  { %v137_v18 = vsub.f32 %v97_v6, %v121_v12  ;;  %v165_v19 = vadd.f32 %v164_v14, %v148_v8 }
  0x14   :  { %v141_v20 = vmul.f32 %v125_v15, %v125_v15  ;;  %v145_v21 = vmul.f32 %v129_v16, %v129_v16  ;;  %v149_v22 = vmul.f32 %v133_v17, %v133_v17 }
  0x15   :  { %v166_v23 = vadd.f32 %v165_v19, %v152_v13  ;;  %v153_v24 = vmul.f32 %v137_v18, %v137_v18 }
  0x16   :  { %v167_v25 = vadd.f32 %v145_v21, %v141_v20 }
  0x17   :  { %176 = vst [vmem:[%s280_s2 + $0x10] sm:$0xff] %v166_v23 }
  0x18   :  { %v168_v26 = vadd.f32 %v167_v25, %v149_v22 }
  0x1a   :  { %v169_v27 = vadd.f32 %v168_v26, %v153_v24 }
  0x1c   :  { %177 = vst [vmem:[%s280_s2 + $0x18] sm:$0xff] %v169_v27 }

// kernel: _generator_impl.14
= control target key start
LH: loop header
LB: loop body
LE: loop exit
PB: predicated region body
PF: predicated region fallthrough
CT: control target
= control target key end

     0   :  { %s1026_s12 = smov 0   ;;  %s1028_s13 = smov 0   ;;  %s1170_s0 = inlined_call_operand.vmem [shape: bf16[1024,72], index: 0, kind: input, shape index: {}]   ;;  %s1171_s1 = inlined_call_operand.vmem [shape: bf16[72,128], index: 1, kind: input, shape index: {}]   ;;  %s1172_s2 = inlined_call_operand.vmem [shape: f32[1,128], index: 2, kind: input, shape index: {}]   ;;  %s1173_s3 = inlined_call_operand.vmem [shape: bf16[1024,128], index: 3, kind: output, shape index: {}]  }
   0x1   :  { %s1030_s14 = smov 0  }
   0x2 LB: > { %s25_s15 = sadd.s32 1, %s1000_s13  ;;  %p724_p0 = scmp.ge.s32.totalorder %s1004_s14, 1  ;;  %s1004_s14 = sphi %s1030_s14, %s13_s14   ;;  %s1000_s13 = sphi %s1028_s13, %s1175_s13   ;;  %s996_s12 = sphi %s1026_s12, %s1174_s12  }
   0x3   : > { %p27_p1 = scmp.ge.s32.totalorder %s25_s15, 4  ;;  %p169_p2 = scmp.lt.s32.totalorder %s1004_s14, 5 }
   0x5   : > { %s1177_s15 = smov (%p27_p1, %s25_s15), 0  ;;  %p170_p3 = pnand %p724_p0, %p169_p2 }
   0x6   : > { %s725_s18 = sshll.u32 (!%p170_p3), %s996_s12, 5 }
   0x7   : > { %173 = sbr.rel (%p170_p3) target bundleno = 234 (0xea), region = 32  ;;  %p204_p4 = scmp.lt.s32.totalorder (!%p170_p3), %s725_s18, 127 }
   0xc   : > { %v266_v0 = vld [vmem:[%s1171_s1 + $0x20] sm:$0xf]  ;;  %vm427_vm0 = vcmask 1043456   ;;  %v846_v4 = vld [vmem:[%s1171_s1 + $0x18] sm:$0xff]  ;;  %v845_v5 = vld [vmem:[%s1171_s1 + $0x10] sm:$0xff]  ;;  %s1179_s18 = smov (!%p204_p4, %s725_s18), 127 }
   0xd   : > { %v368_v1 = vunpack.c.l.b16 %v266_v0  ;;  %v844_v6 = vld [vmem:[%s1171_s1 + $0x8] sm:$0xff]  ;;  %s726_s25 = sshll.u32 %s1179_s18, 2  ;;  %v843_v7 = vld [vmem:[%s1171_s1] sm:$0xff]  ;;  %vm378_vm1 = vcmask 588800  }
   0xe   : > { %s1067_s30 = scalar_lea.vmem %s1170_s0, %s726_s25  ;;  %v1104_v26 = vld [vmem:[%s1172_s2] ss:$0 sm:$0xff]  ;;  %s1115_s8 = scalar_lea.vmem %s1173_s3, %s726_s25 }
   0xf   : > { %v373_v2 = vpack.c.b16 %v368_v1, %v368_v1  ;;  %v827_v8 = vld [vmem:[%s1067_s30] sm:$0xff]  ;;  %v828_v12 = vld [vmem:[%s1067_s30 + $0x8] sm:$0xff]  ;;  %v829_v16 = vld [vmem:[%s1067_s30 + $0x10] sm:$0xff] }
  0x10   : > { %v831_v9 = vld [vmem:[%s1067_s30 + $0x20] sm:$0xff]  ;;  %v832_v13 = vld [vmem:[%s1067_s30 + $0x28] sm:$0xff]  ;;  %v833_v17 = vld [vmem:[%s1067_s30 + $0x30] sm:$0xff] }
  0x11   : > { %v429_v3 = vsel %vm427_vm0, %v373_v2, 0  ;;  %v835_v10 = vld [vmem:[%s1067_s30 + $0x40] sm:$0xff]  ;;  %v836_v14 = vld [vmem:[%s1067_s30 + $0x48] sm:$0xff]  ;;  %v837_v18 = vld [vmem:[%s1067_s30 + $0x50] sm:$0xff] }
  0x12   : > { %434 = vmatpush.bf16.msra.mxu0 %v429_v3  ;;  %942 = vmatpush.bf16.msra.mxu1 %v429_v3  ;;  %v839_v11 = vld [vmem:[%s1067_s30 + $0x60] sm:$0xff]  ;;  %v840_v15 = vld [vmem:[%s1067_s30 + $0x68] sm:$0xff]  ;;  %v841_v19 = vld [vmem:[%s1067_s30 + $0x70] sm:$0xff] }
  0x13   : > { %943 = vmatpush.bf16.msra.mxu2 %v429_v3  ;;  %944 = vmatpush.bf16.msra.mxu3 %v429_v3  ;;  %v830_v20 = vld [vmem:[%s1067_s30 + $0x18] sm:$0xff] }
  0x14   : > { %v834_v21 = vld [vmem:[%s1067_s30 + $0x38] sm:$0xff] }
  0x15   : > { %v838_v22 = vld [vmem:[%s1067_s30 + $0x58] sm:$0xff] }
  0x16   : > { %435 = vmatpush.bf16.msra.mxu0 %v846_v4  ;;  %945 = vmatpush.bf16.msra.mxu1 %v846_v4  ;;  %v842_v23 = vld [vmem:[%s1067_s30 + $0x78] sm:$0xff] }
  0x17   : > { %946 = vmatpush.bf16.msra.mxu2 %v846_v4  ;;  %947 = vmatpush.bf16.msra.mxu3 %v846_v4 }
  0x1a   : > { %436 = vmatpush.bf16.msra.mxu0 %v845_v5  ;;  %948 = vmatpush.bf16.msra.mxu1 %v845_v5 }
  0x1b   : > { %949 = vmatpush.bf16.msra.mxu2 %v845_v5  ;;  %950 = vmatpush.bf16.msra.mxu3 %v845_v5 }
  0x1e   : > { %437 = vmatpush.bf16.msra.mxu0 %v844_v6  ;;  %951 = vmatpush.bf16.msra.mxu1 %v844_v6 }
  0x1f   : > { %952 = vmatpush.bf16.msra.mxu2 %v844_v6  ;;  %953 = vmatpush.bf16.msra.mxu3 %v844_v6 }
  0x22   : > { %438 = vmatpush.bf16.msra.mxu0 %v843_v7  ;;  %954 = vmatpush.bf16.msra.mxu1 %v843_v7 }
  0x23   : > { %955 = vmatpush.bf16.msra.mxu2 %v843_v7  ;;  %956 = vmatpush.bf16.msra.mxu3 %v843_v7 }
  0x25   : > { %809 = vmatmul.msk.bf16.vlgmr.msra.gmra.mxu0 %vm378_vm1, %v827_v8  ;;  %813 = vmatmul.msk.bf16.vlgmr.msra.gmra.mxu1 %vm378_vm1, %v831_v9 }
  0x26   : > { %817 = vmatmul.msk.bf16.vlgmr.msra.gmra.mxu2 %vm378_vm1, %v835_v10  ;;  %821 = vmatmul.msk.bf16.vlgmr.msra.gmra.mxu3 %vm378_vm1, %v839_v11 }
  0x35   : > { %810 = vmatmul.msk.bf16.gmra.mxu0 %vm378_vm1, %v828_v12  ;;  %814 = vmatmul.msk.bf16.gmra.mxu1 %vm378_vm1, %v832_v13 }
  0x36   : > { %818 = vmatmul.msk.bf16.gmra.mxu2 %vm378_vm1, %v836_v14  ;;  %822 = vmatmul.msk.bf16.gmra.mxu3 %vm378_vm1, %v840_v15 }
  0x45   : > { %811 = vmatmul.msk.bf16.gmra.mxu0 %vm378_vm1, %v829_v16  ;;  %815 = vmatmul.msk.bf16.gmra.mxu1 %vm378_vm1, %v833_v17 }
  0x46   : > { %819 = vmatmul.msk.bf16.gmra.mxu2 %vm378_vm1, %v837_v18  ;;  %823 = vmatmul.msk.bf16.gmra.mxu3 %vm378_vm1, %v841_v19 }
  0x55   : > { %812 = vmatmul.msk.bf16.gmra.mxu0 %vm378_vm1, %v830_v20  ;;  %816 = vmatmul.msk.bf16.gmra.mxu1 %vm378_vm1, %v834_v21 }
  0x56   : > { %820 = vmatmul.msk.bf16.gmra.mxu2 %vm378_vm1, %v838_v22  ;;  %824 = vmatmul.msk.bf16.gmra.mxu3 %vm378_vm1, %v842_v23 }
  0xa2   : > { %v440_v24 = vpop.f32.mrf.mxu0  ;;  %v460_v25 = vpop.f32.mrf.mxu1 }
  0xa3   : > { %v441_v27 = vadd.f32 %v1104_v26, %v440_v24  ;;  %v461_v28 = vadd.f32 %v1104_v26, %v460_v25 }
  0xa5   : > { %v520_v35 = vmax.f32 %v441_v27, 0.0  ;;  %v528_v36 = vmax.f32 %v461_v28, 0.0 }
  0xa9   : > { %v480_v29 = vpop.f32.mrf.mxu2  ;;  %v500_v30 = vpop.f32.mrf.mxu3 }
  0xaa   : > { %v442_v31 = vpop.f32.mrf.mxu0  ;;  %v462_v32 = vpop.f32.mrf.mxu1  ;;  %v481_v41 = vadd.f32 %v1104_v26, %v480_v29  ;;  %v501_v42 = vadd.f32 %v1104_v26, %v500_v30 }
  0xab   : > { %v443_v33 = vadd.f32 %v1104_v26, %v442_v31  ;;  %v463_v34 = vadd.f32 %v1104_v26, %v462_v32 }
  0xac   : > { %v536_v49 = vmax.f32 %v481_v41, 0.0  ;;  %v544_v50 = vmax.f32 %v501_v42, 0.0 }
  0xad   : > { %v521_v37 = vmax.f32 %v443_v33, 0.0  ;;  %v529_v38 = vmax.f32 %v463_v34, 0.0 }
  0xaf   : > { %v850_v39 = vpack.c.bf16 %v521_v37, %v520_v35  ;;  %v870_v40 = vpack.c.bf16 %v529_v38, %v528_v36 }
  0xb1   : > { %851 = vst [vmem:[%s1115_s8] sm:$0xff] %v850_v39   ;;  %v482_v43 = vpop.f32.mrf.mxu2  ;;  %v502_v44 = vpop.f32.mrf.mxu3 }
  0xb2   : > { %930 = vst [vmem:[%s1115_s8 + $0x20] sm:$0xff] %v870_v40   ;;  %v483_v45 = vadd.f32 %v1104_v26, %v482_v43  ;;  %v503_v46 = vadd.f32 %v1104_v26, %v502_v44  ;;  %v445_v47 = vpop.f32.mrf.mxu0  ;;  %v465_v48 = vpop.f32.mrf.mxu1 }
  0xb3   : > { %v446_v55 = vadd.f32 %v1104_v26, %v445_v47  ;;  %v466_v56 = vadd.f32 %v1104_v26, %v465_v48 }
  0xb4   : > { %v537_v51 = vmax.f32 %v483_v45, 0.0  ;;  %v545_v52 = vmax.f32 %v503_v46, 0.0 }
  0xb5   : > { %v522_v63 = vmax.f32 %v446_v55, 0.0  ;;  %v530_v0 = vmax.f32 %v466_v56, 0.0 }
  0xb6   : > { %v890_v53 = vpack.c.bf16 %v537_v51, %v536_v49  ;;  %v910_v54 = vpack.c.bf16 %v545_v52, %v544_v50 }
  0xb8   : > { %934 = vst [vmem:[%s1115_s8 + $0x40] sm:$0xff] %v890_v53  }
  0xb9   : > { %938 = vst [vmem:[%s1115_s8 + $0x60] sm:$0xff] %v910_v54   ;;  %v485_v57 = vpop.f32.mrf.mxu2  ;;  %v505_v58 = vpop.f32.mrf.mxu3 }
  0xba   : > { %v447_v59 = vpop.f32.mrf.mxu0  ;;  %v467_v60 = vpop.f32.mrf.mxu1  ;;  %v486_v5 = vadd.f32 %v1104_v26, %v485_v57  ;;  %v506_v6 = vadd.f32 %v1104_v26, %v505_v58 }
  0xbb   : > { %v448_v61 = vadd.f32 %v1104_v26, %v447_v59  ;;  %v468_v62 = vadd.f32 %v1104_v26, %v467_v60 }
  0xbc   : > { %v538_v13 = vmax.f32 %v486_v5, 0.0  ;;  %v546_v14 = vmax.f32 %v506_v6, 0.0 }
  0xbd   : > { %v523_v1 = vmax.f32 %v448_v61, 0.0  ;;  %v531_v2 = vmax.f32 %v468_v62, 0.0 }
  0xbf   : > { %v855_v3 = vpack.c.bf16 %v523_v1, %v522_v63  ;;  %v875_v4 = vpack.c.bf16 %v531_v2, %v530_v0 }
  0xc1   : > { %927 = vst [vmem:[%s1115_s8 + $0x8] sm:$0xff] %v855_v3   ;;  %v487_v7 = vpop.f32.mrf.mxu2  ;;  %v507_v8 = vpop.f32.mrf.mxu3 }
  0xc2   : > { %931 = vst [vmem:[%s1115_s8 + $0x28] sm:$0xff] %v875_v4   ;;  %v488_v9 = vadd.f32 %v1104_v26, %v487_v7  ;;  %v508_v10 = vadd.f32 %v1104_v26, %v507_v8  ;;  %v450_v11 = vpop.f32.mrf.mxu0  ;;  %v470_v12 = vpop.f32.mrf.mxu1 }
  0xc3   : > { %v451_v19 = vadd.f32 %v1104_v26, %v450_v11  ;;  %v471_v20 = vadd.f32 %v1104_v26, %v470_v12 }
  0xc4   : > { %v539_v15 = vmax.f32 %v488_v9, 0.0  ;;  %v547_v16 = vmax.f32 %v508_v10, 0.0 }
  0xc5   : > { %v524_v28 = vmax.f32 %v451_v19, 0.0  ;;  %v532_v29 = vmax.f32 %v471_v20, 0.0 }
  0xc6   : > { %v895_v17 = vpack.c.bf16 %v539_v15, %v538_v13  ;;  %v915_v18 = vpack.c.bf16 %v547_v16, %v546_v14 }
  0xc8   : > { %935 = vst [vmem:[%s1115_s8 + $0x48] sm:$0xff] %v895_v17  }
  0xc9   : > { %939 = vst [vmem:[%s1115_s8 + $0x68] sm:$0xff] %v915_v18   ;;  %v490_v21 = vpop.f32.mrf.mxu2  ;;  %v510_v22 = vpop.f32.mrf.mxu3 }
  0xca   : > { %v452_v23 = vpop.f32.mrf.mxu0  ;;  %v472_v24 = vpop.f32.mrf.mxu1  ;;  %v491_v34 = vadd.f32 %v1104_v26, %v490_v21  ;;  %v511_v35 = vadd.f32 %v1104_v26, %v510_v22 }
  0xcb   : > { %v453_v25 = vadd.f32 %v1104_v26, %v452_v23  ;;  %v473_v27 = vadd.f32 %v1104_v26, %v472_v24 }
  0xcc   : > { %v540_v42 = vmax.f32 %v491_v34, 0.0  ;;  %v548_v43 = vmax.f32 %v511_v35, 0.0 }
  0xcd   : > { %v525_v30 = vmax.f32 %v453_v25, 0.0  ;;  %v533_v31 = vmax.f32 %v473_v27, 0.0 }
  0xcf   : > { %v860_v32 = vpack.c.bf16 %v525_v30, %v524_v28  ;;  %v880_v33 = vpack.c.bf16 %v533_v31, %v532_v29 }
  0xd1   : > { %928 = vst [vmem:[%s1115_s8 + $0x10] sm:$0xff] %v860_v32   ;;  %v492_v36 = vpop.f32.mrf.mxu2  ;;  %v512_v37 = vpop.f32.mrf.mxu3 }
  0xd2   : > { %932 = vst [vmem:[%s1115_s8 + $0x30] sm:$0xff] %v880_v33   ;;  %v493_v38 = vadd.f32 %v1104_v26, %v492_v36  ;;  %v513_v39 = vadd.f32 %v1104_v26, %v512_v37  ;;  %v455_v40 = vpop.f32.mrf.mxu0  ;;  %v475_v41 = vpop.f32.mrf.mxu1 }
  0xd3   : > { %v456_v48 = vadd.f32 %v1104_v26, %v455_v40  ;;  %v476_v49 = vadd.f32 %v1104_v26, %v475_v41 }
  0xd4   : > { %v541_v44 = vmax.f32 %v493_v38, 0.0  ;;  %v549_v45 = vmax.f32 %v513_v39, 0.0 }
  0xd5   : > { %v526_v56 = vmax.f32 %v456_v48, 0.0  ;;  %v534_v57 = vmax.f32 %v476_v49, 0.0 }
  0xd6   : > { %v900_v46 = vpack.c.bf16 %v541_v44, %v540_v42  ;;  %v920_v47 = vpack.c.bf16 %v549_v45, %v548_v43 }
  0xd8   : > { %936 = vst [vmem:[%s1115_s8 + $0x50] sm:$0xff] %v900_v46  }
  0xd9   : > { %940 = vst [vmem:[%s1115_s8 + $0x70] sm:$0xff] %v920_v47   ;;  %v495_v50 = vpop.f32.mrf.mxu2  ;;  %v515_v51 = vpop.f32.mrf.mxu3 }
  0xda   : > { %v457_v52 = vpop.f32.mrf.mxu0  ;;  %v477_v53 = vpop.f32.mrf.mxu1  ;;  %v496_v62 = vadd.f32 %v1104_v26, %v495_v50  ;;  %v516_v63 = vadd.f32 %v1104_v26, %v515_v51 }
  0xdb   : > { %v458_v54 = vadd.f32 %v1104_v26, %v457_v52  ;;  %v478_v55 = vadd.f32 %v1104_v26, %v477_v53 }
  0xdc   : > { %v542_v4 = vmax.f32 %v496_v62, 0.0  ;;  %v550_v5 = vmax.f32 %v516_v63, 0.0 }
  0xdd   : > { %v527_v58 = vmax.f32 %v458_v54, 0.0  ;;  %v535_v59 = vmax.f32 %v478_v55, 0.0 }
  0xdf   : > { %v865_v60 = vpack.c.bf16 %v527_v58, %v526_v56  ;;  %v885_v61 = vpack.c.bf16 %v535_v59, %v534_v57 }
  0xe1   : > { %929 = vst [vmem:[%s1115_s8 + $0x18] sm:$0xff] %v865_v60   ;;  %v497_v0 = vpop.f32.mrf.mxu2  ;;  %v517_v1 = vpop.f32.mrf.mxu3 }
  0xe2   : > { %933 = vst [vmem:[%s1115_s8 + $0x38] sm:$0xff] %v885_v61   ;;  %v498_v2 = vadd.f32 %v1104_v26, %v497_v0  ;;  %v518_v3 = vadd.f32 %v1104_v26, %v517_v1 }
  0xe4   : > { %v543_v6 = vmax.f32 %v498_v2, 0.0  ;;  %v551_v7 = vmax.f32 %v518_v3, 0.0 }
  0xe6   : > { %v905_v8 = vpack.c.bf16 %v543_v6, %v542_v4  ;;  %v925_v9 = vpack.c.bf16 %v551_v7, %v550_v5 }
  0xe8   : > { %937 = vst [vmem:[%s1115_s8 + $0x58] sm:$0xff] %v905_v8  }
  0xe9   : > { %941 = vst [vmem:[%s1115_s8 + $0x78] sm:$0xff] %v925_v9  }
  0xea PF: > { %s13_s14 = sadd.s32 1, %s1004_s14   ;;  %s1174_s12 = smov %s1000_s13 }
  0xeb   : > { %p10_p5 = scmp.ge.s32.totalorder %s13_s14, 6   ;;  %s1175_s13 = smov %s1177_s15 }
  0xed   :  { %12 = sbr.rel (!%p10_p5) target bundleno = 2 (0x2), region = 68 }

// kernel: _generator_impl.15
= control target key start
LH: loop header
LB: loop body
LE: loop exit
PB: predicated region body
PF: predicated region fallthrough
CT: control target
= control target key end

     0   :  { %s202_s0 = inlined_call_operand.vmem [shape: bf16[32,512], index: 0, kind: input, shape index: {}, may-alias: {0,1}]   ;;  %s203_s1 = inlined_call_operand.vmem [shape: bf16[32,512], index: 1, kind: input, shape index: {}, may-alias: {0,1}]   ;;  %s204_s2 = inlined_call_operand.vmem [shape: f32[8,512], index: 2, kind: output, shape index: {}]  }
   0x1   :  { %v74_v0 = vld [vmem:[%s202_s0] sm:$0xff]  ;;  %v76_v1 = vld [vmem:[%s202_s0 + $0x10] sm:$0xff]  ;;  %v75_v8 = vld [vmem:[%s202_s0 + $0x8] sm:$0xff] }
   0x2   :  { %v146_v2 = vld [vmem:[%s203_s1 + $0x20] sm:$0xff]  ;;  %v78_v3 = vunpack.c.l.bf16 %v74_v0  ;;  %v82_v4 = vunpack.c.l.bf16 %v76_v1  ;;  %v148_v5 = vld [vmem:[%s203_s1 + $0x30] sm:$0xff]  ;;  %v79_v7 = vunpack.c.h.bf16 %v74_v0  ;;  %v77_v9 = vld [vmem:[%s202_s0 + $0x18] sm:$0xff]  ;;  %v83_v11 = vunpack.c.h.bf16 %v76_v1 }
   0x3   :  { %v90_v6 = vunpack.c.l.bf16 %v146_v2  ;;  %v94_v10 = vunpack.c.l.bf16 %v148_v5  ;;  %v91_v12 = vunpack.c.h.bf16 %v146_v2  ;;  %v95_v13 = vunpack.c.h.bf16 %v148_v5  ;;  %v147_v14 = vld [vmem:[%s203_s1 + $0x28] sm:$0xff]  ;;  %v149_v15 = vld [vmem:[%s203_s1 + $0x38] sm:$0xff] }
   0x4   :  { %v80_v17 = vunpack.c.l.bf16 %v75_v8  ;;  %v84_v18 = vunpack.c.l.bf16 %v77_v9  ;;  %v92_v19 = vunpack.c.l.bf16 %v147_v14  ;;  %v96_v23 = vunpack.c.l.bf16 %v149_v15 }
   0x5   :  { %v98_v16 = vsub.f32 %v78_v3, %v90_v6  ;;  %v102_v20 = vsub.f32 %v82_v4, %v94_v10  ;;  %v99_v21 = vsub.f32 %v79_v7, %v91_v12  ;;  %v103_v22 = vsub.f32 %v83_v11, %v95_v13 }
   0x6   :  { %v100_v25 = vsub.f32 %v80_v17, %v92_v19  ;;  %v81_v26 = vunpack.c.h.bf16 %v75_v8  ;;  %v85_v27 = vunpack.c.h.bf16 %v77_v9  ;;  %v104_v31 = vsub.f32 %v84_v18, %v96_v23 }
   0x7   :  { %v106_v24 = vmul.f32 %v98_v16, %v98_v16  ;;  %v110_v28 = vmul.f32 %v102_v20, %v102_v20  ;;  %v107_v29 = vmul.f32 %v99_v21, %v99_v21  ;;  %v111_v30 = vmul.f32 %v103_v22, %v103_v22 }
   0x8   :  { %v108_v32 = vmul.f32 %v100_v25, %v100_v25  ;;  %v93_v33 = vunpack.c.h.bf16 %v147_v14  ;;  %v97_v34 = vunpack.c.h.bf16 %v149_v15  ;;  %v112_v37 = vmul.f32 %v104_v31, %v104_v31 }
   0x9   :  { %v118_v35 = vadd.f32 %v110_v28, %v106_v24  ;;  %v119_v36 = vadd.f32 %v111_v30, %v107_v29 }
   0xa   :  { %v101_v38 = vsub.f32 %v81_v26, %v93_v33  ;;  %v105_v39 = vsub.f32 %v85_v27, %v97_v34  ;;  %v120_v40 = vadd.f32 %v112_v37, %v108_v32 }
   0xb   :  { %126 = vst [vmem:[%s204_s2] sm:$0xff] %v118_v35 }
   0xc   :  { %v109_v41 = vmul.f32 %v101_v38, %v101_v38  ;;  %v113_v42 = vmul.f32 %v105_v39, %v105_v39  ;;  %127 = vst [vmem:[%s204_s2 + $0x8] sm:$0xff] %v119_v36 }
   0xd   :  { %128 = vst [vmem:[%s204_s2 + $0x10] sm:$0xff] %v120_v40 }
   0xe   :  { %v121_v43 = vadd.f32 %v113_v42, %v109_v41 }
  0x10   :  { %129 = vst [vmem:[%s204_s2 + $0x18] sm:$0xff] %v121_v43 }

// kernel: _generator_impl.16
= control target key start
LH: loop header
LB: loop body
LE: loop exit
PB: predicated region body
PF: predicated region fallthrough
CT: control target
= control target key end

     0   :  { %s1063_s12 = smov 0   ;;  %s1065_s13 = smov 0   ;;  %s1201_s0 = inlined_call_operand.vmem [shape: bf16[512,48], index: 0, kind: input, shape index: {}]   ;;  %s1202_s1 = inlined_call_operand.vmem [shape: bf16[48,128], index: 1, kind: input, shape index: {}]   ;;  %s1203_s2 = inlined_call_operand.vmem [shape: f32[1,128], index: 2, kind: input, shape index: {}]   ;;  %s1204_s3 = inlined_call_operand.vmem [shape: bf16[512,128], index: 3, kind: output, shape index: {}]  }
   0x1   :  { %s1067_s14 = smov 0  }
   0x2 LB: > { %s25_s15 = sadd.s32 1, %s1037_s13  ;;  %p772_p0 = scmp.ge.s32.totalorder %s1041_s14, 1  ;;  %s1041_s14 = sphi %s1067_s14, %s13_s14   ;;  %s1037_s13 = sphi %s1065_s13, %s1206_s13   ;;  %s1033_s12 = sphi %s1063_s12, %s1205_s12  }
   0x3   : > { %p27_p1 = scmp.ge.s32.totalorder %s25_s15, 2  ;;  %p169_p2 = scmp.lt.s32.totalorder %s1041_s14, 3 }
   0x5   : > { %s1208_s15 = smov (%p27_p1, %s25_s15), 0  ;;  %p170_p3 = pnand %p772_p0, %p169_p2 }
   0x6   : > { %s773_s18 = sshll.u32 (!%p170_p3), %s1033_s12, 5 }
   0x7   : > { %173 = sbr.rel (%p170_p3) target bundleno = 222 (0xde), region = 32  ;;  %p204_p4 = scmp.lt.s32.totalorder (!%p170_p3), %s773_s18, 63 }
   0xc   : > { %v889_v0 = vld [vmem:[%s1202_s1 + $0x10] sm:$0xff]  ;;  %v888_v1 = vld [vmem:[%s1202_s1 + $0x8] sm:$0xff]  ;;  %s1210_s18 = smov (!%p204_p4, %s773_s18), 63  ;;  %v887_v2 = vld [vmem:[%s1202_s1] sm:$0xff]  ;;  %vm366_vm0 = vcmask 392192  }
   0xd   : > { %420 = vmatpush.bf16.msra.mxu0 %v889_v0  ;;  %985 = vmatpush.bf16.msra.mxu1 %v889_v0  ;;  %s774_s21 = sshll.u32 %s1210_s18, 2  ;;  %v1135_v21 = vld [vmem:[%s1203_s2] ss:$0 sm:$0xff] }
   0xe   : > { %986 = vmatpush.bf16.msra.mxu2 %v889_v0  ;;  %987 = vmatpush.bf16.msra.mxu3 %v889_v0  ;;  %s1098_s26 = scalar_lea.vmem %s1201_s0, %s774_s21  ;;  %s1148_s4 = scalar_lea.vmem %s1204_s3, %s774_s21 }
   0xf   : > { %v871_v3 = vld [vmem:[%s1098_s26] sm:$0xff]  ;;  %v872_v7 = vld [vmem:[%s1098_s26 + $0x8] sm:$0xff]  ;;  %v873_v11 = vld [vmem:[%s1098_s26 + $0x10] sm:$0xff] }
  0x10   : > { %v875_v4 = vld [vmem:[%s1098_s26 + $0x20] sm:$0xff]  ;;  %v876_v8 = vld [vmem:[%s1098_s26 + $0x28] sm:$0xff]  ;;  %v877_v12 = vld [vmem:[%s1098_s26 + $0x30] sm:$0xff] }
  0x11   : > { %421 = vmatpush.bf16.msra.mxu0 %v888_v1  ;;  %988 = vmatpush.bf16.msra.mxu1 %v888_v1  ;;  %v879_v5 = vld [vmem:[%s1098_s26 + $0x40] sm:$0xff]  ;;  %v880_v9 = vld [vmem:[%s1098_s26 + $0x48] sm:$0xff]  ;;  %v881_v13 = vld [vmem:[%s1098_s26 + $0x50] sm:$0xff] }
  0x12   : > { %989 = vmatpush.bf16.msra.mxu2 %v888_v1  ;;  %990 = vmatpush.bf16.msra.mxu3 %v888_v1  ;;  %v883_v6 = vld [vmem:[%s1098_s26 + $0x60] sm:$0xff]  ;;  %v884_v10 = vld [vmem:[%s1098_s26 + $0x68] sm:$0xff]  ;;  %v885_v14 = vld [vmem:[%s1098_s26 + $0x70] sm:$0xff] }
  0x13   : > { %v874_v15 = vld [vmem:[%s1098_s26 + $0x18] sm:$0xff] }
  0x14   : > { %v878_v16 = vld [vmem:[%s1098_s26 + $0x38] sm:$0xff] }
  0x15   : > { %422 = vmatpush.bf16.msra.mxu0 %v887_v2  ;;  %991 = vmatpush.bf16.msra.mxu1 %v887_v2  ;;  %v882_v17 = vld [vmem:[%s1098_s26 + $0x58] sm:$0xff] }
  0x16   : > { %992 = vmatpush.bf16.msra.mxu2 %v887_v2  ;;  %993 = vmatpush.bf16.msra.mxu3 %v887_v2  ;;  %v886_v18 = vld [vmem:[%s1098_s26 + $0x78] sm:$0xff] }
  0x18   : > { %853 = vmatmul.msk.bf16.vlgmr.msra.gmra.mxu0 %vm366_vm0, %v871_v3  ;;  %857 = vmatmul.msk.bf16.vlgmr.msra.gmra.mxu1 %vm366_vm0, %v875_v4 }
  0x19   : > { %861 = vmatmul.msk.bf16.vlgmr.msra.gmra.mxu2 %vm366_vm0, %v879_v5  ;;  %865 = vmatmul.msk.bf16.vlgmr.msra.gmra.mxu3 %vm366_vm0, %v883_v6 }
  0x28   : > { %854 = vmatmul.msk.bf16.gmra.mxu0 %vm366_vm0, %v872_v7  ;;  %858 = vmatmul.msk.bf16.gmra.mxu1 %vm366_vm0, %v876_v8 }
  0x29   : > { %862 = vmatmul.msk.bf16.gmra.mxu2 %vm366_vm0, %v880_v9  ;;  %866 = vmatmul.msk.bf16.gmra.mxu3 %vm366_vm0, %v884_v10 }
  0x38   : > { %855 = vmatmul.msk.bf16.gmra.mxu0 %vm366_vm0, %v873_v11  ;;  %859 = vmatmul.msk.bf16.gmra.mxu1 %vm366_vm0, %v877_v12 }
  0x39   : > { %863 = vmatmul.msk.bf16.gmra.mxu2 %vm366_vm0, %v881_v13  ;;  %867 = vmatmul.msk.bf16.gmra.mxu3 %vm366_vm0, %v885_v14 }
  0x48   : > { %856 = vmatmul.msk.bf16.gmra.mxu0 %vm366_vm0, %v874_v15  ;;  %860 = vmatmul.msk.bf16.gmra.mxu1 %vm366_vm0, %v878_v16 }
  0x49   : > { %864 = vmatmul.msk.bf16.gmra.mxu2 %vm366_vm0, %v882_v17  ;;  %868 = vmatmul.msk.bf16.gmra.mxu3 %vm366_vm0, %v886_v18 }
  0x95   : > { %v424_v19 = vpop.f32.mrf.mxu0  ;;  %v444_v20 = vpop.f32.mrf.mxu1 }
  0x96   : > { %v425_v22 = vadd.f32 %v1135_v21, %v424_v19  ;;  %v445_v23 = vadd.f32 %v1135_v21, %v444_v20 }
  0x98   : > { %v536_v28 = vmul.f32 0.2, %v425_v22  ;;  %v544_v29 = vmul.f32 0.2, %v445_v23  ;;  %vm504_vm1 = vcmp.ge.f32.partialorder %v425_v22, 0.0  ;;  %vm512_vm2 = vcmp.ge.f32.partialorder %v445_v23, 0.0 }
  0x9a   : > { %v568_v36 = vsel %vm504_vm1, %v425_v22, %v536_v28  ;;  %v576_v37 = vsel %vm512_vm2, %v445_v23, %v544_v29 }
  0x9c   : > { %v464_v24 = vpop.f32.mrf.mxu2  ;;  %v484_v25 = vpop.f32.mrf.mxu3 }
  0x9d   : > { %v426_v26 = vpop.f32.mrf.mxu0  ;;  %v446_v27 = vpop.f32.mrf.mxu1  ;;  %v465_v34 = vadd.f32 %v1135_v21, %v464_v24  ;;  %v485_v35 = vadd.f32 %v1135_v21, %v484_v25 }
  0x9e   : > { %v427_v30 = vadd.f32 %v1135_v21, %v426_v26  ;;  %v447_v31 = vadd.f32 %v1135_v21, %v446_v27 }
  0x9f   : > { %v552_v44 = vmul.f32 0.2, %v465_v34  ;;  %v560_v45 = vmul.f32 0.2, %v485_v35  ;;  %vm520_vm5 = vcmp.ge.f32.partialorder %v465_v34, 0.0  ;;  %vm528_vm6 = vcmp.ge.f32.partialorder %v485_v35, 0.0 }
  0xa0   : > { %vm505_vm3 = vcmp.ge.f32.partialorder %v427_v30, 0.0  ;;  %v537_v32 = vmul.f32 0.2, %v427_v30  ;;  %vm513_vm4 = vcmp.ge.f32.partialorder %v447_v31, 0.0  ;;  %v545_v33 = vmul.f32 0.2, %v447_v31 }
  0xa1   : > { %v584_v52 = vsel %vm520_vm5, %v465_v34, %v552_v44  ;;  %v592_v53 = vsel %vm528_vm6, %v485_v35, %v560_v45 }
  0xa2   : > { %v569_v38 = vsel %vm505_vm3, %v427_v30, %v537_v32  ;;  %v577_v39 = vsel %vm513_vm4, %v447_v31, %v545_v33 }
  0xa3   : > { %v893_v40 = vpack.c.bf16 %v569_v38, %v568_v36  ;;  %v913_v41 = vpack.c.bf16 %v577_v39, %v576_v37 }
  0xa4   : > { %v466_v42 = vpop.f32.mrf.mxu2  ;;  %v486_v43 = vpop.f32.mrf.mxu3 }
  0xa5   : > { %894 = vst [vmem:[%s1148_s4] sm:$0xff] %v893_v40   ;;  %v467_v46 = vadd.f32 %v1135_v21, %v466_v42  ;;  %v487_v47 = vadd.f32 %v1135_v21, %v486_v43  ;;  %v429_v48 = vpop.f32.mrf.mxu0  ;;  %v449_v49 = vpop.f32.mrf.mxu1 }
  0xa6   : > { %973 = vst [vmem:[%s1148_s4 + $0x20] sm:$0xff] %v913_v41   ;;  %v430_v58 = vadd.f32 %v1135_v21, %v429_v48  ;;  %v450_v59 = vadd.f32 %v1135_v21, %v449_v49 }
  0xa7   : > { %vm521_vm7 = vcmp.ge.f32.partialorder %v467_v46, 0.0  ;;  %v553_v50 = vmul.f32 0.2, %v467_v46  ;;  %vm529_vm8 = vcmp.ge.f32.partialorder %v487_v47, 0.0  ;;  %v561_v51 = vmul.f32 0.2, %v487_v47 }
  0xa8   : > { %v538_v0 = vmul.f32 0.2, %v430_v58  ;;  %v546_v1 = vmul.f32 0.2, %v450_v59  ;;  %vm506_vm9 = vcmp.ge.f32.partialorder %v430_v58, 0.0  ;;  %vm514_vm10 = vcmp.ge.f32.partialorder %v450_v59, 0.0 }
  0xa9   : > { %v585_v54 = vsel %vm521_vm7, %v467_v46, %v553_v50  ;;  %v593_v55 = vsel %vm529_vm8, %v487_v47, %v561_v51 }
  0xaa   : > { %v933_v56 = vpack.c.bf16 %v585_v54, %v584_v52  ;;  %v953_v57 = vpack.c.bf16 %v593_v55, %v592_v53  ;;  %v570_v8 = vsel %vm506_vm9, %v430_v58, %v538_v0  ;;  %v578_v9 = vsel %vm514_vm10, %v450_v59, %v546_v1 }
  0xac   : > { %977 = vst [vmem:[%s1148_s4 + $0x40] sm:$0xff] %v933_v56   ;;  %v469_v60 = vpop.f32.mrf.mxu2  ;;  %v489_v61 = vpop.f32.mrf.mxu3 }
  0xad   : > { %981 = vst [vmem:[%s1148_s4 + $0x60] sm:$0xff] %v953_v57   ;;  %v431_v62 = vpop.f32.mrf.mxu0  ;;  %v451_v63 = vpop.f32.mrf.mxu1  ;;  %v470_v6 = vadd.f32 %v1135_v21, %v469_v60  ;;  %v490_v7 = vadd.f32 %v1135_v21, %v489_v61 }
  0xae   : > { %v432_v2 = vadd.f32 %v1135_v21, %v431_v62  ;;  %v452_v3 = vadd.f32 %v1135_v21, %v451_v63 }
  0xaf   : > { %v554_v16 = vmul.f32 0.2, %v470_v6  ;;  %v562_v17 = vmul.f32 0.2, %v490_v7  ;;  %vm522_vm13 = vcmp.ge.f32.partialorder %v470_v6, 0.0  ;;  %vm530_vm14 = vcmp.ge.f32.partialorder %v490_v7, 0.0 }
  0xb0   : > { %vm507_vm11 = vcmp.ge.f32.partialorder %v432_v2, 0.0  ;;  %v539_v4 = vmul.f32 0.2, %v432_v2  ;;  %vm515_vm12 = vcmp.ge.f32.partialorder %v452_v3, 0.0  ;;  %v547_v5 = vmul.f32 0.2, %v452_v3 }
  0xb1   : > { %v586_v25 = vsel %vm522_vm13, %v470_v6, %v554_v16  ;;  %v594_v26 = vsel %vm530_vm14, %v490_v7, %v562_v17 }
  0xb2   : > { %v571_v10 = vsel %vm507_vm11, %v432_v2, %v539_v4  ;;  %v579_v11 = vsel %vm515_vm12, %v452_v3, %v547_v5 }
  0xb3   : > { %v898_v12 = vpack.c.bf16 %v571_v10, %v570_v8  ;;  %v918_v13 = vpack.c.bf16 %v579_v11, %v578_v9 }
  0xb4   : > { %v471_v14 = vpop.f32.mrf.mxu2  ;;  %v491_v15 = vpop.f32.mrf.mxu3 }
  0xb5   : > { %970 = vst [vmem:[%s1148_s4 + $0x8] sm:$0xff] %v898_v12   ;;  %v472_v18 = vadd.f32 %v1135_v21, %v471_v14  ;;  %v492_v19 = vadd.f32 %v1135_v21, %v491_v15  ;;  %v434_v20 = vpop.f32.mrf.mxu0  ;;  %v454_v22 = vpop.f32.mrf.mxu1 }
  0xb6   : > { %974 = vst [vmem:[%s1148_s4 + $0x28] sm:$0xff] %v918_v13   ;;  %v435_v31 = vadd.f32 %v1135_v21, %v434_v20  ;;  %v455_v32 = vadd.f32 %v1135_v21, %v454_v22 }
  0xb7   : > { %vm523_vm15 = vcmp.ge.f32.partialorder %v472_v18, 0.0  ;;  %v555_v23 = vmul.f32 0.2, %v472_v18  ;;  %vm531_vm0 = vcmp.ge.f32.partialorder %v492_v19, 0.0  ;;  %v563_v24 = vmul.f32 0.2, %v492_v19 }
  0xb8   : > { %v540_v37 = vmul.f32 0.2, %v435_v31  ;;  %v548_v38 = vmul.f32 0.2, %v455_v32  ;;  %vm508_vm1 = vcmp.ge.f32.partialorder %v435_v31, 0.0  ;;  %vm516_vm2 = vcmp.ge.f32.partialorder %v455_v32, 0.0 }
  0xb9   : > { %v587_v27 = vsel %vm523_vm15, %v472_v18, %v555_v23  ;;  %v595_v28 = vsel %vm531_vm0, %v492_v19, %v563_v24 }
  0xba   : > { %v938_v29 = vpack.c.bf16 %v587_v27, %v586_v25  ;;  %v958_v30 = vpack.c.bf16 %v595_v28, %v594_v26  ;;  %v572_v45 = vsel %vm508_vm1, %v435_v31, %v540_v37  ;;  %v580_v46 = vsel %vm516_vm2, %v455_v32, %v548_v38 }
  0xbc   : > { %978 = vst [vmem:[%s1148_s4 + $0x48] sm:$0xff] %v938_v29   ;;  %v474_v33 = vpop.f32.mrf.mxu2  ;;  %v494_v34 = vpop.f32.mrf.mxu3 }
  0xbd   : > { %982 = vst [vmem:[%s1148_s4 + $0x68] sm:$0xff] %v958_v30   ;;  %v436_v35 = vpop.f32.mrf.mxu0  ;;  %v456_v36 = vpop.f32.mrf.mxu1  ;;  %v475_v43 = vadd.f32 %v1135_v21, %v474_v33  ;;  %v495_v44 = vadd.f32 %v1135_v21, %v494_v34 }
  0xbe   : > { %v437_v39 = vadd.f32 %v1135_v21, %v436_v35  ;;  %v457_v40 = vadd.f32 %v1135_v21, %v456_v36 }
  0xbf   : > { %v556_v53 = vmul.f32 0.2, %v475_v43  ;;  %v564_v54 = vmul.f32 0.2, %v495_v44  ;;  %vm524_vm5 = vcmp.ge.f32.partialorder %v475_v43, 0.0  ;;  %vm532_vm6 = vcmp.ge.f32.partialorder %v495_v44, 0.0 }
  0xc0   : > { %vm509_vm3 = vcmp.ge.f32.partialorder %v437_v39, 0.0  ;;  %v541_v41 = vmul.f32 0.2, %v437_v39  ;;  %vm517_vm4 = vcmp.ge.f32.partialorder %v457_v40, 0.0  ;;  %v549_v42 = vmul.f32 0.2, %v457_v40 }
  0xc1   : > { %v588_v61 = vsel %vm524_vm5, %v475_v43, %v556_v53  ;;  %v596_v62 = vsel %vm532_vm6, %v495_v44, %v564_v54 }
  0xc2   : > { %v573_v47 = vsel %vm509_vm3, %v437_v39, %v541_v41  ;;  %v581_v48 = vsel %vm517_vm4, %v457_v40, %v549_v42 }
  0xc3   : > { %v903_v49 = vpack.c.bf16 %v573_v47, %v572_v45  ;;  %v923_v50 = vpack.c.bf16 %v581_v48, %v580_v46 }
  0xc4   : > { %v476_v51 = vpop.f32.mrf.mxu2  ;;  %v496_v52 = vpop.f32.mrf.mxu3 }
  0xc5   : > { %971 = vst [vmem:[%s1148_s4 + $0x10] sm:$0xff] %v903_v49   ;;  %v477_v55 = vadd.f32 %v1135_v21, %v476_v51  ;;  %v497_v56 = vadd.f32 %v1135_v21, %v496_v52  ;;  %v439_v57 = vpop.f32.mrf.mxu0  ;;  %v459_v58 = vpop.f32.mrf.mxu1 }
  0xc6   : > { %975 = vst [vmem:[%s1148_s4 + $0x30] sm:$0xff] %v923_v50   ;;  %v440_v3 = vadd.f32 %v1135_v21, %v439_v57  ;;  %v460_v4 = vadd.f32 %v1135_v21, %v459_v58 }
  0xc7   : > { %vm525_vm7 = vcmp.ge.f32.partialorder %v477_v55, 0.0  ;;  %v557_v59 = vmul.f32 0.2, %v477_v55  ;;  %vm533_vm8 = vcmp.ge.f32.partialorder %v497_v56, 0.0  ;;  %v565_v60 = vmul.f32 0.2, %v497_v56 }
  0xc8   : > { %v542_v9 = vmul.f32 0.2, %v440_v3  ;;  %v550_v10 = vmul.f32 0.2, %v460_v4  ;;  %vm510_vm9 = vcmp.ge.f32.partialorder %v440_v3, 0.0  ;;  %vm518_vm10 = vcmp.ge.f32.partialorder %v460_v4, 0.0 }
  0xc9   : > { %v589_v63 = vsel %vm525_vm7, %v477_v55, %v557_v59  ;;  %v597_v0 = vsel %vm533_vm8, %v497_v56, %v565_v60 }
  0xca   : > { %v943_v1 = vpack.c.bf16 %v589_v63, %v588_v61  ;;  %v963_v2 = vpack.c.bf16 %v597_v0, %v596_v62  ;;  %v574_v17 = vsel %vm510_vm9, %v440_v3, %v542_v9  ;;  %v582_v18 = vsel %vm518_vm10, %v460_v4, %v550_v10 }
  0xcc   : > { %979 = vst [vmem:[%s1148_s4 + $0x50] sm:$0xff] %v943_v1   ;;  %v479_v5 = vpop.f32.mrf.mxu2  ;;  %v499_v6 = vpop.f32.mrf.mxu3 }
  0xcd   : > { %983 = vst [vmem:[%s1148_s4 + $0x70] sm:$0xff] %v963_v2   ;;  %v441_v7 = vpop.f32.mrf.mxu0  ;;  %v461_v8 = vpop.f32.mrf.mxu1  ;;  %v480_v15 = vadd.f32 %v1135_v21, %v479_v5  ;;  %v500_v16 = vadd.f32 %v1135_v21, %v499_v6 }
  0xce   : > { %v442_v11 = vadd.f32 %v1135_v21, %v441_v7  ;;  %v462_v12 = vadd.f32 %v1135_v21, %v461_v8 }
  0xcf   : > { %v558_v26 = vmul.f32 0.2, %v480_v15  ;;  %v566_v27 = vmul.f32 0.2, %v500_v16  ;;  %vm526_vm13 = vcmp.ge.f32.partialorder %v480_v15, 0.0  ;;  %vm534_vm14 = vcmp.ge.f32.partialorder %v500_v16, 0.0 }
  0xd0   : > { %vm511_vm11 = vcmp.ge.f32.partialorder %v442_v11, 0.0  ;;  %v543_v13 = vmul.f32 0.2, %v442_v11  ;;  %vm519_vm12 = vcmp.ge.f32.partialorder %v462_v12, 0.0  ;;  %v551_v14 = vmul.f32 0.2, %v462_v12 }
  0xd1   : > { %v590_v32 = vsel %vm526_vm13, %v480_v15, %v558_v26  ;;  %v598_v33 = vsel %vm534_vm14, %v500_v16, %v566_v27 }
  0xd2   : > { %v575_v19 = vsel %vm511_vm11, %v442_v11, %v543_v13  ;;  %v583_v20 = vsel %vm519_vm12, %v462_v12, %v551_v14 }
  0xd3   : > { %v908_v22 = vpack.c.bf16 %v575_v19, %v574_v17  ;;  %v928_v23 = vpack.c.bf16 %v583_v20, %v582_v18 }
  0xd4   : > { %v481_v24 = vpop.f32.mrf.mxu2  ;;  %v501_v25 = vpop.f32.mrf.mxu3 }
  0xd5   : > { %972 = vst [vmem:[%s1148_s4 + $0x18] sm:$0xff] %v908_v22   ;;  %v482_v28 = vadd.f32 %v1135_v21, %v481_v24  ;;  %v502_v29 = vadd.f32 %v1135_v21, %v501_v25 }
  0xd6   : > { %976 = vst [vmem:[%s1148_s4 + $0x38] sm:$0xff] %v928_v23  }
  0xd7   : > { %vm527_vm15 = vcmp.ge.f32.partialorder %v482_v28, 0.0  ;;  %v559_v30 = vmul.f32 0.2, %v482_v28  ;;  %vm535_vm0 = vcmp.ge.f32.partialorder %v502_v29, 0.0  ;;  %v567_v31 = vmul.f32 0.2, %v502_v29 }
  0xd9   : > { %v591_v34 = vsel %vm527_vm15, %v482_v28, %v559_v30  ;;  %v599_v35 = vsel %vm535_vm0, %v502_v29, %v567_v31 }
  0xda   : > { %v948_v36 = vpack.c.bf16 %v591_v34, %v590_v32  ;;  %v968_v37 = vpack.c.bf16 %v599_v35, %v598_v33 }
  0xdc   : > { %980 = vst [vmem:[%s1148_s4 + $0x58] sm:$0xff] %v948_v36  }
  0xdd   : > { %984 = vst [vmem:[%s1148_s4 + $0x78] sm:$0xff] %v968_v37  }
  0xde PF: > { %s13_s14 = sadd.s32 1, %s1041_s14   ;;  %s1205_s12 = smov %s1037_s13 }
  0xdf   : > { %p10_p5 = scmp.ge.s32.totalorder %s13_s14, 4   ;;  %s1206_s13 = smov %s1208_s15 }
  0xe1   :  { %12 = sbr.rel (!%p10_p5) target bundleno = 2 (0x2), region = 68 }

// kernel: _generator_impl.17
= control target key start
LH: loop header
LB: loop body
LE: loop exit
PB: predicated region body
PF: predicated region fallthrough
CT: control target
= control target key end

     0   :  { %s857_s1 = inlined_call_operand.vmem [shape: bf16[256,128], index: 1, kind: input, shape index: {}]   ;;  %s858_s2 = inlined_call_operand.vmem [shape: f32[1,128], index: 2, kind: input, shape index: {}]   ;;  %s859_s0 = inlined_call_operand.vmem [shape: bf16[128,256], index: 0, kind: input, shape index: {}]   ;;  %s860_s3 = inlined_call_operand.vmem [shape: bf16[128,128], index: 3, kind: output, shape index: {}]  }
   0x1   :  { %v575_v0 = vld [vmem:[%s857_s1 + $0x38] sm:$0xff]  ;;  %v574_v2 = vld [vmem:[%s857_s1 + $0x30] sm:$0xff]  ;;  %v573_v4 = vld [vmem:[%s857_s1 + $0x28] sm:$0xff] }
   0x2   :  { %v583_v1 = vld [vmem:[%s857_s1 + $0x78] sm:$0xff]  ;;  %242 = vmatpush.bf16.msra.mxu0 %v575_v0  ;;  %631 = vmatpush.bf16.msra.mxu2 %v575_v0  ;;  %v582_v3 = vld [vmem:[%s857_s1 + $0x70] sm:$0xff]  ;;  %v581_v5 = vld [vmem:[%s857_s1 + $0x68] sm:$0xff] }
   0x3   :  { %291 = vmatpush.bf16.msra.mxu1 %v583_v1  ;;  %639 = vmatpush.bf16.msra.mxu3 %v583_v1  ;;  %v572_v6 = vld [vmem:[%s857_s1 + $0x20] sm:$0xff]  ;;  %v571_v8 = vld [vmem:[%s857_s1 + $0x18] sm:$0xff]  ;;  %v570_v10 = vld [vmem:[%s857_s1 + $0x10] sm:$0xff] }
   0x4   :  { %v580_v7 = vld [vmem:[%s857_s1 + $0x60] sm:$0xff]  ;;  %v579_v9 = vld [vmem:[%s857_s1 + $0x58] sm:$0xff]  ;;  %v578_v11 = vld [vmem:[%s857_s1 + $0x50] sm:$0xff] }
   0x5   :  { %v569_v12 = vld [vmem:[%s857_s1 + $0x8] sm:$0xff]  ;;  %v568_v14 = vld [vmem:[%s857_s1] sm:$0xff]  ;;  %v434_v28 = vld [vmem:[%s859_s0 + $0x10] sm:$0xf] }
   0x6   :  { %243 = vmatpush.bf16.msra.mxu0 %v574_v2  ;;  %632 = vmatpush.bf16.msra.mxu2 %v574_v2  ;;  %v577_v13 = vld [vmem:[%s857_s1 + $0x48] sm:$0xff]  ;;  %v576_v15 = vld [vmem:[%s857_s1 + $0x40] sm:$0xff]  ;;  %v555_v29 = vld [vmem:[%s859_s0 + $0x14] sm:$0xf0] }
   0x7   :  { %292 = vmatpush.bf16.msra.mxu1 %v582_v3  ;;  %640 = vmatpush.bf16.msra.mxu3 %v582_v3  ;;  %v426_v16 = vld [vmem:[%s859_s0] sm:$0xf]  ;;  %v553_v17 = vld [vmem:[%s859_s0 + $0x4] sm:$0xf0]  ;;  %v552_v20 = vld [vmem:[%s859_s0 + $0x4] sm:$0xf]  ;;  %v435_v36 = vor.u32 %v555_v29, %v434_v28 }
   0x8   :  { %v458_v18 = vld [vmem:[%s859_s0 + $0x40] sm:$0xf]  ;;  %v561_v19 = vld [vmem:[%s859_s0 + $0x44] sm:$0xf0]  ;;  %v428_v21 = vld [vmem:[%s859_s0 + $0x8] sm:$0xf0]  ;;  %v427_v24 = vor.u32 %v553_v17, %v426_v16 }
   0x9   :  { %v560_v22 = vld [vmem:[%s859_s0 + $0x44] sm:$0xf]  ;;  %v460_v23 = vld [vmem:[%s859_s0 + $0x48] sm:$0xf0]  ;;  %v459_v25 = vor.u32 %v561_v19, %v458_v18  ;;  %v431_v26 = vor.u32 %v552_v20, %v428_v21  ;;  %v466_v30 = vld [vmem:[%s859_s0 + $0x50] sm:$0xf] }
   0xa   :  { %244 = vmatpush.bf16.msra.mxu0 %v573_v4  ;;  %633 = vmatpush.bf16.msra.mxu2 %v573_v4  ;;  %v463_v27 = vor.u32 %v560_v22, %v460_v23  ;;  %v563_v31 = vld [vmem:[%s859_s0 + $0x54] sm:$0xf0]  ;;  %v554_v32 = vld [vmem:[%s859_s0 + $0x14] sm:$0xf]  ;;  %v436_v33 = vld [vmem:[%s859_s0 + $0x18] sm:$0xf0] }
   0xb   :  { %293 = vmatpush.bf16.msra.mxu1 %v581_v5  ;;  %641 = vmatpush.bf16.msra.mxu3 %v581_v5  ;;  %v562_v34 = vld [vmem:[%s859_s0 + $0x54] sm:$0xf]  ;;  %v468_v35 = vld [vmem:[%s859_s0 + $0x58] sm:$0xf0]  ;;  %v467_v37 = vor.u32 %v563_v31, %v466_v30  ;;  %v439_v38 = vor.u32 %v554_v32, %v436_v33  ;;  %v442_v40 = vld [vmem:[%s859_s0 + $0x20] sm:$0xf] }
   0xc   :  { %v471_v39 = vor.u32 %v562_v34, %v468_v35  ;;  %v557_v41 = vld [vmem:[%s859_s0 + $0x24] sm:$0xf0]  ;;  %v474_v42 = vld [vmem:[%s859_s0 + $0x60] sm:$0xf]  ;;  %v556_v44 = vld [vmem:[%s859_s0 + $0x24] sm:$0xf] }
   0xd   :  { %v565_v43 = vld [vmem:[%s859_s0 + $0x64] sm:$0xf0]  ;;  %v444_v45 = vld [vmem:[%s859_s0 + $0x28] sm:$0xf0]  ;;  %v564_v46 = vld [vmem:[%s859_s0 + $0x64] sm:$0xf]  ;;  %v443_v48 = vor.u32 %v557_v41, %v442_v40 }
   0xe   :  { %245 = vmatpush.bf16.msra.mxu0 %v572_v6  ;;  %634 = vmatpush.bf16.msra.mxu2 %v572_v6  ;;  %v476_v47 = vld [vmem:[%s859_s0 + $0x68] sm:$0xf0]  ;;  %v475_v49 = vor.u32 %v565_v43, %v474_v42  ;;  %v447_v50 = vor.u32 %v556_v44, %v444_v45  ;;  %v450_v52 = vld [vmem:[%s859_s0 + $0x30] sm:$0xf]  ;;  %v559_v53 = vld [vmem:[%s859_s0 + $0x34] sm:$0xf0] }
   0xf   :  { %294 = vmatpush.bf16.msra.mxu1 %v580_v7  ;;  %642 = vmatpush.bf16.msra.mxu3 %v580_v7  ;;  %v479_v51 = vor.u32 %v564_v46, %v476_v47  ;;  %v482_v54 = vld [vmem:[%s859_s0 + $0x70] sm:$0xf]  ;;  %v567_v55 = vld [vmem:[%s859_s0 + $0x74] sm:$0xf0]  ;;  %v558_v56 = vld [vmem:[%s859_s0 + $0x34] sm:$0xf]  ;;  %v451_v60 = vor.u32 %v559_v53, %v450_v52 }
  0x10   :  { %v452_v57 = vld [vmem:[%s859_s0 + $0x38] sm:$0xf0]  ;;  %v566_v58 = vld [vmem:[%s859_s0 + $0x74] sm:$0xf]  ;;  %v483_v61 = vor.u32 %v567_v55, %v482_v54  ;;  %v815_v0 = vld [vmem:[%s858_s2] ss:$0 sm:$0xff] }
  0x11   :  { %v484_v59 = vld [vmem:[%s859_s0 + $0x78] sm:$0xf0]  ;;  %v455_v62 = vor.u32 %v558_v56, %v452_v57 }
  0x12   :  { %246 = vmatpush.bf16.msra.mxu0 %v571_v8  ;;  %635 = vmatpush.bf16.msra.mxu2 %v571_v8  ;;  %v487_v63 = vor.u32 %v566_v58, %v484_v59 }
  0x13   :  { %295 = vmatpush.bf16.msra.mxu1 %v579_v9  ;;  %643 = vmatpush.bf16.msra.mxu3 %v579_v9 }
  0x16   :  { %247 = vmatpush.bf16.msra.mxu0 %v570_v10  ;;  %636 = vmatpush.bf16.msra.mxu2 %v570_v10 }
  0x17   :  { %296 = vmatpush.bf16.msra.mxu1 %v578_v11  ;;  %644 = vmatpush.bf16.msra.mxu3 %v578_v11 }
  0x1a   :  { %248 = vmatpush.bf16.msra.mxu0 %v569_v12  ;;  %637 = vmatpush.bf16.msra.mxu2 %v569_v12 }
  0x1b   :  { %297 = vmatpush.bf16.msra.mxu1 %v577_v13  ;;  %645 = vmatpush.bf16.msra.mxu3 %v577_v13 }
  0x1e   :  { %249 = vmatpush.bf16.msra.mxu0 %v568_v14  ;;  %638 = vmatpush.bf16.msra.mxu2 %v568_v14 }
  0x1f   :  { %298 = vmatpush.bf16.msra.mxu1 %v576_v15  ;;  %646 = vmatpush.bf16.msra.mxu3 %v576_v15 }
  0x21   :  { %250 = vmatmul.bf16.vlgmr.msra.gmra.mxu0 %v427_v24  ;;  %270 = vmatmul.bf16.vlgmr.msra.gmra.mxu2 %v459_v25 }
  0x22   :  { %299 = vmatmul.bf16.vlgmr.msra.gmra.mxu1 %v431_v26  ;;  %319 = vmatmul.bf16.vlgmr.msra.gmra.mxu3 %v463_v27 }
  0x31   :  { %255 = vmatmul.bf16.gmra.mxu0 %v435_v36  ;;  %275 = vmatmul.bf16.gmra.mxu2 %v467_v37 }
  0x32   :  { %304 = vmatmul.bf16.gmra.mxu1 %v439_v38  ;;  %324 = vmatmul.bf16.gmra.mxu3 %v471_v39 }
  0x41   :  { %260 = vmatmul.bf16.gmra.mxu0 %v443_v48  ;;  %280 = vmatmul.bf16.gmra.mxu2 %v475_v49 }
  0x42   :  { %309 = vmatmul.bf16.gmra.mxu1 %v447_v50  ;;  %329 = vmatmul.bf16.gmra.mxu3 %v479_v51 }
  0x51   :  { %265 = vmatmul.bf16.gmra.mxu0 %v451_v60  ;;  %285 = vmatmul.bf16.gmra.mxu2 %v483_v61 }
  0x52   :  { %314 = vmatmul.bf16.gmra.mxu1 %v455_v62  ;;  %334 = vmatmul.bf16.gmra.mxu3 %v487_v63 }
  0x9e   :  { %v251_v1 = vpop.f32.mrf.mxu0 }
  0x9f   :  { %v300_v2 = vpop.f32.mrf.mxu1  ;;  %v252_v3 = vadd.f32 %v815_v0, %v251_v1 }
  0xa1   :  { %v301_v5 = vadd.f32 %v300_v2, %v252_v3 }
  0xa3   :  { %v356_v11 = vmul.f32 0.2, %v301_v5  ;;  %vm340_vm0 = vcmp.ge.f32.partialorder %v301_v5, 0.0 }
  0xa4   :  { %v271_v4 = vpop.f32.mrf.mxu2 }
  0xa5   :  { %v320_v6 = vpop.f32.mrf.mxu3  ;;  %v272_v8 = vadd.f32 %v815_v0, %v271_v4  ;;  %v372_v16 = vsel %vm340_vm0, %v301_v5, %v356_v11 }
  0xa6   :  { %v253_v7 = vpop.f32.mrf.mxu0 }
  0xa7   :  { %v254_v9 = vadd.f32 %v815_v0, %v253_v7  ;;  %v302_v10 = vpop.f32.mrf.mxu1  ;;  %v321_v13 = vadd.f32 %v320_v6, %v272_v8 }
  0xa9   :  { %v303_v12 = vadd.f32 %v302_v10, %v254_v9  ;;  %v364_v22 = vmul.f32 0.2, %v321_v13  ;;  %vm348_vm2 = vcmp.ge.f32.partialorder %v321_v13, 0.0 }
  0xab   :  { %vm341_vm1 = vcmp.ge.f32.partialorder %v303_v12, 0.0  ;;  %v357_v14 = vmul.f32 0.2, %v303_v12  ;;  %v380_v27 = vsel %vm348_vm2, %v321_v13, %v364_v22 }
  0xac   :  { %v273_v15 = vpop.f32.mrf.mxu2 }
  0xad   :  { %v373_v17 = vsel %vm341_vm1, %v303_v12, %v357_v14  ;;  %v274_v18 = vadd.f32 %v815_v0, %v273_v15  ;;  %v322_v19 = vpop.f32.mrf.mxu3 }
  0xae   :  { %v587_v20 = vpack.c.bf16 %v373_v17, %v372_v16  ;;  %v256_v21 = vpop.f32.mrf.mxu0 }
  0xaf   :  { %v323_v23 = vadd.f32 %v322_v19, %v274_v18  ;;  %v305_v24 = vpop.f32.mrf.mxu1  ;;  %v257_v26 = vadd.f32 %v815_v0, %v256_v21 }
  0xb0   :  { %588 = vst [vmem:[%s860_s3] sm:$0xff] %v587_v20  }
  0xb1   :  { %vm349_vm3 = vcmp.ge.f32.partialorder %v323_v23, 0.0  ;;  %v365_v25 = vmul.f32 0.2, %v323_v23  ;;  %v306_v31 = vadd.f32 %v305_v24, %v257_v26 }
  0xb3   :  { %v381_v28 = vsel %vm349_vm3, %v323_v23, %v365_v25  ;;  %v358_v37 = vmul.f32 0.2, %v306_v31  ;;  %vm342_vm4 = vcmp.ge.f32.partialorder %v306_v31, 0.0 }
  0xb4   :  { %v607_v29 = vpack.c.bf16 %v381_v28, %v380_v27  ;;  %v276_v30 = vpop.f32.mrf.mxu2 }
  0xb5   :  { %v325_v32 = vpop.f32.mrf.mxu3  ;;  %v277_v34 = vadd.f32 %v815_v0, %v276_v30  ;;  %v374_v42 = vsel %vm342_vm4, %v306_v31, %v358_v37 }
  0xb6   :  { %627 = vst [vmem:[%s860_s3 + $0x20] sm:$0xff] %v607_v29   ;;  %v258_v33 = vpop.f32.mrf.mxu0 }
  0xb7   :  { %v259_v35 = vadd.f32 %v815_v0, %v258_v33  ;;  %v307_v36 = vpop.f32.mrf.mxu1  ;;  %v326_v39 = vadd.f32 %v325_v32, %v277_v34 }
  0xb9   :  { %v308_v38 = vadd.f32 %v307_v36, %v259_v35  ;;  %v366_v48 = vmul.f32 0.2, %v326_v39  ;;  %vm350_vm6 = vcmp.ge.f32.partialorder %v326_v39, 0.0 }
  0xbb   :  { %vm343_vm5 = vcmp.ge.f32.partialorder %v308_v38, 0.0  ;;  %v359_v40 = vmul.f32 0.2, %v308_v38  ;;  %v382_v53 = vsel %vm350_vm6, %v326_v39, %v366_v48 }
  0xbc   :  { %v278_v41 = vpop.f32.mrf.mxu2 }
  0xbd   :  { %v375_v43 = vsel %vm343_vm5, %v308_v38, %v359_v40  ;;  %v279_v44 = vadd.f32 %v815_v0, %v278_v41  ;;  %v327_v45 = vpop.f32.mrf.mxu3 }
  0xbe   :  { %v592_v46 = vpack.c.bf16 %v375_v43, %v374_v42  ;;  %v261_v47 = vpop.f32.mrf.mxu0 }
  0xbf   :  { %v328_v49 = vadd.f32 %v327_v45, %v279_v44  ;;  %v310_v50 = vpop.f32.mrf.mxu1  ;;  %v262_v52 = vadd.f32 %v815_v0, %v261_v47 }
  0xc0   :  { %624 = vst [vmem:[%s860_s3 + $0x8] sm:$0xff] %v592_v46  }
  0xc1   :  { %vm351_vm7 = vcmp.ge.f32.partialorder %v328_v49, 0.0  ;;  %v367_v51 = vmul.f32 0.2, %v328_v49  ;;  %v311_v57 = vadd.f32 %v310_v50, %v262_v52 }
  0xc3   :  { %v383_v54 = vsel %vm351_vm7, %v328_v49, %v367_v51  ;;  %v360_v63 = vmul.f32 0.2, %v311_v57  ;;  %vm344_vm8 = vcmp.ge.f32.partialorder %v311_v57, 0.0 }
  0xc4   :  { %v612_v55 = vpack.c.bf16 %v383_v54, %v382_v53  ;;  %v281_v56 = vpop.f32.mrf.mxu2 }
  0xc5   :  { %v330_v58 = vpop.f32.mrf.mxu3  ;;  %v282_v60 = vadd.f32 %v815_v0, %v281_v56  ;;  %v376_v5 = vsel %vm344_vm8, %v311_v57, %v360_v63 }
  0xc6   :  { %628 = vst [vmem:[%s860_s3 + $0x28] sm:$0xff] %v612_v55   ;;  %v263_v59 = vpop.f32.mrf.mxu0 }
  0xc7   :  { %v264_v61 = vadd.f32 %v815_v0, %v263_v59  ;;  %v312_v62 = vpop.f32.mrf.mxu1  ;;  %v331_v2 = vadd.f32 %v330_v58, %v282_v60 }
  0xc9   :  { %v313_v1 = vadd.f32 %v312_v62, %v264_v61  ;;  %v368_v11 = vmul.f32 0.2, %v331_v2  ;;  %vm352_vm10 = vcmp.ge.f32.partialorder %v331_v2, 0.0 }
  0xcb   :  { %vm345_vm9 = vcmp.ge.f32.partialorder %v313_v1, 0.0  ;;  %v361_v3 = vmul.f32 0.2, %v313_v1  ;;  %v384_v16 = vsel %vm352_vm10, %v331_v2, %v368_v11 }
  0xcc   :  { %v283_v4 = vpop.f32.mrf.mxu2 }
  0xcd   :  { %v377_v6 = vsel %vm345_vm9, %v313_v1, %v361_v3  ;;  %v284_v7 = vadd.f32 %v815_v0, %v283_v4  ;;  %v332_v8 = vpop.f32.mrf.mxu3 }
  0xce   :  { %v597_v9 = vpack.c.bf16 %v377_v6, %v376_v5  ;;  %v266_v10 = vpop.f32.mrf.mxu0 }
  0xcf   :  { %v333_v12 = vadd.f32 %v332_v8, %v284_v7  ;;  %v315_v13 = vpop.f32.mrf.mxu1  ;;  %v267_v15 = vadd.f32 %v815_v0, %v266_v10 }
  0xd0   :  { %625 = vst [vmem:[%s860_s3 + $0x10] sm:$0xff] %v597_v9  }
  0xd1   :  { %vm353_vm11 = vcmp.ge.f32.partialorder %v333_v12, 0.0  ;;  %v369_v14 = vmul.f32 0.2, %v333_v12  ;;  %v316_v20 = vadd.f32 %v315_v13, %v267_v15 }
  0xd3   :  { %v385_v17 = vsel %vm353_vm11, %v333_v12, %v369_v14  ;;  %v362_v26 = vmul.f32 0.2, %v316_v20  ;;  %vm346_vm12 = vcmp.ge.f32.partialorder %v316_v20, 0.0 }
  0xd4   :  { %v617_v18 = vpack.c.bf16 %v385_v17, %v384_v16  ;;  %v286_v19 = vpop.f32.mrf.mxu2 }
  0xd5   :  { %v335_v21 = vpop.f32.mrf.mxu3  ;;  %v287_v23 = vadd.f32 %v815_v0, %v286_v19  ;;  %v378_v31 = vsel %vm346_vm12, %v316_v20, %v362_v26 }
  0xd6   :  { %629 = vst [vmem:[%s860_s3 + $0x30] sm:$0xff] %v617_v18   ;;  %v268_v22 = vpop.f32.mrf.mxu0 }
  0xd7   :  { %v269_v24 = vadd.f32 %v815_v0, %v268_v22  ;;  %v317_v25 = vpop.f32.mrf.mxu1  ;;  %v336_v28 = vadd.f32 %v335_v21, %v287_v23 }
  0xd9   :  { %v318_v27 = vadd.f32 %v317_v25, %v269_v24  ;;  %v370_v36 = vmul.f32 0.2, %v336_v28  ;;  %vm354_vm14 = vcmp.ge.f32.partialorder %v336_v28, 0.0 }
  0xdb   :  { %vm347_vm13 = vcmp.ge.f32.partialorder %v318_v27, 0.0  ;;  %v363_v29 = vmul.f32 0.2, %v318_v27  ;;  %v386_v39 = vsel %vm354_vm14, %v336_v28, %v370_v36 }
  0xdc   :  { %v288_v30 = vpop.f32.mrf.mxu2 }
  0xdd   :  { %v379_v32 = vsel %vm347_vm13, %v318_v27, %v363_v29  ;;  %v289_v33 = vadd.f32 %v815_v0, %v288_v30  ;;  %v337_v35 = vpop.f32.mrf.mxu3 }
  0xde   :  { %v602_v34 = vpack.c.bf16 %v379_v32, %v378_v31 }
  0xdf   :  { %v338_v37 = vadd.f32 %v337_v35, %v289_v33 }
  0xe0   :  { %626 = vst [vmem:[%s860_s3 + $0x18] sm:$0xff] %v602_v34  }
  0xe1   :  { %vm355_vm15 = vcmp.ge.f32.partialorder %v338_v37, 0.0  ;;  %v371_v38 = vmul.f32 0.2, %v338_v37 }
  0xe3   :  { %v387_v40 = vsel %vm355_vm15, %v338_v37, %v371_v38 }
  0xe4   :  { %v622_v41 = vpack.c.bf16 %v387_v40, %v386_v39 }
  0xe6   :  { %630 = vst [vmem:[%s860_s3 + $0x38] sm:$0xff] %v622_v41  }

// kernel: _generator_impl.18
= control target key start
LH: loop header
LB: loop body
LE: loop exit
PB: predicated region body
PF: predicated region fallthrough
CT: control target
= control target key end

     0   :  { %s807_s1 = inlined_call_operand.vmem [shape: bf16[512,128], index: 1, kind: input, shape index: {}]   ;;  %s808_s2 = inlined_call_operand.vmem [shape: f32[1,128], index: 2, kind: input, shape index: {}]   ;;  %s809_s0 = inlined_call_operand.vmem [shape: bf16[32,512], index: 0, kind: input, shape index: {}]   ;;  %s810_s3 = inlined_call_operand.vmem [shape: bf16[32,128], index: 3, kind: output, shape index: {}]  }
   0x1   :  { %v597_v0 = vld [vmem:[%s807_s1 + $0x38] sm:$0xff]  ;;  %v596_v4 = vld [vmem:[%s807_s1 + $0x30] sm:$0xff]  ;;  %v595_v8 = vld [vmem:[%s807_s1 + $0x28] sm:$0xff] }
   0x2   :  { %v605_v1 = vld [vmem:[%s807_s1 + $0x78] sm:$0xff]  ;;  %322 = vmatpush.bf16.msra.mxu0 %v597_v0  ;;  %v604_v5 = vld [vmem:[%s807_s1 + $0x70] sm:$0xff]  ;;  %v603_v9 = vld [vmem:[%s807_s1 + $0x68] sm:$0xff] }
   0x3   :  { %v613_v2 = vld [vmem:[%s807_s1 + $0xb8] sm:$0xff]  ;;  %341 = vmatpush.bf16.msra.mxu1 %v605_v1  ;;  %v612_v6 = vld [vmem:[%s807_s1 + $0xb0] sm:$0xff]  ;;  %v611_v10 = vld [vmem:[%s807_s1 + $0xa8] sm:$0xff] }
   0x4   :  { %v621_v3 = vld [vmem:[%s807_s1 + $0xf8] sm:$0xff]  ;;  %360 = vmatpush.bf16.msra.mxu2 %v613_v2  ;;  %v620_v7 = vld [vmem:[%s807_s1 + $0xf0] sm:$0xff]  ;;  %v619_v11 = vld [vmem:[%s807_s1 + $0xe8] sm:$0xff] }
   0x5   :  { %379 = vmatpush.bf16.msra.mxu3 %v621_v3  ;;  %v594_v12 = vld [vmem:[%s807_s1 + $0x20] sm:$0xff]  ;;  %v593_v16 = vld [vmem:[%s807_s1 + $0x18] sm:$0xff]  ;;  %v592_v20 = vld [vmem:[%s807_s1 + $0x10] sm:$0xff] }
   0x6   :  { %323 = vmatpush.bf16.msra.mxu0 %v596_v4  ;;  %v602_v13 = vld [vmem:[%s807_s1 + $0x60] sm:$0xff]  ;;  %v601_v17 = vld [vmem:[%s807_s1 + $0x58] sm:$0xff]  ;;  %v600_v21 = vld [vmem:[%s807_s1 + $0x50] sm:$0xff] }
   0x7   :  { %342 = vmatpush.bf16.msra.mxu1 %v604_v5  ;;  %v610_v14 = vld [vmem:[%s807_s1 + $0xa0] sm:$0xff]  ;;  %v609_v18 = vld [vmem:[%s807_s1 + $0x98] sm:$0xff]  ;;  %v608_v22 = vld [vmem:[%s807_s1 + $0x90] sm:$0xff] }
   0x8   :  { %361 = vmatpush.bf16.msra.mxu2 %v612_v6  ;;  %v618_v15 = vld [vmem:[%s807_s1 + $0xe0] sm:$0xff]  ;;  %v617_v19 = vld [vmem:[%s807_s1 + $0xd8] sm:$0xff]  ;;  %v616_v23 = vld [vmem:[%s807_s1 + $0xd0] sm:$0xff] }
   0x9   :  { %380 = vmatpush.bf16.msra.mxu3 %v620_v7  ;;  %v591_v24 = vld [vmem:[%s807_s1 + $0x8] sm:$0xff]  ;;  %v590_v28 = vld [vmem:[%s807_s1] sm:$0xff]  ;;  %v584_v33 = vld [vmem:[%s809_s0 + $0xc] sm:$0xf0] }
   0xa   :  { %324 = vmatpush.bf16.msra.mxu0 %v595_v8  ;;  %v599_v25 = vld [vmem:[%s807_s1 + $0x48] sm:$0xff]  ;;  %v598_v29 = vld [vmem:[%s807_s1 + $0x40] sm:$0xff]  ;;  %v426_v35 = vld [vmem:[%s809_s0 + $0x10] sm:$0xf0] }
   0xb   :  { %343 = vmatpush.bf16.msra.mxu1 %v603_v9  ;;  %v607_v26 = vld [vmem:[%s807_s1 + $0x88] sm:$0xff]  ;;  %v606_v30 = vld [vmem:[%s807_s1 + $0x80] sm:$0xff]  ;;  %v585_v37 = vld [vmem:[%s809_s0 + $0x14] sm:$0xf0] }
   0xc   :  { %362 = vmatpush.bf16.msra.mxu2 %v611_v10  ;;  %v615_v27 = vld [vmem:[%s807_s1 + $0xc8] sm:$0xff]  ;;  %v614_v31 = vld [vmem:[%s807_s1 + $0xc0] sm:$0xff]  ;;  %v434_v39 = vld [vmem:[%s809_s0 + $0x18] sm:$0xf0] }
   0xd   :  { %381 = vmatpush.bf16.msra.mxu3 %v619_v11  ;;  %v424_v32 = vld [vmem:[%s809_s0] sm:$0xf]  ;;  %v582_v34 = vld [vmem:[%s809_s0 + $0x4] sm:$0xf]  ;;  %v432_v36 = vld [vmem:[%s809_s0 + $0x8] sm:$0xf] }
   0xe   :  { %325 = vmatpush.bf16.msra.mxu0 %v594_v12  ;;  %v583_v38 = vld [vmem:[%s809_s0 + $0xc] sm:$0xf]  ;;  %v425_v40 = vor.u32 %v584_v33, %v424_v32  ;;  %v429_v41 = vor.u32 %v582_v34, %v426_v35  ;;  %v433_v42 = vor.u32 %v585_v37, %v432_v36  ;;  %v440_v44 = vld [vmem:[%s809_s0 + $0x20] sm:$0xf]  ;;  %v588_v45 = vld [vmem:[%s809_s0 + $0x2c] sm:$0xf0] }
   0xf   :  { %344 = vmatpush.bf16.msra.mxu1 %v602_v13  ;;  %v437_v43 = vor.u32 %v583_v38, %v434_v39  ;;  %v586_v46 = vld [vmem:[%s809_s0 + $0x24] sm:$0xf]  ;;  %v442_v47 = vld [vmem:[%s809_s0 + $0x30] sm:$0xf0]  ;;  %v448_v48 = vld [vmem:[%s809_s0 + $0x28] sm:$0xf]  ;;  %v441_v52 = vor.u32 %v588_v45, %v440_v44 }
  0x10   :  { %363 = vmatpush.bf16.msra.mxu2 %v610_v14  ;;  %v589_v49 = vld [vmem:[%s809_s0 + $0x34] sm:$0xf0]  ;;  %v587_v50 = vld [vmem:[%s809_s0 + $0x2c] sm:$0xf]  ;;  %v450_v51 = vld [vmem:[%s809_s0 + $0x38] sm:$0xf0]  ;;  %v445_v53 = vor.u32 %v586_v46, %v442_v47 }
  0x11   :  { %382 = vmatpush.bf16.msra.mxu3 %v618_v15  ;;  %v449_v54 = vor.u32 %v589_v49, %v448_v48  ;;  %v453_v55 = vor.u32 %v587_v50, %v450_v51  ;;  %v633_v56 = vld [vmem:[%s808_s2] ss:$0 sm:$0xff] }
  0x12   :  { %326 = vmatpush.bf16.msra.mxu0 %v593_v16 }
  0x13   :  { %345 = vmatpush.bf16.msra.mxu1 %v601_v17 }
  0x14   :  { %364 = vmatpush.bf16.msra.mxu2 %v609_v18 }
  0x15   :  { %383 = vmatpush.bf16.msra.mxu3 %v617_v19 }
  0x16   :  { %327 = vmatpush.bf16.msra.mxu0 %v592_v20 }
  0x17   :  { %346 = vmatpush.bf16.msra.mxu1 %v600_v21 }
  0x18   :  { %365 = vmatpush.bf16.msra.mxu2 %v608_v22 }
  0x19   :  { %384 = vmatpush.bf16.msra.mxu3 %v616_v23 }
  0x1a   :  { %328 = vmatpush.bf16.msra.mxu0 %v591_v24 }
  0x1b   :  { %347 = vmatpush.bf16.msra.mxu1 %v599_v25 }
  0x1c   :  { %366 = vmatpush.bf16.msra.mxu2 %v607_v26 }
  0x1d   :  { %385 = vmatpush.bf16.msra.mxu3 %v615_v27 }
  0x1e   :  { %329 = vmatpush.bf16.msra.mxu0 %v590_v28 }
  0x1f   :  { %348 = vmatpush.bf16.msra.mxu1 %v598_v29 }
  0x20   :  { %367 = vmatpush.bf16.msra.mxu2 %v606_v30 }
  0x21   :  { %386 = vmatpush.bf16.msra.mxu3 %v614_v31  ;;  %330 = vmatmul.bf16.vlgmr.msra.gmra.mxu0 %v425_v40 }
  0x22   :  { %349 = vmatmul.bf16.vlgmr.msra.gmra.mxu1 %v429_v41 }
  0x23   :  { %368 = vmatmul.bf16.vlgmr.msra.gmra.mxu2 %v433_v42 }
  0x24   :  { %387 = vmatmul.bf16.vlgmr.msra.gmra.mxu3 %v437_v43 }
  0x31   :  { %335 = vmatmul.bf16.gmra.mxu0 %v441_v52 }
  0x32   :  { %354 = vmatmul.bf16.gmra.mxu1 %v445_v53 }
  0x33   :  { %373 = vmatmul.bf16.gmra.mxu2 %v449_v54 }
  0x34   :  { %392 = vmatmul.bf16.gmra.mxu3 %v453_v55 }
  0x9e   :  { %v331_v57 = vpop.f32.mrf.mxu0 }
  0x9f   :  { %v350_v58 = vpop.f32.mrf.mxu1  ;;  %v332_v59 = vadd.f32 %v633_v56, %v331_v57 }
  0xa1   :  { %v351_v60 = vadd.f32 %v350_v58, %v332_v59 }
  0xa6   :  { %v369_v61 = vpop.f32.mrf.mxu2  ;;  %v333_v63 = vpop.f32.mrf.mxu0 }
  0xa7   :  { %v388_v62 = vpop.f32.mrf.mxu3  ;;  %v352_v0 = vpop.f32.mrf.mxu1  ;;  %v370_v1 = vadd.f32 %v369_v61, %v351_v60  ;;  %v334_v2 = vadd.f32 %v633_v56, %v333_v63 }
  0xa9   :  { %v389_v3 = vadd.f32 %v388_v62, %v370_v1  ;;  %v353_v4 = vadd.f32 %v352_v0, %v334_v2 }
  0xab   :  { %v402_v9 = vmul.f32 0.2, %v389_v3  ;;  %vm398_vm0 = vcmp.ge.f32.partialorder %v389_v3, 0.0 }
  0xad   :  { %v406_v14 = vsel %vm398_vm0, %v389_v3, %v402_v9 }
  0xae   :  { %v371_v5 = vpop.f32.mrf.mxu2  ;;  %v336_v8 = vpop.f32.mrf.mxu0 }
  0xaf   :  { %v390_v6 = vpop.f32.mrf.mxu3  ;;  %v372_v7 = vadd.f32 %v371_v5, %v353_v4  ;;  %v337_v11 = vadd.f32 %v633_v56, %v336_v8  ;;  %v355_v12 = vpop.f32.mrf.mxu1 }
  0xb1   :  { %v391_v10 = vadd.f32 %v390_v6, %v372_v7  ;;  %v356_v16 = vadd.f32 %v355_v12, %v337_v11 }
  0xb3   :  { %vm399_vm1 = vcmp.ge.f32.partialorder %v391_v10, 0.0  ;;  %v403_v13 = vmul.f32 0.2, %v391_v10 }
  0xb5   :  { %v407_v15 = vsel %vm399_vm1, %v391_v10, %v403_v13 }
  0xb6   :  { %v625_v17 = vpack.c.bf16 %v407_v15, %v406_v14  ;;  %v374_v18 = vpop.f32.mrf.mxu2  ;;  %v338_v20 = vpop.f32.mrf.mxu0 }
  0xb7   :  { %v393_v19 = vpop.f32.mrf.mxu3  ;;  %v375_v21 = vadd.f32 %v374_v18, %v356_v16  ;;  %v339_v22 = vadd.f32 %v633_v56, %v338_v20  ;;  %v357_v23 = vpop.f32.mrf.mxu1 }
  0xb8   :  { %626 = vst [vmem:[%s810_s3] sm:$0xff] %v625_v17  }
  0xb9   :  { %v394_v24 = vadd.f32 %v393_v19, %v375_v21  ;;  %v358_v25 = vadd.f32 %v357_v23, %v339_v22 }
  0xbb   :  { %v404_v29 = vmul.f32 0.2, %v394_v24  ;;  %vm400_vm2 = vcmp.ge.f32.partialorder %v394_v24, 0.0 }
  0xbd   :  { %v408_v32 = vsel %vm400_vm2, %v394_v24, %v404_v29 }
  0xbe   :  { %v376_v26 = vpop.f32.mrf.mxu2 }
  0xbf   :  { %v377_v27 = vadd.f32 %v376_v26, %v358_v25  ;;  %v395_v28 = vpop.f32.mrf.mxu3 }
  0xc1   :  { %v396_v30 = vadd.f32 %v395_v28, %v377_v27 }
  0xc3   :  { %vm401_vm3 = vcmp.ge.f32.partialorder %v396_v30, 0.0  ;;  %v405_v31 = vmul.f32 0.2, %v396_v30 }
  0xc5   :  { %v409_v33 = vsel %vm401_vm3, %v396_v30, %v405_v31 }
  0xc6   :  { %v630_v34 = vpack.c.bf16 %v409_v33, %v408_v32 }
  0xc8   :  { %632 = vst [vmem:[%s810_s3 + $0x8] sm:$0xff] %v630_v34  }

// kernel: _generator_impl.19
= control target key start
LH: loop header
LB: loop body
LE: loop exit
PB: predicated region body
PF: predicated region fallthrough
CT: control target
= control target key end

     0   :  { %s1420_s1 = inlined_call_operand.vmem [shape: bf16[1024,128], index: 1, kind: input, shape index: {}]   ;;  %s1421_s2 = inlined_call_operand.vmem [shape: f32[1,128], index: 2, kind: input, shape index: {}]   ;;  %s1422_s0 = inlined_call_operand.vmem [shape: bf16[24,1024], index: 0, kind: input, shape index: {}]   ;;  %s1423_s3 = inlined_call_operand.vmem [shape: bf16[24,128], index: 3, kind: output, shape index: {}]  }
   0x1   :  { %v1076_v0 = vld [vmem:[%s1420_s1 + $0x38] sm:$0xff]  ;;  %v1075_v4 = vld [vmem:[%s1420_s1 + $0x30] sm:$0xff]  ;;  %v1074_v8 = vld [vmem:[%s1420_s1 + $0x28] sm:$0xff] }
   0x2   :  { %v1084_v1 = vld [vmem:[%s1420_s1 + $0x78] sm:$0xff]  ;;  %610 = vmatpush.bf16.msra.mxu0 %v1076_v0  ;;  %v1083_v5 = vld [vmem:[%s1420_s1 + $0x70] sm:$0xff]  ;;  %v1082_v9 = vld [vmem:[%s1420_s1 + $0x68] sm:$0xff] }
   0x3   :  { %v1092_v2 = vld [vmem:[%s1420_s1 + $0xb8] sm:$0xff]  ;;  %628 = vmatpush.bf16.msra.mxu1 %v1084_v1  ;;  %v1091_v6 = vld [vmem:[%s1420_s1 + $0xb0] sm:$0xff]  ;;  %v1090_v10 = vld [vmem:[%s1420_s1 + $0xa8] sm:$0xff] }
   0x4   :  { %v1100_v3 = vld [vmem:[%s1420_s1 + $0xf8] sm:$0xff]  ;;  %646 = vmatpush.bf16.msra.mxu2 %v1092_v2  ;;  %v1099_v7 = vld [vmem:[%s1420_s1 + $0xf0] sm:$0xff]  ;;  %v1098_v11 = vld [vmem:[%s1420_s1 + $0xe8] sm:$0xff] }
   0x5   :  { %664 = vmatpush.bf16.msra.mxu3 %v1100_v3  ;;  %v1073_v12 = vld [vmem:[%s1420_s1 + $0x20] sm:$0xff]  ;;  %v1072_v16 = vld [vmem:[%s1420_s1 + $0x18] sm:$0xff]  ;;  %v1071_v20 = vld [vmem:[%s1420_s1 + $0x10] sm:$0xff] }
   0x6   :  { %611 = vmatpush.bf16.msra.mxu0 %v1075_v4  ;;  %v1081_v13 = vld [vmem:[%s1420_s1 + $0x60] sm:$0xff]  ;;  %v1080_v17 = vld [vmem:[%s1420_s1 + $0x58] sm:$0xff]  ;;  %v1079_v21 = vld [vmem:[%s1420_s1 + $0x50] sm:$0xff] }
   0x7   :  { %629 = vmatpush.bf16.msra.mxu1 %v1083_v5  ;;  %v1089_v14 = vld [vmem:[%s1420_s1 + $0xa0] sm:$0xff]  ;;  %v1088_v18 = vld [vmem:[%s1420_s1 + $0x98] sm:$0xff]  ;;  %v1087_v22 = vld [vmem:[%s1420_s1 + $0x90] sm:$0xff] }
   0x8   :  { %647 = vmatpush.bf16.msra.mxu2 %v1091_v6  ;;  %v1097_v15 = vld [vmem:[%s1420_s1 + $0xe0] sm:$0xff]  ;;  %v1096_v19 = vld [vmem:[%s1420_s1 + $0xd8] sm:$0xff]  ;;  %v1095_v23 = vld [vmem:[%s1420_s1 + $0xd0] sm:$0xff] }
   0x9   :  { %665 = vmatpush.bf16.msra.mxu3 %v1099_v7  ;;  %v1070_v24 = vld [vmem:[%s1420_s1 + $0x8] sm:$0xff]  ;;  %v1069_v28 = vld [vmem:[%s1420_s1] sm:$0xff]  ;;  %v1124_v40 = vld [vmem:[%s1420_s1 + $0x1b8] sm:$0xff] }
   0xa   :  { %612 = vmatpush.bf16.msra.mxu0 %v1074_v8  ;;  %v1078_v25 = vld [vmem:[%s1420_s1 + $0x48] sm:$0xff]  ;;  %v1077_v29 = vld [vmem:[%s1420_s1 + $0x40] sm:$0xff]  ;;  %v1108_v41 = vld [vmem:[%s1420_s1 + $0x138] sm:$0xff] }
   0xb   :  { %630 = vmatpush.bf16.msra.mxu1 %v1082_v9  ;;  %v1086_v26 = vld [vmem:[%s1420_s1 + $0x88] sm:$0xff]  ;;  %v1085_v30 = vld [vmem:[%s1420_s1 + $0x80] sm:$0xff]  ;;  %v1116_v46 = vld [vmem:[%s1420_s1 + $0x178] sm:$0xff] }
   0xc   :  { %648 = vmatpush.bf16.msra.mxu2 %v1090_v10  ;;  %v1094_v27 = vld [vmem:[%s1420_s1 + $0xc8] sm:$0xff]  ;;  %v1093_v31 = vld [vmem:[%s1420_s1 + $0xc0] sm:$0xff]  ;;  %v1132_v47 = vld [vmem:[%s1420_s1 + $0x1f8] sm:$0xff] }
   0xd   :  { %666 = vmatpush.bf16.msra.mxu3 %v1098_v11  ;;  %v775_v32 = vld [vmem:[%s1422_s0] sm:$0xf]  ;;  %v1061_v34 = vld [vmem:[%s1422_s0 + $0x4] sm:$0xf]  ;;  %v783_v36 = vld [vmem:[%s1422_s0 + $0x8] sm:$0xf] }
   0xe   :  { %613 = vmatpush.bf16.msra.mxu0 %v1073_v12  ;;  %v1065_v33 = vld [vmem:[%s1422_s0 + $0x1c] sm:$0xf0]  ;;  %v777_v35 = vld [vmem:[%s1422_s0 + $0x20] sm:$0xf0]  ;;  %v1066_v37 = vld [vmem:[%s1422_s0 + $0x24] sm:$0xf0] }
   0xf   :  { %631 = vmatpush.bf16.msra.mxu1 %v1081_v13  ;;  %v1062_v38 = vld [vmem:[%s1422_s0 + $0xc] sm:$0xf]  ;;  %v776_v42 = vor.u32 %v1065_v33, %v775_v32  ;;  %v780_v43 = vor.u32 %v1061_v34, %v777_v35  ;;  %v784_v44 = vor.u32 %v1066_v37, %v783_v36  ;;  %v1123_v48 = vld [vmem:[%s1420_s1 + $0x1b0] sm:$0xff]  ;;  %v22_v54 = vld [vmem:[%s1422_s0 + $0x40] sm:$0xff] }
  0x10   :  { %649 = vmatpush.bf16.msra.mxu2 %v1089_v14  ;;  %v785_v39 = vld [vmem:[%s1422_s0 + $0x28] sm:$0xf0]  ;;  %v1107_v49 = vld [vmem:[%s1420_s1 + $0x130] sm:$0xff]  ;;  %v1121_v58 = vld [vmem:[%s1420_s1 + $0x1a0] sm:$0xff]  ;;  %v186_v60 = vunpack.c.l.b16 %v22_v54  ;;  %v187_v61 = vunpack.c.h.b16 %v22_v54 }
  0x11   :  { %667 = vmatpush.bf16.msra.mxu3 %v1097_v15  ;;  %v788_v45 = vor.u32 %v1062_v38, %v785_v39  ;;  %v1115_v50 = vld [vmem:[%s1420_s1 + $0x170] sm:$0xff]  ;;  %v1122_v52 = vld [vmem:[%s1420_s1 + $0x1a8] sm:$0xff]  ;;  %v1105_v59 = vld [vmem:[%s1420_s1 + $0x120] sm:$0xff] }
  0x12   :  { %614 = vmatpush.bf16.msra.mxu0 %v1072_v16  ;;  %v1131_v51 = vld [vmem:[%s1420_s1 + $0x1f0] sm:$0xff]  ;;  %v1106_v53 = vld [vmem:[%s1420_s1 + $0x128] sm:$0xff]  ;;  %v1113_v0 = vld [vmem:[%s1420_s1 + $0x160] sm:$0xff]  ;;  %v202_v4 = vpack.c.b16 %v186_v60, %v186_v60  ;;  %v203_v5 = vpack.c.b16 %v187_v61, %v187_v61 }
  0x13   :  { %632 = vmatpush.bf16.msra.mxu1 %v1080_v17  ;;  %v1114_v55 = vld [vmem:[%s1420_s1 + $0x168] sm:$0xff]  ;;  %v1129_v1 = vld [vmem:[%s1420_s1 + $0x1e0] sm:$0xff]  ;;  %v1120_v2 = vld [vmem:[%s1420_s1 + $0x198] sm:$0xff] }
  0x14   :  { %650 = vmatpush.bf16.msra.mxu2 %v1088_v18  ;;  %v1130_v56 = vld [vmem:[%s1420_s1 + $0x1e8] sm:$0xff]  ;;  %v1104_v3 = vld [vmem:[%s1420_s1 + $0x118] sm:$0xff]  ;;  %v1119_v10 = vld [vmem:[%s1420_s1 + $0x190] sm:$0xff] }
  0x15   :  { %668 = vmatpush.bf16.msra.mxu3 %v1096_v19  ;;  %v23_v57 = vld [vmem:[%s1422_s0 + $0x48] sm:$0xff]  ;;  %v1112_v8 = vld [vmem:[%s1420_s1 + $0x158] sm:$0xff]  ;;  %v1103_v11 = vld [vmem:[%s1420_s1 + $0x110] sm:$0xff] }
  0x16   :  { %615 = vmatpush.bf16.msra.mxu0 %v1071_v20  ;;  %v188_v62 = vunpack.c.l.b16 %v23_v57  ;;  %v189_v63 = vunpack.c.h.b16 %v23_v57  ;;  %v1128_v9 = vld [vmem:[%s1420_s1 + $0x1d8] sm:$0xff]  ;;  %v1111_v12 = vld [vmem:[%s1420_s1 + $0x150] sm:$0xff]  ;;  %v1118_v14 = vld [vmem:[%s1420_s1 + $0x188] sm:$0xff] }
  0x17   :  { %633 = vmatpush.bf16.msra.mxu1 %v1079_v21  ;;  %v1127_v13 = vld [vmem:[%s1420_s1 + $0x1d0] sm:$0xff]  ;;  %v1102_v15 = vld [vmem:[%s1420_s1 + $0x108] sm:$0xff]  ;;  %v1117_v18 = vld [vmem:[%s1420_s1 + $0x180] sm:$0xff] }
  0x18   :  { %651 = vmatpush.bf16.msra.mxu2 %v1087_v22  ;;  %v204_v6 = vpack.c.b16 %v188_v62, %v188_v62  ;;  %v205_v7 = vpack.c.b16 %v189_v63, %v189_v63  ;;  %v1110_v16 = vld [vmem:[%s1420_s1 + $0x148] sm:$0xff]  ;;  %v1101_v19 = vld [vmem:[%s1420_s1 + $0x100] sm:$0xff]  ;;  %v791_v22 = vld [vmem:[%s1422_s0 + $0x10] sm:$0xf] }
  0x19   :  { %669 = vmatpush.bf16.msra.mxu3 %v1095_v23  ;;  %v1126_v17 = vld [vmem:[%s1420_s1 + $0x1c8] sm:$0xff]  ;;  %v1109_v20 = vld [vmem:[%s1420_s1 + $0x140] sm:$0xff]  ;;  %v1067_v23 = vld [vmem:[%s1422_s0 + $0x2c] sm:$0xf0] }
  0x1a   :  { %616 = vmatpush.bf16.msra.mxu0 %v1070_v24  ;;  %v1125_v21 = vld [vmem:[%s1420_s1 + $0x1c0] sm:$0xff]  ;;  %v1063_v24 = vld [vmem:[%s1422_s0 + $0x14] sm:$0xf]  ;;  %v25_v35 = vld [vmem:[%s1422_s0 + $0x58] sm:$0xff] }
  0x1b   :  { %634 = vmatpush.bf16.msra.mxu1 %v1078_v25  ;;  %v793_v25 = vld [vmem:[%s1422_s0 + $0x30] sm:$0xf0]  ;;  %v192_v38 = vunpack.c.l.b16 %v25_v35  ;;  %v193_v39 = vunpack.c.h.b16 %v25_v35  ;;  %v1138_v54 = vld [vmem:[%s1421_s2] ss:$0 sm:$0xff] }
  0x1c   :  { %652 = vmatpush.bf16.msra.mxu2 %v1086_v26  ;;  %v799_v26 = vld [vmem:[%s1422_s0 + $0x18] sm:$0xf]  ;;  %v24_v34 = vld [vmem:[%s1422_s0 + $0x50] sm:$0xff] }
  0x1d   :  { %670 = vmatpush.bf16.msra.mxu3 %v1094_v27  ;;  %v1068_v27 = vld [vmem:[%s1422_s0 + $0x34] sm:$0xf0]  ;;  %v190_v36 = vunpack.c.l.b16 %v24_v34  ;;  %v191_v37 = vunpack.c.h.b16 %v24_v34 }
  0x1e   :  { %617 = vmatpush.bf16.msra.mxu0 %v1069_v28  ;;  %v1064_v28 = vld [vmem:[%s1422_s0 + $0x1c] sm:$0xf]  ;;  %v800_v32 = vor.u32 %v1068_v27, %v799_v26 }
  0x1f   :  { %635 = vmatpush.bf16.msra.mxu1 %v1077_v29  ;;  %v801_v29 = vld [vmem:[%s1422_s0 + $0x38] sm:$0xf0] }
  0x20   :  { %653 = vmatpush.bf16.msra.mxu2 %v1085_v30  ;;  %v792_v30 = vor.u32 %v1067_v23, %v791_v22  ;;  %v804_v33 = vor.u32 %v1064_v28, %v801_v29 }
  0x21   :  { %671 = vmatpush.bf16.msra.mxu3 %v1093_v31  ;;  %618 = vmatmul.bf16.vlgmr.msra.gmra.mxu0 %v776_v42  ;;  %v796_v31 = vor.u32 %v1063_v24, %v793_v25  ;;  %v208_v42 = vpack.c.b16 %v192_v38, %v192_v38 }
  0x22   :  { %682 = vmatpush.bf16.msrb.mxu0 %v1108_v41  ;;  %636 = vmatmul.bf16.vlgmr.msra.gmra.mxu1 %v780_v43  ;;  %v207_v41 = vpack.c.b16 %v191_v37, %v191_v37  ;;  %v209_v43 = vpack.c.b16 %v193_v39, %v193_v39 }
  0x23   :  { %654 = vmatmul.bf16.vlgmr.msra.gmra.mxu2 %v784_v44  ;;  %700 = vmatpush.bf16.msrb.mxu1 %v1116_v46 }
  0x24   :  { %718 = vmatpush.bf16.msrb.mxu2 %v1124_v40  ;;  %672 = vmatmul.bf16.vlgmr.msra.gmra.mxu3 %v788_v45  ;;  %v206_v40 = vpack.c.b16 %v190_v36, %v190_v36 }
  0x25   :  { %736 = vmatpush.bf16.msrb.mxu3 %v1132_v47 }
  0x26   :  { %683 = vmatpush.bf16.msrb.mxu0 %v1107_v49 }
  0x27   :  { %701 = vmatpush.bf16.msrb.mxu1 %v1115_v50 }
  0x28   :  { %719 = vmatpush.bf16.msrb.mxu2 %v1123_v48 }
  0x29   :  { %737 = vmatpush.bf16.msrb.mxu3 %v1131_v51 }
  0x2a   :  { %684 = vmatpush.bf16.msrb.mxu0 %v1106_v53 }
  0x2b   :  { %702 = vmatpush.bf16.msrb.mxu1 %v1114_v55 }
  0x2c   :  { %720 = vmatpush.bf16.msrb.mxu2 %v1122_v52 }
  0x2d   :  { %738 = vmatpush.bf16.msrb.mxu3 %v1130_v56 }
  0x2e   :  { %685 = vmatpush.bf16.msrb.mxu0 %v1105_v59 }
  0x2f   :  { %703 = vmatpush.bf16.msrb.mxu1 %v1113_v0 }
  0x30   :  { %721 = vmatpush.bf16.msrb.mxu2 %v1121_v58 }
  0x31   :  { %739 = vmatpush.bf16.msrb.mxu3 %v1129_v1  ;;  %623 = vmatmul.bf16.gmra.mxu0 %v202_v4 }
  0x32   :  { %686 = vmatpush.bf16.msrb.mxu0 %v1104_v3  ;;  %641 = vmatmul.bf16.gmra.mxu1 %v203_v5 }
  0x33   :  { %659 = vmatmul.bf16.gmra.mxu2 %v204_v6  ;;  %704 = vmatpush.bf16.msrb.mxu1 %v1112_v8 }
  0x34   :  { %722 = vmatpush.bf16.msrb.mxu2 %v1120_v2  ;;  %677 = vmatmul.bf16.gmra.mxu3 %v205_v7 }
  0x35   :  { %740 = vmatpush.bf16.msrb.mxu3 %v1128_v9 }
  0x36   :  { %687 = vmatpush.bf16.msrb.mxu0 %v1103_v11 }
  0x37   :  { %705 = vmatpush.bf16.msrb.mxu1 %v1111_v12 }
  0x38   :  { %723 = vmatpush.bf16.msrb.mxu2 %v1119_v10 }
  0x39   :  { %741 = vmatpush.bf16.msrb.mxu3 %v1127_v13 }
  0x3a   :  { %688 = vmatpush.bf16.msrb.mxu0 %v1102_v15 }
  0x3b   :  { %706 = vmatpush.bf16.msrb.mxu1 %v1110_v16 }
  0x3c   :  { %724 = vmatpush.bf16.msrb.mxu2 %v1118_v14 }
  0x3d   :  { %742 = vmatpush.bf16.msrb.mxu3 %v1126_v17 }
  0x3e   :  { %689 = vmatpush.bf16.msrb.mxu0 %v1101_v19 }
  0x3f   :  { %707 = vmatpush.bf16.msrb.mxu1 %v1109_v20 }
  0x40   :  { %725 = vmatpush.bf16.msrb.mxu2 %v1117_v18 }
  0x41   :  { %743 = vmatpush.bf16.msrb.mxu3 %v1125_v21  ;;  %690 = vmatmul.bf16.vlgmr.msrb.gmra.mxu0 %v792_v30 }
  0x42   :  { %708 = vmatmul.bf16.vlgmr.msrb.gmra.mxu1 %v796_v31 }
  0x43   :  { %726 = vmatmul.bf16.vlgmr.msrb.gmra.mxu2 %v800_v32 }
  0x44   :  { %744 = vmatmul.bf16.vlgmr.msrb.gmra.mxu3 %v804_v33 }
  0x51   :  { %695 = vmatmul.bf16.gmra.mxu0 %v206_v40 }
  0x52   :  { %713 = vmatmul.bf16.gmra.mxu1 %v207_v41 }
  0x53   :  { %731 = vmatmul.bf16.gmra.mxu2 %v208_v42 }
  0x54   :  { %749 = vmatmul.bf16.gmra.mxu3 %v209_v43 }
  0x9e   :  { %v619_v44 = vpop.f32.mrf.mxu0 }
  0x9f   :  { %v637_v45 = vpop.f32.mrf.mxu1  ;;  %v620_v55 = vadd.f32 %v1138_v54, %v619_v44 }
  0xa1   :  { %v638_v60 = vadd.f32 %v637_v45, %v620_v55 }
  0xa6   :  { %v655_v46 = vpop.f32.mrf.mxu2  ;;  %v621_v48 = vpop.f32.mrf.mxu0 }
  0xa7   :  { %v673_v47 = vpop.f32.mrf.mxu3  ;;  %v639_v49 = vpop.f32.mrf.mxu1  ;;  %v656_v61 = vadd.f32 %v655_v46, %v638_v60  ;;  %v622_v62 = vadd.f32 %v1138_v54, %v621_v48 }
  0xa9   :  { %v674_v3 = vadd.f32 %v673_v47, %v656_v61  ;;  %v640_v4 = vadd.f32 %v639_v49, %v622_v62 }
  0xae   :  { %v657_v50 = vpop.f32.mrf.mxu2  ;;  %v624_v52 = vpop.f32.mrf.mxu0 }
  0xaf   :  { %v675_v51 = vpop.f32.mrf.mxu3  ;;  %v642_v53 = vpop.f32.mrf.mxu1  ;;  %v658_v5 = vadd.f32 %v657_v50, %v640_v4  ;;  %v625_v6 = vadd.f32 %v1138_v54, %v624_v52 }
  0xb1   :  { %v676_v9 = vadd.f32 %v675_v51, %v658_v5  ;;  %v643_v10 = vadd.f32 %v642_v53, %v625_v6 }
  0xb6   :  { %v660_v56 = vpop.f32.mrf.mxu2  ;;  %v626_v58 = vpop.f32.mrf.mxu0 }
  0xb7   :  { %v678_v57 = vpop.f32.mrf.mxu3  ;;  %v644_v59 = vpop.f32.mrf.mxu1  ;;  %v661_v17 = vadd.f32 %v660_v56, %v643_v10 }
  0xb9   :  { %v679_v21 = vadd.f32 %v678_v57, %v661_v17 }
  0xbe   :  { %v662_v63 = vpop.f32.mrf.mxu2  ;;  %v691_v1 = vpop.f32.mrf.mxu0 }
  0xbf   :  { %v680_v0 = vpop.f32.mrf.mxu3  ;;  %v709_v2 = vpop.f32.mrf.mxu1  ;;  %v692_v7 = vadd.f32 %v691_v1, %v674_v3 }
  0xc1   :  { %v710_v11 = vadd.f32 %v709_v2, %v692_v7 }
  0xc6   :  { %v727_v8 = vpop.f32.mrf.mxu2  ;;  %v693_v13 = vpop.f32.mrf.mxu0 }
  0xc7   :  { %v745_v12 = vpop.f32.mrf.mxu3  ;;  %v711_v14 = vpop.f32.mrf.mxu1  ;;  %v728_v15 = vadd.f32 %v727_v8, %v710_v11  ;;  %v694_v16 = vadd.f32 %v693_v13, %v676_v9 }
  0xc9   :  { %v746_v18 = vadd.f32 %v745_v12, %v728_v15  ;;  %v712_v19 = vadd.f32 %v711_v14, %v694_v16 }
  0xcb   :  { %v757_v26 = vmul.f32 0.2, %v746_v18  ;;  %vm754_vm0 = vcmp.ge.f32.partialorder %v746_v18, 0.0 }
  0xcd   :  { %v760_v30 = vsel %vm754_vm0, %v746_v18, %v757_v26 }
  0xce   :  { %v729_v20 = vpop.f32.mrf.mxu2  ;;  %v696_v24 = vpop.f32.mrf.mxu0 }
  0xcf   :  { %v730_v22 = vadd.f32 %v729_v20, %v712_v19  ;;  %v747_v23 = vpop.f32.mrf.mxu3  ;;  %v714_v25 = vpop.f32.mrf.mxu1  ;;  %v697_v28 = vadd.f32 %v696_v24, %v679_v21 }
  0xd1   :  { %v748_v27 = vadd.f32 %v747_v23, %v730_v22  ;;  %v715_v32 = vadd.f32 %v714_v25, %v697_v28 }
  0xd3   :  { %vm755_vm1 = vcmp.ge.f32.partialorder %v748_v27, 0.0  ;;  %v758_v29 = vmul.f32 0.2, %v748_v27 }
  0xd5   :  { %v761_v31 = vsel %vm755_vm1, %v748_v27, %v758_v29 }
  0xd6   :  { %v1136_v33 = vpack.c.bf16 %v761_v31, %v760_v30  ;;  %v732_v34 = vpop.f32.mrf.mxu2  ;;  %v698_v37 = vpop.f32.mrf.mxu0 }
  0xd7   :  { %v733_v35 = vadd.f32 %v732_v34, %v715_v32  ;;  %v750_v36 = vpop.f32.mrf.mxu3  ;;  %v716_v38 = vpop.f32.mrf.mxu1 }
  0xd8   :  { %1137 = vst [vmem:[%s1423_s3] sm:$0xff] %v1136_v33  }
  0xd9   :  { %v751_v39 = vadd.f32 %v750_v36, %v733_v35 }
  0xdb   :  { %vm756_vm2 = vcmp.ge.f32.partialorder %v751_v39, 0.0  ;;  %v759_v40 = vmul.f32 0.2, %v751_v39 }
  0xdd   :  { %v762_v41 = vsel %vm756_vm2, %v751_v39, %v759_v40 }
  0xde   :  { %v765_v42 = vpack.c.bf16 %v762_v41, %v762_v41  ;;  %v734_v43 = vpop.f32.mrf.mxu2 }
  0xdf   :  { %v752_v44 = vpop.f32.mrf.mxu3 }
  0xe0   :  { %768 = vst [vmem:[%s1423_s3 + $0x8] sm:$0xf] %v765_v42 }

// kernel: _generator_impl.21
= control target key start
LH: loop header
LB: loop body
LE: loop exit
PB: predicated region body
PF: predicated region fallthrough
CT: control target
= control target key end

     0   :  { %10 = vsyncpa [#allocation3], 0  ;;  %v28_v1 = vlaneseq  ;;  %s236_s0 = inlined_call_operand.vmem [shape: f32[8,128], index: 0, kind: input, shape index: {}]   ;;  %s237_s1 = inlined_call_operand.hbm [shape: f32[8,128], index: 1, kind: output, shape index: {0}]   ;;  %s238_s2 = inlined_call_operand.hbm [shape: f32[8,128], index: 2, kind: output, shape index: {1}]   ;;  %s239_s3 = inlined_call_operand.hbm [shape: f32[8,128], index: 3, kind: output, shape index: {2}]   ;;  %s240_s4 = inlined_call_operand.vmem [shape: f32[8,128], index: 4, kind: output, shape index: {3}]  }
   0x1   :  { %v22_v0 = vld [vmem:[%s236_s0] sm:$0xff] }
   0x2   :  { %11 = vsyncpa [#allocation5], 0  ;;  %s79_s19 = sshll.u32 %s238_s2, 4  ;;  %v40_v2 = vadd.f32 1.0, %v22_v0  ;;  %v192_v3 = vmov 0.0   ;;  %s193_s20 = smov [#allocation4]   ;;  %s80_s19 = int_to_ptr.hbm [resolvable:$true] %s79_s19 }
   0x3   :  { %48 = vst [vmem:[#allocation2] sm:$0xff] %v192_v3  ;;  %s77_s21 = sshll.u32 %s193_s20, 4  ;;  %v29_v4 = vand.u32 127, %v28_v1  ;;  %s194_s22 = smov [#allocation2]   ;;  %s78_s21 = int_to_ptr.vmem [resolvable:$true] %s77_s21 }
   0x4   :  { %56 = vst [vmem:[#allocation6] sm:$0xff] %v192_v3  ;;  %v41_v5 = vmax.f32 %v40_v2, 0.0  ;;  %s66_s23 = sshll.u32 %s194_s22, 4  ;;  %s68_s25 = sshll.u32 %s237_s1, 4  ;;  %s67_s23 = int_to_ptr.vmem [resolvable:$true] %s66_s23  ;;  %s69_s25 = int_to_ptr.hbm [resolvable:$true] %s68_s25 }
   0x5   :  { %vm30_vm0 = vcmp.lt.s32.totalorder %v29_v4, 1  ;;  %71 = dma.vmem_to_hbm [thread:$0]  %s67_s23, 128, %s69_s25, [#allocation3]  }
   0x6   :  { %v42_v6 = vsel %vm30_vm0, %v41_v5, 0.0  ;;  %v44_v7 = vsel %vm30_vm0, %v22_v0, 0.0  ;;  %s90_s27 = sshll.u32 %s239_s3, 4  ;;  %s195_s28 = smov [#allocation6]   ;;  %s91_s27 = int_to_ptr.hbm [resolvable:$true] %s90_s27 }
   0x7   :  { %s88_s29 = sshll.u32 %s195_s28, 4  ;;  %52 = vst [vmem:[#allocation4] sm:$0xff] %v42_v6  ;;  %s89_s29 = int_to_ptr.vmem [resolvable:$true] %s88_s29 }
   0x8   :  { %82 = dma.vmem_to_hbm [thread:$0]  %s78_s21, 128, %s80_s19, [#allocation5]   ;;  %60 = vst [vmem:[%s240_s4] sm:$0xff] %v44_v7 }
   0x9   :  { %93 = dma.vmem_to_hbm [thread:$0]  %s89_s29, 128, %s91_s27, [#allocation5]  }
   0xa   :  { %188 = dma.done.wait [#allocation3], 128  }
   0xb   :  { %189 = vsyncadd [#allocation3], 4294967168 }
   0xc   :  { %190 = dma.done.wait [#allocation5], 256  }
   0xd   :  { %191 = vsyncadd [#allocation5], 4294967040 }
   0xe   :  { %110 = vsyncpa [#allocation3], 1 }
   0xf   :  { %111 = vsyncpa [#allocation5], 1 }

// kernel: _generator_impl.20
= control target key start
LH: loop header
LB: loop body
LE: loop exit
PB: predicated region body
PF: predicated region fallthrough
CT: control target
= control target key end

     0   :  { %s2394_s1 = inlined_call_operand.vmem [shape: bf16[2048,128], index: 1, kind: input, shape index: {}]   ;;  %s2395_s2 = inlined_call_operand.vmem [shape: f32[1,128], index: 2, kind: input, shape index: {}]   ;;  %s2396_s0 = inlined_call_operand.vmem [shape: bf16[8,2048], index: 0, kind: input, shape index: {}]   ;;  %s2397_s3 = inlined_call_operand.vmem [shape: f32[8,128], index: 3, kind: output, shape index: {}]  }
   0x1   :  { %v1838_v0 = vld [vmem:[%s2394_s1 + $0x38] sm:$0xff]  ;;  %v1837_v4 = vld [vmem:[%s2394_s1 + $0x30] sm:$0xff]  ;;  %v1836_v8 = vld [vmem:[%s2394_s1 + $0x28] sm:$0xff] }
   0x2   :  { %v1846_v1 = vld [vmem:[%s2394_s1 + $0x78] sm:$0xff]  ;;  %1106 = vmatpush.bf16.msra.mxu0 %v1838_v0  ;;  %v1845_v5 = vld [vmem:[%s2394_s1 + $0x70] sm:$0xff]  ;;  %v1844_v9 = vld [vmem:[%s2394_s1 + $0x68] sm:$0xff] }
   0x3   :  { %v1854_v2 = vld [vmem:[%s2394_s1 + $0xb8] sm:$0xff]  ;;  %1119 = vmatpush.bf16.msra.mxu1 %v1846_v1  ;;  %v1853_v6 = vld [vmem:[%s2394_s1 + $0xb0] sm:$0xff]  ;;  %v1852_v10 = vld [vmem:[%s2394_s1 + $0xa8] sm:$0xff] }
   0x4   :  { %v1862_v3 = vld [vmem:[%s2394_s1 + $0xf8] sm:$0xff]  ;;  %1132 = vmatpush.bf16.msra.mxu2 %v1854_v2  ;;  %v1861_v7 = vld [vmem:[%s2394_s1 + $0xf0] sm:$0xff]  ;;  %v1860_v11 = vld [vmem:[%s2394_s1 + $0xe8] sm:$0xff] }
   0x5   :  { %1145 = vmatpush.bf16.msra.mxu3 %v1862_v3  ;;  %v1835_v12 = vld [vmem:[%s2394_s1 + $0x20] sm:$0xff]  ;;  %v1834_v16 = vld [vmem:[%s2394_s1 + $0x18] sm:$0xff]  ;;  %v1833_v20 = vld [vmem:[%s2394_s1 + $0x10] sm:$0xff] }
   0x6   :  { %1107 = vmatpush.bf16.msra.mxu0 %v1837_v4  ;;  %v1843_v13 = vld [vmem:[%s2394_s1 + $0x60] sm:$0xff]  ;;  %v1842_v17 = vld [vmem:[%s2394_s1 + $0x58] sm:$0xff]  ;;  %v1841_v21 = vld [vmem:[%s2394_s1 + $0x50] sm:$0xff] }
   0x7   :  { %1120 = vmatpush.bf16.msra.mxu1 %v1845_v5  ;;  %v1851_v14 = vld [vmem:[%s2394_s1 + $0xa0] sm:$0xff]  ;;  %v1850_v18 = vld [vmem:[%s2394_s1 + $0x98] sm:$0xff]  ;;  %v1849_v22 = vld [vmem:[%s2394_s1 + $0x90] sm:$0xff] }
   0x8   :  { %1133 = vmatpush.bf16.msra.mxu2 %v1853_v6  ;;  %v1859_v15 = vld [vmem:[%s2394_s1 + $0xe0] sm:$0xff]  ;;  %v1858_v19 = vld [vmem:[%s2394_s1 + $0xd8] sm:$0xff]  ;;  %v1857_v23 = vld [vmem:[%s2394_s1 + $0xd0] sm:$0xff] }
   0x9   :  { %1146 = vmatpush.bf16.msra.mxu3 %v1861_v7  ;;  %v1832_v24 = vld [vmem:[%s2394_s1 + $0x8] sm:$0xff]  ;;  %v14_v29 = vld [vmem:[%s2396_s0] sm:$0xff]  ;;  %v1870_v38 = vld [vmem:[%s2394_s1 + $0x138] sm:$0xff] }
   0xa   :  { %1108 = vmatpush.bf16.msra.mxu0 %v1836_v8  ;;  %v1840_v25 = vld [vmem:[%s2394_s1 + $0x48] sm:$0xff]  ;;  %v1831_v30 = vld [vmem:[%s2394_s1] sm:$0xff]  ;;  %v290_v33 = vunpack.c.l.b16 %v14_v29  ;;  %v291_v37 = vunpack.c.h.b16 %v14_v29  ;;  %v1878_v39 = vld [vmem:[%s2394_s1 + $0x178] sm:$0xff] }
   0xb   :  { %1121 = vmatpush.bf16.msra.mxu1 %v1844_v9  ;;  %v1848_v26 = vld [vmem:[%s2394_s1 + $0x88] sm:$0xff]  ;;  %v1839_v31 = vld [vmem:[%s2394_s1 + $0x40] sm:$0xff]  ;;  %v1886_v40 = vld [vmem:[%s2394_s1 + $0x1b8] sm:$0xff] }
   0xc   :  { %1134 = vmatpush.bf16.msra.mxu2 %v1852_v10  ;;  %v1856_v27 = vld [vmem:[%s2394_s1 + $0xc8] sm:$0xff]  ;;  %v1847_v34 = vld [vmem:[%s2394_s1 + $0x80] sm:$0xff]  ;;  %v1894_v41 = vld [vmem:[%s2394_s1 + $0x1f8] sm:$0xff]  ;;  %v306_v43 = vpack.c.b16 %v290_v33, %v290_v33  ;;  %v307_v45 = vpack.c.b16 %v291_v37, %v291_v37 }
   0xd   :  { %1147 = vmatpush.bf16.msra.mxu3 %v1860_v11  ;;  %v15_v28 = vld [vmem:[%s2396_s0 + $0x8] sm:$0xff]  ;;  %v1855_v35 = vld [vmem:[%s2394_s1 + $0xc0] sm:$0xff]  ;;  %v1869_v46 = vld [vmem:[%s2394_s1 + $0x130] sm:$0xff] }
   0xe   :  { %1109 = vmatpush.bf16.msra.mxu0 %v1835_v12  ;;  %v292_v32 = vunpack.c.l.b16 %v15_v28  ;;  %v293_v36 = vunpack.c.h.b16 %v15_v28  ;;  %v1877_v47 = vld [vmem:[%s2394_s1 + $0x170] sm:$0xff]  ;;  %v1868_v50 = vld [vmem:[%s2394_s1 + $0x128] sm:$0xff]  ;;  %v1867_v54 = vld [vmem:[%s2394_s1 + $0x120] sm:$0xff] }
   0xf   :  { %1122 = vmatpush.bf16.msra.mxu1 %v1843_v13  ;;  %v1885_v48 = vld [vmem:[%s2394_s1 + $0x1b0] sm:$0xff]  ;;  %v1876_v51 = vld [vmem:[%s2394_s1 + $0x168] sm:$0xff]  ;;  %v1875_v55 = vld [vmem:[%s2394_s1 + $0x160] sm:$0xff] }
  0x10   :  { %1135 = vmatpush.bf16.msra.mxu2 %v1851_v14  ;;  %v308_v42 = vpack.c.b16 %v292_v32, %v292_v32  ;;  %v309_v44 = vpack.c.b16 %v293_v36, %v293_v36  ;;  %v1893_v49 = vld [vmem:[%s2394_s1 + $0x1f0] sm:$0xff]  ;;  %v1884_v52 = vld [vmem:[%s2394_s1 + $0x1a8] sm:$0xff]  ;;  %v1883_v56 = vld [vmem:[%s2394_s1 + $0x1a0] sm:$0xff] }
  0x11   :  { %1148 = vmatpush.bf16.msra.mxu3 %v1859_v15  ;;  %v1892_v53 = vld [vmem:[%s2394_s1 + $0x1e8] sm:$0xff]  ;;  %v1891_v57 = vld [vmem:[%s2394_s1 + $0x1e0] sm:$0xff]  ;;  %v1866_v58 = vld [vmem:[%s2394_s1 + $0x118] sm:$0xff] }
  0x12   :  { %1110 = vmatpush.bf16.msra.mxu0 %v1834_v16  ;;  %v1874_v59 = vld [vmem:[%s2394_s1 + $0x158] sm:$0xff]  ;;  %v1865_v62 = vld [vmem:[%s2394_s1 + $0x110] sm:$0xff]  ;;  %v1864_v2 = vld [vmem:[%s2394_s1 + $0x108] sm:$0xff] }
  0x13   :  { %1123 = vmatpush.bf16.msra.mxu1 %v1842_v17  ;;  %v1882_v60 = vld [vmem:[%s2394_s1 + $0x198] sm:$0xff]  ;;  %v1873_v63 = vld [vmem:[%s2394_s1 + $0x150] sm:$0xff]  ;;  %v1872_v3 = vld [vmem:[%s2394_s1 + $0x148] sm:$0xff] }
  0x14   :  { %1136 = vmatpush.bf16.msra.mxu2 %v1850_v18  ;;  %v1890_v61 = vld [vmem:[%s2394_s1 + $0x1d8] sm:$0xff]  ;;  %v1881_v0 = vld [vmem:[%s2394_s1 + $0x190] sm:$0xff]  ;;  %v1880_v4 = vld [vmem:[%s2394_s1 + $0x188] sm:$0xff] }
  0x15   :  { %1149 = vmatpush.bf16.msra.mxu3 %v1858_v19  ;;  %v1889_v1 = vld [vmem:[%s2394_s1 + $0x1d0] sm:$0xff]  ;;  %v1888_v5 = vld [vmem:[%s2394_s1 + $0x1c8] sm:$0xff]  ;;  %v17_v6 = vld [vmem:[%s2396_s0 + $0x18] sm:$0xff] }
  0x16   :  { %1111 = vmatpush.bf16.msra.mxu0 %v1833_v20  ;;  %v16_v7 = vld [vmem:[%s2396_s0 + $0x10] sm:$0xff]  ;;  %v1863_v8 = vld [vmem:[%s2394_s1 + $0x100] sm:$0xff]  ;;  %v296_v10 = vunpack.c.l.b16 %v17_v6  ;;  %v297_v14 = vunpack.c.h.b16 %v17_v6  ;;  %v1902_v16 = vld [vmem:[%s2394_s1 + $0x238] sm:$0xff] }
  0x17   :  { %1124 = vmatpush.bf16.msra.mxu1 %v1841_v21  ;;  %v1871_v9 = vld [vmem:[%s2394_s1 + $0x140] sm:$0xff]  ;;  %v294_v11 = vunpack.c.l.b16 %v16_v7  ;;  %v295_v15 = vunpack.c.h.b16 %v16_v7  ;;  %v1910_v17 = vld [vmem:[%s2394_s1 + $0x278] sm:$0xff]  ;;  %v1900_v28 = vld [vmem:[%s2394_s1 + $0x228] sm:$0xff] }
  0x18   :  { %1137 = vmatpush.bf16.msra.mxu2 %v1849_v22  ;;  %v1879_v12 = vld [vmem:[%s2394_s1 + $0x180] sm:$0xff]  ;;  %v1918_v18 = vld [vmem:[%s2394_s1 + $0x2b8] sm:$0xff]  ;;  %v312_v20 = vpack.c.b16 %v296_v10, %v296_v10  ;;  %v313_v22 = vpack.c.b16 %v297_v14, %v297_v14  ;;  %v1908_v29 = vld [vmem:[%s2394_s1 + $0x268] sm:$0xff] }
  0x19   :  { %1150 = vmatpush.bf16.msra.mxu3 %v1857_v23  ;;  %v1887_v13 = vld [vmem:[%s2394_s1 + $0x1c0] sm:$0xff]  ;;  %v1926_v19 = vld [vmem:[%s2394_s1 + $0x2f8] sm:$0xff]  ;;  %v310_v21 = vpack.c.b16 %v294_v11, %v294_v11  ;;  %v311_v23 = vpack.c.b16 %v295_v15, %v295_v15  ;;  %v1932_v6 = vld [vmem:[%s2394_s1 + $0x328] sm:$0xff] }
  0x1a   :  { %1112 = vmatpush.bf16.msra.mxu0 %v1832_v24  ;;  %v1901_v24 = vld [vmem:[%s2394_s1 + $0x230] sm:$0xff]  ;;  %v1899_v32 = vld [vmem:[%s2394_s1 + $0x220] sm:$0xff]  ;;  %v1898_v36 = vld [vmem:[%s2394_s1 + $0x218] sm:$0xff] }
  0x1b   :  { %1125 = vmatpush.bf16.msra.mxu1 %v1840_v25  ;;  %v1909_v25 = vld [vmem:[%s2394_s1 + $0x270] sm:$0xff]  ;;  %v1907_v33 = vld [vmem:[%s2394_s1 + $0x260] sm:$0xff]  ;;  %v1906_v37 = vld [vmem:[%s2394_s1 + $0x258] sm:$0xff] }
  0x1c   :  { %1138 = vmatpush.bf16.msra.mxu2 %v1848_v26  ;;  %v1917_v26 = vld [vmem:[%s2394_s1 + $0x2b0] sm:$0xff]  ;;  %v1940_v7 = vld [vmem:[%s2394_s1 + $0x368] sm:$0xff]  ;;  %v1931_v10 = vld [vmem:[%s2394_s1 + $0x320] sm:$0xff] }
  0x1d   :  { %1151 = vmatpush.bf16.msra.mxu3 %v1856_v27  ;;  %v1925_v27 = vld [vmem:[%s2394_s1 + $0x2f0] sm:$0xff]  ;;  %v1939_v11 = vld [vmem:[%s2394_s1 + $0x360] sm:$0xff]  ;;  %v1930_v14 = vld [vmem:[%s2394_s1 + $0x318] sm:$0xff] }
  0x1e   :  { %1113 = vmatpush.bf16.msra.mxu0 %v1831_v30  ;;  %v1916_v30 = vld [vmem:[%s2394_s1 + $0x2a8] sm:$0xff]  ;;  %v1938_v15 = vld [vmem:[%s2394_s1 + $0x358] sm:$0xff] }
  0x1f   :  { %1126 = vmatpush.bf16.msra.mxu1 %v1839_v31  ;;  %v1924_v31 = vld [vmem:[%s2394_s1 + $0x2e8] sm:$0xff] }
  0x20   :  { %1139 = vmatpush.bf16.msra.mxu2 %v1847_v34  ;;  %v1915_v34 = vld [vmem:[%s2394_s1 + $0x2a0] sm:$0xff] }
  0x21   :  { %1152 = vmatpush.bf16.msra.mxu3 %v1855_v35  ;;  %1114 = vmatmul.bf16.vlgmr.msra.gmra.mxu0 %v306_v43  ;;  %v1923_v35 = vld [vmem:[%s2394_s1 + $0x2e0] sm:$0xff]  ;;  %v1921_v43 = vld [vmem:[%s2394_s1 + $0x2d0] sm:$0xff] }
  0x22   :  { %1158 = vmatpush.bf16.msrb.mxu0 %v1870_v38  ;;  %1127 = vmatmul.bf16.vlgmr.msra.gmra.mxu1 %v307_v45  ;;  %v1914_v38 = vld [vmem:[%s2394_s1 + $0x298] sm:$0xff]  ;;  %v1904_v45 = vld [vmem:[%s2394_s1 + $0x248] sm:$0xff] }
  0x23   :  { %1171 = vmatpush.bf16.msrb.mxu1 %v1878_v39  ;;  %1140 = vmatmul.bf16.vlgmr.msra.gmra.mxu2 %v308_v42  ;;  %v1922_v39 = vld [vmem:[%s2394_s1 + $0x2d8] sm:$0xff]  ;;  %v1913_v42 = vld [vmem:[%s2394_s1 + $0x290] sm:$0xff] }
  0x24   :  { %1184 = vmatpush.bf16.msrb.mxu2 %v1886_v40  ;;  %1153 = vmatmul.bf16.vlgmr.msra.gmra.mxu3 %v309_v44  ;;  %v1897_v40 = vld [vmem:[%s2394_s1 + $0x210] sm:$0xff]  ;;  %v1896_v44 = vld [vmem:[%s2394_s1 + $0x208] sm:$0xff] }
  0x25   :  { %1197 = vmatpush.bf16.msrb.mxu3 %v1894_v41  ;;  %v1905_v41 = vld [vmem:[%s2394_s1 + $0x250] sm:$0xff] }
  0x26   :  { %1159 = vmatpush.bf16.msrb.mxu0 %v1869_v46  ;;  %v1912_v46 = vld [vmem:[%s2394_s1 + $0x288] sm:$0xff] }
  0x27   :  { %1172 = vmatpush.bf16.msrb.mxu1 %v1877_v47  ;;  %v1920_v47 = vld [vmem:[%s2394_s1 + $0x2c8] sm:$0xff] }
  0x28   :  { %1185 = vmatpush.bf16.msrb.mxu2 %v1885_v48  ;;  %v18_v48 = vld [vmem:[%s2396_s0 + $0x20] sm:$0xff] }
  0x29   :  { %1198 = vmatpush.bf16.msrb.mxu3 %v1893_v49  ;;  %v19_v49 = vld [vmem:[%s2396_s0 + $0x28] sm:$0xff] }
  0x2a   :  { %1160 = vmatpush.bf16.msrb.mxu0 %v1868_v50  ;;  %v1895_v50 = vld [vmem:[%s2394_s1 + $0x200] sm:$0xff] }
  0x2b   :  { %1173 = vmatpush.bf16.msrb.mxu1 %v1876_v51  ;;  %v1903_v51 = vld [vmem:[%s2394_s1 + $0x240] sm:$0xff] }
  0x2c   :  { %1186 = vmatpush.bf16.msrb.mxu2 %v1884_v52  ;;  %v298_v52 = vunpack.c.l.b16 %v18_v48 }
  0x2d   :  { %1199 = vmatpush.bf16.msrb.mxu3 %v1892_v53  ;;  %v300_v53 = vunpack.c.l.b16 %v19_v49 }
  0x2e   :  { %1161 = vmatpush.bf16.msrb.mxu0 %v1867_v54  ;;  %v1911_v54 = vld [vmem:[%s2394_s1 + $0x280] sm:$0xff] }
  0x2f   :  { %1174 = vmatpush.bf16.msrb.mxu1 %v1875_v55  ;;  %v1919_v55 = vld [vmem:[%s2394_s1 + $0x2c0] sm:$0xff] }
  0x30   :  { %1187 = vmatpush.bf16.msrb.mxu2 %v1883_v56  ;;  %v299_v56 = vunpack.c.h.b16 %v18_v48 }
  0x31   :  { %1200 = vmatpush.bf16.msrb.mxu3 %v1891_v57  ;;  %v301_v57 = vunpack.c.h.b16 %v19_v49 }
  0x32   :  { %1162 = vmatpush.bf16.msrb.mxu0 %v1866_v58  ;;  %v1934_v58 = vld [vmem:[%s2394_s1 + $0x338] sm:$0xff] }
  0x33   :  { %1175 = vmatpush.bf16.msrb.mxu1 %v1874_v59  ;;  %v1942_v59 = vld [vmem:[%s2394_s1 + $0x378] sm:$0xff] }
  0x34   :  { %1188 = vmatpush.bf16.msrb.mxu2 %v1882_v60  ;;  %v1950_v60 = vld [vmem:[%s2394_s1 + $0x3b8] sm:$0xff] }
  0x35   :  { %1201 = vmatpush.bf16.msrb.mxu3 %v1890_v61  ;;  %v1958_v61 = vld [vmem:[%s2394_s1 + $0x3f8] sm:$0xff] }
  0x36   :  { %1163 = vmatpush.bf16.msrb.mxu0 %v1865_v62  ;;  %v314_v62 = vpack.c.b16 %v298_v52, %v298_v52 }
  0x37   :  { %1176 = vmatpush.bf16.msrb.mxu1 %v1873_v63  ;;  %v316_v63 = vpack.c.b16 %v300_v53, %v300_v53 }
  0x38   :  { %1189 = vmatpush.bf16.msrb.mxu2 %v1881_v0  ;;  %v315_v0 = vpack.c.b16 %v299_v56, %v299_v56 }
  0x39   :  { %1202 = vmatpush.bf16.msrb.mxu3 %v1889_v1  ;;  %v317_v1 = vpack.c.b16 %v301_v57, %v301_v57 }
  0x3a   :  { %1164 = vmatpush.bf16.msrb.mxu0 %v1864_v2  ;;  %v1933_v2 = vld [vmem:[%s2394_s1 + $0x330] sm:$0xff] }
  0x3b   :  { %1177 = vmatpush.bf16.msrb.mxu1 %v1872_v3  ;;  %v1941_v3 = vld [vmem:[%s2394_s1 + $0x370] sm:$0xff] }
  0x3c   :  { %1190 = vmatpush.bf16.msrb.mxu2 %v1880_v4  ;;  %v1949_v4 = vld [vmem:[%s2394_s1 + $0x3b0] sm:$0xff] }
  0x3d   :  { %1203 = vmatpush.bf16.msrb.mxu3 %v1888_v5  ;;  %v1957_v5 = vld [vmem:[%s2394_s1 + $0x3f0] sm:$0xff] }
  0x3e   :  { %1165 = vmatpush.bf16.msrb.mxu0 %v1863_v8  ;;  %v1948_v8 = vld [vmem:[%s2394_s1 + $0x3a8] sm:$0xff] }
  0x3f   :  { %1178 = vmatpush.bf16.msrb.mxu1 %v1871_v9  ;;  %v1956_v9 = vld [vmem:[%s2394_s1 + $0x3e8] sm:$0xff] }
  0x40   :  { %1191 = vmatpush.bf16.msrb.mxu2 %v1879_v12  ;;  %v1947_v12 = vld [vmem:[%s2394_s1 + $0x3a0] sm:$0xff] }
  0x41   :  { %1204 = vmatpush.bf16.msrb.mxu3 %v1887_v13  ;;  %1166 = vmatmul.bf16.vlgmr.msrb.gmra.mxu0 %v310_v21  ;;  %v1955_v13 = vld [vmem:[%s2394_s1 + $0x3e0] sm:$0xff]  ;;  %v1953_v21 = vld [vmem:[%s2394_s1 + $0x3d0] sm:$0xff] }
  0x42   :  { %1210 = vmatpush.bf16.msra.mxu0 %v1902_v16  ;;  %1179 = vmatmul.bf16.vlgmr.msrb.gmra.mxu1 %v311_v23  ;;  %v1946_v16 = vld [vmem:[%s2394_s1 + $0x398] sm:$0xff]  ;;  %v1936_v23 = vld [vmem:[%s2394_s1 + $0x348] sm:$0xff] }
  0x43   :  { %1223 = vmatpush.bf16.msra.mxu1 %v1910_v17  ;;  %1192 = vmatmul.bf16.vlgmr.msrb.gmra.mxu2 %v312_v20  ;;  %v1954_v17 = vld [vmem:[%s2394_s1 + $0x3d8] sm:$0xff]  ;;  %v1945_v20 = vld [vmem:[%s2394_s1 + $0x390] sm:$0xff] }
  0x44   :  { %1236 = vmatpush.bf16.msra.mxu2 %v1918_v18  ;;  %1205 = vmatmul.bf16.vlgmr.msrb.gmra.mxu3 %v313_v22  ;;  %v1929_v18 = vld [vmem:[%s2394_s1 + $0x310] sm:$0xff]  ;;  %v1928_v22 = vld [vmem:[%s2394_s1 + $0x308] sm:$0xff] }
  0x45   :  { %1249 = vmatpush.bf16.msra.mxu3 %v1926_v19  ;;  %v1937_v19 = vld [vmem:[%s2394_s1 + $0x350] sm:$0xff] }
  0x46   :  { %1211 = vmatpush.bf16.msra.mxu0 %v1901_v24  ;;  %v20_v24 = vld [vmem:[%s2396_s0 + $0x30] sm:$0xff] }
  0x47   :  { %1224 = vmatpush.bf16.msra.mxu1 %v1909_v25  ;;  %v1944_v25 = vld [vmem:[%s2394_s1 + $0x388] sm:$0xff] }
  0x48   :  { %1237 = vmatpush.bf16.msra.mxu2 %v1917_v26  ;;  %v1952_v26 = vld [vmem:[%s2394_s1 + $0x3c8] sm:$0xff] }
  0x49   :  { %1250 = vmatpush.bf16.msra.mxu3 %v1925_v27  ;;  %v21_v27 = vld [vmem:[%s2396_s0 + $0x38] sm:$0xff] }
  0x4a   :  { %1212 = vmatpush.bf16.msra.mxu0 %v1900_v28  ;;  %v302_v28 = vunpack.c.l.b16 %v20_v24 }
  0x4b   :  { %1225 = vmatpush.bf16.msra.mxu1 %v1908_v29  ;;  %v303_v29 = vunpack.c.h.b16 %v20_v24 }
  0x4c   :  { %1238 = vmatpush.bf16.msra.mxu2 %v1916_v30  ;;  %v1927_v30 = vld [vmem:[%s2394_s1 + $0x300] sm:$0xff] }
  0x4d   :  { %1251 = vmatpush.bf16.msra.mxu3 %v1924_v31  ;;  %v1935_v31 = vld [vmem:[%s2394_s1 + $0x340] sm:$0xff] }
  0x4e   :  { %1213 = vmatpush.bf16.msra.mxu0 %v1899_v32  ;;  %v304_v32 = vunpack.c.l.b16 %v21_v27 }
  0x4f   :  { %1226 = vmatpush.bf16.msra.mxu1 %v1907_v33  ;;  %v305_v33 = vunpack.c.h.b16 %v21_v27 }
  0x50   :  { %1239 = vmatpush.bf16.msra.mxu2 %v1915_v34  ;;  %v1943_v34 = vld [vmem:[%s2394_s1 + $0x380] sm:$0xff] }
  0x51   :  { %1252 = vmatpush.bf16.msra.mxu3 %v1923_v35  ;;  %v1951_v35 = vld [vmem:[%s2394_s1 + $0x3c0] sm:$0xff] }
  0x52   :  { %1214 = vmatpush.bf16.msra.mxu0 %v1898_v36  ;;  %v318_v36 = vpack.c.b16 %v302_v28, %v302_v28 }
  0x53   :  { %1227 = vmatpush.bf16.msra.mxu1 %v1906_v37  ;;  %v319_v37 = vpack.c.b16 %v303_v29, %v303_v29 }
  0x54   :  { %1240 = vmatpush.bf16.msra.mxu2 %v1914_v38  ;;  %v320_v38 = vpack.c.b16 %v304_v32, %v304_v32 }
  0x55   :  { %1253 = vmatpush.bf16.msra.mxu3 %v1922_v39  ;;  %v321_v39 = vpack.c.b16 %v305_v33, %v305_v33 }
  0x56   :  { %1215 = vmatpush.bf16.msra.mxu0 %v1897_v40  ;;  %v1959_v40 = vld [vmem:[%s2395_s2] ss:$0 sm:$0xff] }
  0x57   :  { %1228 = vmatpush.bf16.msra.mxu1 %v1905_v41 }
  0x58   :  { %1241 = vmatpush.bf16.msra.mxu2 %v1913_v42 }
  0x59   :  { %1254 = vmatpush.bf16.msra.mxu3 %v1921_v43 }
  0x5a   :  { %1216 = vmatpush.bf16.msra.mxu0 %v1896_v44 }
  0x5b   :  { %1229 = vmatpush.bf16.msra.mxu1 %v1904_v45 }
  0x5c   :  { %1242 = vmatpush.bf16.msra.mxu2 %v1912_v46 }
  0x5d   :  { %1255 = vmatpush.bf16.msra.mxu3 %v1920_v47 }
  0x5e   :  { %1217 = vmatpush.bf16.msra.mxu0 %v1895_v50 }
  0x5f   :  { %1230 = vmatpush.bf16.msra.mxu1 %v1903_v51 }
  0x60   :  { %1243 = vmatpush.bf16.msra.mxu2 %v1911_v54 }
  0x61   :  { %1256 = vmatpush.bf16.msra.mxu3 %v1919_v55  ;;  %1218 = vmatmul.bf16.vlgmr.msra.gmra.mxu0 %v314_v62 }
  0x62   :  { %1262 = vmatpush.bf16.msrb.mxu0 %v1934_v58  ;;  %1231 = vmatmul.bf16.vlgmr.msra.gmra.mxu1 %v315_v0 }
  0x63   :  { %1275 = vmatpush.bf16.msrb.mxu1 %v1942_v59  ;;  %1244 = vmatmul.bf16.vlgmr.msra.gmra.mxu2 %v316_v63 }
  0x64   :  { %1288 = vmatpush.bf16.msrb.mxu2 %v1950_v60  ;;  %1257 = vmatmul.bf16.vlgmr.msra.gmra.mxu3 %v317_v1 }
  0x65   :  { %1301 = vmatpush.bf16.msrb.mxu3 %v1958_v61 }
  0x66   :  { %1263 = vmatpush.bf16.msrb.mxu0 %v1933_v2 }
  0x67   :  { %1276 = vmatpush.bf16.msrb.mxu1 %v1941_v3 }
  0x68   :  { %1289 = vmatpush.bf16.msrb.mxu2 %v1949_v4 }
  0x69   :  { %1302 = vmatpush.bf16.msrb.mxu3 %v1957_v5 }
  0x6a   :  { %1264 = vmatpush.bf16.msrb.mxu0 %v1932_v6 }
  0x6b   :  { %1277 = vmatpush.bf16.msrb.mxu1 %v1940_v7 }
  0x6c   :  { %1290 = vmatpush.bf16.msrb.mxu2 %v1948_v8 }
  0x6d   :  { %1303 = vmatpush.bf16.msrb.mxu3 %v1956_v9 }
  0x6e   :  { %1265 = vmatpush.bf16.msrb.mxu0 %v1931_v10 }
  0x6f   :  { %1278 = vmatpush.bf16.msrb.mxu1 %v1939_v11 }
  0x70   :  { %1291 = vmatpush.bf16.msrb.mxu2 %v1947_v12 }
  0x71   :  { %1304 = vmatpush.bf16.msrb.mxu3 %v1955_v13 }
  0x72   :  { %1266 = vmatpush.bf16.msrb.mxu0 %v1930_v14 }
  0x73   :  { %1279 = vmatpush.bf16.msrb.mxu1 %v1938_v15 }
  0x74   :  { %1292 = vmatpush.bf16.msrb.mxu2 %v1946_v16 }
  0x75   :  { %1305 = vmatpush.bf16.msrb.mxu3 %v1954_v17 }
  0x76   :  { %1267 = vmatpush.bf16.msrb.mxu0 %v1929_v18 }
  0x77   :  { %1280 = vmatpush.bf16.msrb.mxu1 %v1937_v19 }
  0x78   :  { %1293 = vmatpush.bf16.msrb.mxu2 %v1945_v20 }
  0x79   :  { %1306 = vmatpush.bf16.msrb.mxu3 %v1953_v21 }
  0x7a   :  { %1268 = vmatpush.bf16.msrb.mxu0 %v1928_v22 }
  0x7b   :  { %1281 = vmatpush.bf16.msrb.mxu1 %v1936_v23 }
  0x7c   :  { %1294 = vmatpush.bf16.msrb.mxu2 %v1944_v25 }
  0x7d   :  { %1307 = vmatpush.bf16.msrb.mxu3 %v1952_v26 }
  0x7e   :  { %1269 = vmatpush.bf16.msrb.mxu0 %v1927_v30 }
  0x7f   :  { %1282 = vmatpush.bf16.msrb.mxu1 %v1935_v31 }
  0x80   :  { %1295 = vmatpush.bf16.msrb.mxu2 %v1943_v34 }
  0x81   :  { %1308 = vmatpush.bf16.msrb.mxu3 %v1951_v35  ;;  %1270 = vmatmul.bf16.vlgmr.msrb.gmra.mxu0 %v318_v36 }
  0x82   :  { %1283 = vmatmul.bf16.vlgmr.msrb.gmra.mxu1 %v319_v37 }
  0x83   :  { %1296 = vmatmul.bf16.vlgmr.msrb.gmra.mxu2 %v320_v38 }
  0x84   :  { %1309 = vmatmul.bf16.vlgmr.msrb.gmra.mxu3 %v321_v39 }
  0x9e   :  { %v1115_v41 = vpop.f32.mrf.mxu0 }
  0x9f   :  { %v1116_v42 = vadd.f32 %v1959_v40, %v1115_v41  ;;  %v1128_v43 = vpop.f32.mrf.mxu1 }
  0xa1   :  { %v1129_v44 = vadd.f32 %v1128_v43, %v1116_v42 }
  0xa6   :  { %v1141_v45 = vpop.f32.mrf.mxu2  ;;  %v1117_v48 = vpop.f32.mrf.mxu0 }
  0xa7   :  { %v1142_v46 = vadd.f32 %v1141_v45, %v1129_v44  ;;  %v1154_v47 = vpop.f32.mrf.mxu3  ;;  %v1130_v50 = vpop.f32.mrf.mxu1 }
  0xa9   :  { %v1155_v49 = vadd.f32 %v1154_v47, %v1142_v46 }
  0xae   :  { %v1143_v51 = vpop.f32.mrf.mxu2 }
  0xaf   :  { %v1156_v52 = vpop.f32.mrf.mxu3 }
  0xbe   :  { %v1167_v53 = vpop.f32.mrf.mxu0 }
  0xbf   :  { %v1180_v54 = vpop.f32.mrf.mxu1  ;;  %v1168_v63 = vadd.f32 %v1167_v53, %v1155_v49 }
  0xc1   :  { %v1181_v3 = vadd.f32 %v1180_v54, %v1168_v63 }
  0xc6   :  { %v1193_v55 = vpop.f32.mrf.mxu2  ;;  %v1169_v57 = vpop.f32.mrf.mxu0 }
  0xc7   :  { %v1206_v56 = vpop.f32.mrf.mxu3  ;;  %v1182_v58 = vpop.f32.mrf.mxu1  ;;  %v1194_v5 = vadd.f32 %v1193_v55, %v1181_v3 }
  0xc9   :  { %v1207_v8 = vadd.f32 %v1206_v56, %v1194_v5 }
  0xce   :  { %v1195_v59 = vpop.f32.mrf.mxu2 }
  0xcf   :  { %v1208_v60 = vpop.f32.mrf.mxu3 }
  0xde   :  { %v1219_v61 = vpop.f32.mrf.mxu0 }
  0xdf   :  { %v1232_v62 = vpop.f32.mrf.mxu1  ;;  %v1220_v9 = vadd.f32 %v1219_v61, %v1207_v8 }
  0xe1   :  { %v1233_v10 = vadd.f32 %v1232_v62, %v1220_v9 }
  0xe6   :  { %v1245_v0 = vpop.f32.mrf.mxu2  ;;  %v1221_v2 = vpop.f32.mrf.mxu0 }
  0xe7   :  { %v1258_v1 = vpop.f32.mrf.mxu3  ;;  %v1234_v4 = vpop.f32.mrf.mxu1  ;;  %v1246_v11 = vadd.f32 %v1245_v0, %v1233_v10 }
  0xe9   :  { %v1259_v12 = vadd.f32 %v1258_v1, %v1246_v11 }
  0xee   :  { %v1247_v6 = vpop.f32.mrf.mxu2 }
  0xef   :  { %v1260_v7 = vpop.f32.mrf.mxu3 }
  0xfe   :  { %v1271_v13 = vpop.f32.mrf.mxu0 }
  0xff   :  { %v1284_v14 = vpop.f32.mrf.mxu1  ;;  %v1272_v15 = vadd.f32 %v1271_v13, %v1259_v12 }
 0x101   :  { %v1285_v16 = vadd.f32 %v1284_v14, %v1272_v15 }
 0x106   :  { %v1297_v17 = vpop.f32.mrf.mxu2  ;;  %v1273_v20 = vpop.f32.mrf.mxu0 }
 0x107   :  { %v1310_v18 = vpop.f32.mrf.mxu3  ;;  %v1298_v19 = vadd.f32 %v1297_v17, %v1285_v16  ;;  %v1286_v21 = vpop.f32.mrf.mxu1 }
 0x109   :  { %v1311_v22 = vadd.f32 %v1310_v18, %v1298_v19 }
 0x10b   :  { %1314 = vst [vmem:[%s2397_s3] sm:$0xff] %v1311_v22 }
 0x10e   :  { %v1299_v23 = vpop.f32.mrf.mxu2 }
 0x10f   :  { %v1312_v24 = vpop.f32.mrf.mxu3 }

</bundles_post_ra>
